<compile_context>
chip_gen: v6e
topology: v6e:2x2x1
jax: 0.10.0
libtpu: 0.0.40
codegen_flags: <defaults>
</compile_context>

<pallas_src>
import math
from functools import partial

import numpy as np
import jax
import jax.numpy as jnp
from jax import lax
from jax.experimental import pallas as pl
from jax.experimental.pallas import tpu as pltpu

EPS = 1e-5                      # nn.LayerNorm default eps
VMEM_LIMIT = 48 * 1024 * 1024   # headroom below v7x's 64 MiB physical VMEM


def _layernorm(x, g, b):
    mu = jnp.mean(x, axis=-1, keepdims=True)
    xc = x - mu
    var = jnp.mean(xc * xc, axis=-1, keepdims=True)
    return xc * lax.rsqrt(var + EPS) * g + b


def _erf(z):
    # Abramowitz & Stegun 7.1.26 polynomial, |error| < 1.5e-7.  Matches nn.GELU()
    # (exact erf form) without relying on a lax.erf Mosaic lowering.
    a1, a2, a3, a4, a5 = (0.254829592, -0.284496736, 1.421413741,
                          -1.453152027, 1.061405429)
    pconst = 0.3275911
    s = jnp.where(z >= 0.0, 1.0, -1.0)
    az = jnp.abs(z)
    t = 1.0 / (1.0 + pconst * az)
    poly = ((((a5 * t + a4) * t + a3) * t + a2) * t + a1) * t
    return s * (1.0 - poly * jnp.exp(-az * az))


def _gelu_exact(x):
    return 0.5 * x * (1.0 + _erf(x * (1.0 / math.sqrt(2.0))))


# --------------- Kernel A: LayerNorm + QK + softmax + per-unique-weight V ---------------
def _attn_scores_kernel(heads, dh, scale, num_unique, use_bf16,
                        x_ref, g_ref, b_ref, wqk_ref, up_ref, attn_ref, v_ref):
    inner = heads * dh
    cdt = jnp.bfloat16 if use_bf16 else jnp.float32

    x = x_ref[0]                                                    # (N, D)
    xn = _layernorm(x, g_ref[...], b_ref[...])
    xn_c = xn.astype(cdt)

    # Q/K projection + batched per-head attention scores (MXU).
    qk = jnp.dot(xn_c, wqk_ref[...].astype(cdt),
                 preferred_element_type=jnp.float32)                # (N, 2*inner)
    q3 = jnp.stack([qk[:, h * dh:(h + 1) * dh] for h in range(heads)], axis=0)
    k3 = jnp.stack([qk[:, inner + h * dh: inner + (h + 1) * dh]
                    for h in range(heads)], axis=0)                 # (H, N, dh)
    dots = lax.dot_general(q3, k3, (((2,), (2,)), ((0,), (0,))),
                           preferred_element_type=jnp.float32) * scale   # (H, N, N)
    m = jnp.max(dots, axis=-1, keepdims=True)
    e = jnp.exp(dots - m)
    s = jnp.sum(e, axis=-1, keepdims=True)
    p = e * pl.reciprocal(s, approx=True)
    # Write directly in the layout the combine kernel consumes:
    # (query, head, key) with keys on the lane axis.
    attn_ref[0] = jnp.transpose(p, (1, 0, 2))                       # (N, H, N)

    # V_u = LN(x) @ up[u] for every unique relative weight (MXU), stored (U, N, inner).
    for u in range(num_unique):
        v_ref[0, u] = jnp.dot(xn_c, up_ref[u].astype(cdt),
                              preferred_element_type=jnp.float32)   # (N, inner)


# ------- Kernel B: per-(batch, query) indexed weighted sum over keys (index_map in SMEM) -------
def _attn_combine_kernel(n_tokens, heads, dh,
                         imap_ref, attn_ref, v_ref, o_ref):
    i = pl.program_id(1)                       # query index; batch is program_id(0)
    # Gather the per-key relative-value rows: vsel[j, :] = V[b, index_map[i, j], j, :]
    rows = [v_ref[0, imap_ref[i, j], pl.ds(j, 1), :] for j in range(n_tokens)]
    vsel = jnp.concatenate(rows, axis=0)       # (N, inner)
    a = attn_ref[0, 0]                         # (heads, N) attention row for query i
    out = jnp.concatenate(
        [jnp.dot(a[h:h + 1, :], vsel[:, h * dh:(h + 1) * dh],
                 preferred_element_type=jnp.float32) for h in range(heads)],
        axis=1)                                # (1, inner)
    o_ref[0, i] = out                          # row i of the resident (N, 1, inner) block


# ------- Kernel C: fused to_out projection + attn residual + FeedForward + ff residual -------
def _out_ff_kernel(use_bf16, comb_ref, x_ref, wo_ref, bo_ref,
                   g_ref, b_ref, w1_ref, b1_ref, w2_ref, b2_ref, o_ref):
    cdt = jnp.bfloat16 if use_bf16 else jnp.float32
    comb = comb_ref[0, :, 0, :]                                     # (N, inner)
    # attention output projection + attention residual:  xa = to_out(comb) + x
    xa = jnp.dot(comb.astype(cdt), wo_ref[...].astype(cdt),
                 preferred_element_type=jnp.float32) + bo_ref[...] + x_ref[0]
    # FeedForward: LN -> Linear -> GELU(exact) -> Linear, plus residual
    xn = _layernorm(xa, g_ref[...], b_ref[...])
    h = jnp.dot(xn.astype(cdt), w1_ref[...].astype(cdt),
                preferred_element_type=jnp.float32) + b1_ref[...]
    h = _gelu_exact(h)
    y = jnp.dot(h.astype(cdt), w2_ref[...].astype(cdt),
                preferred_element_type=jnp.float32) + b2_ref[...]
    o_ref[0] = y + xa


def _norm_kernel(x_ref, g_ref, b_ref, o_ref):
    o_ref[0] = _layernorm(x_ref[0], g_ref[...], b_ref[...])


# ------------------------------------ wrappers ---------------------------------------
def attention_combine(x, p, heads, dim_head, index_map, use_bf16=True):
    """Attention scores + relative-value combine; returns pre-projection context (B,N,1,inner)."""
    B, N, D = x.shape
    inner = heads * dim_head
    U = p["up"].shape[0]
    scale = dim_head ** (-0.5)

    attn, v = pl.pallas_call(
        partial(_attn_scores_kernel, heads, dim_head, scale, U, use_bf16),
        grid=(B,),
        in_specs=[
            pl.BlockSpec((1, N, D), lambda b: (b, 0, 0)),
            pl.BlockSpec((1, D), lambda b: (0, 0)),
            pl.BlockSpec((1, D), lambda b: (0, 0)),
            pl.BlockSpec((D, 2 * inner), lambda b: (0, 0)),
            pl.BlockSpec((U, D, inner), lambda b: (0, 0, 0)),   # resident: read once / layer
        ],
        out_specs=[
            pl.BlockSpec((1, N, heads, N), lambda b: (b, 0, 0, 0)),
            pl.BlockSpec((1, U, N, inner), lambda b: (b, 0, 0, 0)),
        ],
        out_shape=[
            jax.ShapeDtypeStruct((B, N, heads, N), jnp.float32),
            jax.ShapeDtypeStruct((B, U, N, inner), jnp.float32),
        ],
        compiler_params=pltpu.CompilerParams(
            dimension_semantics=("parallel",), vmem_limit_bytes=VMEM_LIMIT),
    )(x, p["ln_g"], p["ln_b"], p["w_qk"], p["up"])

    # TODO(synk): at realistic ViT sizes the per-batch V block (U, N, inner) exceeds VMEM;
    # it would need an extra key / unique-weight tiling axis with an accumulator scratch.
    combined = pl.pallas_call(
        partial(_attn_combine_kernel, N, heads, dim_head),
        grid_spec=pltpu.PrefetchScalarGridSpec(
            num_scalar_prefetch=1,              # index_map -> SMEM
            grid=(B, N),                        # batch OUTER: V block resident across queries
            in_specs=[
                pl.BlockSpec((1, 1, heads, N), lambda b, i, imap: (b, i, 0, 0)),
                pl.BlockSpec((1, U, N, inner), lambda b, i, imap: (b, 0, 0, 0)),
            ],
            out_specs=pl.BlockSpec((1, N, 1, inner), lambda b, i, imap: (b, 0, 0, 0)),
        ),
        out_shape=jax.ShapeDtypeStruct((B, N, 1, inner), jnp.float32),
        compiler_params=pltpu.CompilerParams(
            dimension_semantics=("parallel", "arbitrary"),
            vmem_limit_bytes=VMEM_LIMIT),
    )(index_map, attn, v)
    return combined


def out_ff_block(combined, x, attn_p, ff_p, use_bf16=True):
    B, N, D = x.shape
    inner = combined.shape[-1]
    Hdim = ff_p["w1"].shape[1]
    return pl.pallas_call(
        partial(_out_ff_kernel, use_bf16),
        grid=(B,),
        in_specs=[
            pl.BlockSpec((1, N, 1, inner), lambda b: (b, 0, 0, 0)),
            pl.BlockSpec((1, N, D), lambda b: (b, 0, 0)),
            pl.BlockSpec((inner, D), lambda b: (0, 0)),
            pl.BlockSpec((1, D), lambda b: (0, 0)),
            pl.BlockSpec((1, D), lambda b: (0, 0)),
            pl.BlockSpec((1, D), lambda b: (0, 0)),
            pl.BlockSpec((D, Hdim), lambda b: (0, 0)),
            pl.BlockSpec((1, Hdim), lambda b: (0, 0)),
            pl.BlockSpec((Hdim, D), lambda b: (0, 0)),
            pl.BlockSpec((1, D), lambda b: (0, 0)),
        ],
        out_specs=pl.BlockSpec((1, N, D), lambda b: (b, 0, 0)),
        out_shape=jax.ShapeDtypeStruct((B, N, D), jnp.float32),
        compiler_params=pltpu.CompilerParams(
            dimension_semantics=("parallel",), vmem_limit_bytes=VMEM_LIMIT),
    )(combined, x, attn_p["w_o"], attn_p["b_o"],
      ff_p["ln_g"], ff_p["ln_b"], ff_p["w1"], ff_p["b1"], ff_p["w2"], ff_p["b2"])


def final_norm(x, p):
    B, N, D = x.shape
    return pl.pallas_call(
        _norm_kernel,
        grid=(B,),
        in_specs=[
            pl.BlockSpec((1, N, D), lambda b: (b, 0, 0)),
            pl.BlockSpec((1, D), lambda b: (0, 0)),
            pl.BlockSpec((1, D), lambda b: (0, 0)),
        ],
        out_specs=pl.BlockSpec((1, N, D), lambda b: (b, 0, 0)),
        out_shape=jax.ShapeDtypeStruct((B, N, D), jnp.float32),
        compiler_params=pltpu.CompilerParams(
            dimension_semantics=("parallel",), vmem_limit_bytes=VMEM_LIMIT),
    )(x, p["ln_g"], p["ln_b"])


def translution_forward(x, params, heads, dim_head, use_bf16=True):
    index_map = params["index_map"]
    for attn_p, ff_p in params["layers"]:
        combined = attention_combine(x, attn_p, heads, dim_head, index_map, use_bf16)
        # out_ff fuses: x1 = to_out(combined) + x ; x = ff(LN(x1)) + x1
        x = out_ff_block(combined, x, attn_p, ff_p, use_bf16)
    return final_norm(x, params["final"])


# ------------------------------ parameter construction --------------------------------
def build_index_map(H, W):
    """Reproduces SharedParameterRelCls.index_map."""
    num = (2 * H - 1) * (2 * W - 1)
    idx_cls, idx_cls_in, idx_cls_out = num, num + 1, num + 2
    rows = [[idx_cls] + [idx_cls_in] * (H * W)]
    for x in range(H):
        for y in range(W):
            tmp = [idx_cls_out]
            for i in range(H):
                for j in range(W):
                    dx = x - i + H - 1
                    dy = y - j + W - 1
                    tmp.append(dx * (2 * W - 1) + dy)
            rows.append(tmp)
    return np.asarray(rows, dtype=np.int32)


def init_params(key, hw_size, dim, depth, heads, dim_head, mlp_dim):
    # Note: uses simple Gaussian init (not torch kaiming); structure/shapes match the module.
    Hh, Ww = hw_size
    inner = heads * dim_head
    num_img_weights = (2 * Hh - 1) * (2 * Ww - 1)
    layers = []
    for _ in range(depth):
        key, *ks = jax.random.split(key, 9)
        attn_p = dict(
            ln_g=jnp.ones((1, dim), jnp.float32),
            ln_b=jnp.zeros((1, dim), jnp.float32),
            w_qk=jax.random.normal(ks[1], (dim, 2 * inner), jnp.float32) * 0.05,
            # unique relative-value table ONLY (no (N,N,D,inner) materialization)
            up=jax.random.normal(ks[0], (num_img_weights + 3, dim, inner), jnp.float32) * 0.05,
            w_o=jax.random.normal(ks[2], (inner, dim), jnp.float32) * 0.05,
            b_o=jax.random.normal(ks[3], (1, dim), jnp.float32) * 0.01,
        )
        ff_p = dict(
            ln_g=jnp.ones((1, dim), jnp.float32),
            ln_b=jnp.zeros((1, dim), jnp.float32),
            w1=jax.random.normal(ks[4], (dim, mlp_dim), jnp.float32) * 0.05,
            b1=jax.random.normal(ks[5], (1, mlp_dim), jnp.float32) * 0.01,
            w2=jax.random.normal(ks[6], (mlp_dim, dim), jnp.float32) * 0.05,
            b2=jax.random.normal(ks[7], (1, dim), jnp.float32) * 0.01,
        )
        layers.append((attn_p, ff_p))
    final = dict(ln_g=jnp.ones((1, dim), jnp.float32), ln_b=jnp.zeros((1, dim), jnp.float32))
    index_map = jnp.asarray(build_index_map(Hh, Ww), jnp.int32)   # (N, N), static per model
    return dict(layers=layers, final=final, index_map=index_map)


if __name__ == "__main__":
    hw_size = (4, 4)
    dim, depth, heads, dim_head, mlp_dim = 32, 2, 2, 16, 64
    B = 2
    N = hw_size[0] * hw_size[1] + 1              # 17 = cls token + 16 patches

    key = jax.random.PRNGKey(0)
    kx, kp = jax.random.split(key)
    x = jax.random.normal(kx, (B, N, dim), jnp.float32)
    params = init_params(kp, hw_size, dim, depth, heads, dim_head, mlp_dim)

    out = jax.block_until_ready(translution_forward(x, params, heads, dim_head, use_bf16=True))

    assert out.shape == (B, N, dim)
    assert bool(jnp.all(jnp.isfinite(out)))
    print("KERNEL_OK")
</pallas_src>

<mosaic_0001>
module attributes {stable_mosaic.version = 11 : i64} {
  func.func @_attn_scores_kernel(%arg0: i32, %arg1: memref<1x17x32xf32, #tpu.memory_space<vmem>>, %arg2: memref<1x32xf32, #tpu.memory_space<vmem>>, %arg3: memref<1x32xf32, #tpu.memory_space<vmem>>, %arg4: memref<32x64xf32, #tpu.memory_space<vmem>>, %arg5: memref<52x32x32xf32, #tpu.memory_space<vmem>>, %arg6: memref<1x17x2x17xf32, #tpu.memory_space<vmem>>, %arg7: memref<1x52x17x32xf32, #tpu.memory_space<vmem>>) attributes {dimension_semantics = [#tpu.dimension_semantics<parallel>], iteration_bounds = array<i64: 2>, scalar_prefetch = 0 : i64, scratch_operands = 0 : i64, tpu.core_type = #tpu.core_type<tc>, window_params = [{transform_indices = @transform_0, window_bounds = array<i64: 1, 17, 32>}, {pipeline_mode = #tpu.pipeline_mode<synchronous>, transform_indices = @transform_1, window_bounds = array<i64: 1, 32>}, {pipeline_mode = #tpu.pipeline_mode<synchronous>, transform_indices = @transform_2, window_bounds = array<i64: 1, 32>}, {pipeline_mode = #tpu.pipeline_mode<synchronous>, transform_indices = @transform_3, window_bounds = array<i64: 32, 64>}, {pipeline_mode = #tpu.pipeline_mode<synchronous>, transform_indices = @transform_4, window_bounds = array<i64: 52, 32, 32>}, {transform_indices = @transform_5, window_bounds = array<i64: 1, 17, 2, 17>}, {transform_indices = @transform_6, window_bounds = array<i64: 1, 52, 17, 32>}]} {
    %c0 = arith.constant 0 : index
    %c0_0 = arith.constant 0 : index
    %c0_1 = arith.constant 0 : index
    %0 = vector.load %arg1[%c0, %c0_0, %c0_1] : memref<1x17x32xf32, #tpu.memory_space<vmem>>, vector<1x17x32xf32>
    %1 = vector.shape_cast %0 : vector<1x17x32xf32> to vector<17x32xf32>
    %c0_2 = arith.constant 0 : index
    %c0_3 = arith.constant 0 : index
    %2 = vector.load %arg2[%c0_2, %c0_3] : memref<1x32xf32, #tpu.memory_space<vmem>>, vector<1x32xf32>
    %c0_4 = arith.constant 0 : index
    %c0_5 = arith.constant 0 : index
    %3 = vector.load %arg3[%c0_4, %c0_5] : memref<1x32xf32, #tpu.memory_space<vmem>>, vector<1x32xf32>
    %cst = arith.constant dense<0.000000e+00> : vector<17xf32>
    %4 = vector.multi_reduction <add>, %1, %cst [1] : vector<17x32xf32> to vector<17xf32>
    %5 = vector.shape_cast %4 : vector<17xf32> to vector<17x1xf32>
    %cst_6 = arith.constant 3.200000e+01 : f32
    %6 = vector.broadcast %cst_6 : f32 to vector<17x1xf32>
    %7 = arith.divf %5, %6 : vector<17x1xf32>
    %8 = vector.broadcast %7 : vector<17x1xf32> to vector<17x32xf32>
    %9 = arith.subf %1, %8 : vector<17x32xf32>
    %10 = arith.mulf %9, %9 : vector<17x32xf32>
    %cst_7 = arith.constant dense<0.000000e+00> : vector<17xf32>
    %11 = vector.multi_reduction <add>, %10, %cst_7 [1] : vector<17x32xf32> to vector<17xf32>
    %12 = vector.shape_cast %11 : vector<17xf32> to vector<17x1xf32>
    %cst_8 = arith.constant 3.200000e+01 : f32
    %13 = vector.broadcast %cst_8 : f32 to vector<17x1xf32>
    %14 = arith.divf %12, %13 : vector<17x1xf32>
    %cst_9 = arith.constant 9.99999974E-6 : f32
    %15 = vector.broadcast %cst_9 : f32 to vector<17x1xf32>
    %16 = arith.addf %14, %15 : vector<17x1xf32>
    %17 = math.rsqrt %16 : vector<17x1xf32>
    %18 = vector.broadcast %17 : vector<17x1xf32> to vector<17x32xf32>
    %19 = arith.mulf %9, %18 : vector<17x32xf32>
    %20 = vector.broadcast %2 : vector<1x32xf32> to vector<17x32xf32>
    %21 = arith.mulf %19, %20 : vector<17x32xf32>
    %22 = vector.broadcast %3 : vector<1x32xf32> to vector<17x32xf32>
    %23 = arith.addf %21, %22 : vector<17x32xf32>
    %24 = arith.truncf %23 : vector<17x32xf32> to vector<17x32xbf16>
    %c0_10 = arith.constant 0 : index
    %c0_11 = arith.constant 0 : index
    %25 = vector.load %arg4[%c0_10, %c0_11] : memref<32x64xf32, #tpu.memory_space<vmem>>, vector<32x64xf32>
    %26 = arith.truncf %25 : vector<32x64xf32> to vector<32x64xbf16>
    %cst_12 = arith.constant dense<0.000000e+00> : vector<17x64xf32>
    %27 = tpu.matmul %24, %26, %cst_12 {dimension_numbers = #tpu.dot_dimension_numbers<[1], [0], [0], [1], [0, 0, 1, 1], [], []>} : vector<17x32xbf16>, vector<32x64xbf16>, vector<17x64xf32> -> vector<17x64xf32>
    %28 = vector.extract_strided_slice %27 {offsets = [0, 0], sizes = [17, 16], strides = [1, 1]} : vector<17x64xf32> to vector<17x16xf32>
    %29 = vector.extract_strided_slice %27 {offsets = [0, 16], sizes = [17, 16], strides = [1, 1]} : vector<17x64xf32> to vector<17x16xf32>
    %30 = vector.shape_cast %28 : vector<17x16xf32> to vector<1x17x16xf32>
    %31 = vector.shape_cast %29 : vector<17x16xf32> to vector<1x17x16xf32>
    %32 = tpu.concatenate %30, %31 in 0 : vector<1x17x16xf32>, vector<1x17x16xf32> -> vector<2x17x16xf32>
    %33 = vector.extract_strided_slice %27 {offsets = [0, 32], sizes = [17, 16], strides = [1, 1]} : vector<17x64xf32> to vector<17x16xf32>
    %34 = vector.extract_strided_slice %27 {offsets = [0, 48], sizes = [17, 16], strides = [1, 1]} : vector<17x64xf32> to vector<17x16xf32>
    %35 = vector.shape_cast %33 : vector<17x16xf32> to vector<1x17x16xf32>
    %36 = vector.shape_cast %34 : vector<17x16xf32> to vector<1x17x16xf32>
    %37 = tpu.concatenate %35, %36 in 0 : vector<1x17x16xf32>, vector<1x17x16xf32> -> vector<2x17x16xf32>
    %cst_13 = arith.constant dense<0.000000e+00> : vector<2x17x17xf32>
    %38 = tpu.matmul %32, %37, %cst_13 {dimension_numbers = #tpu.dot_dimension_numbers<[2], [2], [1], [1], [0, 0, 0, 1, 1, 1], [0], [0]>} : vector<2x17x16xf32>, vector<2x17x16xf32>, vector<2x17x17xf32> -> vector<2x17x17xf32>
    %cst_14 = arith.constant 2.500000e-01 : f32
    %39 = vector.broadcast %cst_14 : f32 to vector<2x17x17xf32>
    %40 = arith.mulf %38, %39 : vector<2x17x17xf32>
    %cst_15 = arith.constant dense<0xFF800000> : vector<2x17xf32>
    %41 = vector.multi_reduction <maximumf>, %40, %cst_15 [2] : vector<2x17x17xf32> to vector<2x17xf32>
    %42 = vector.shape_cast %41 : vector<2x17xf32> to vector<2x17x1xf32>
    %43 = vector.broadcast %42 : vector<2x17x1xf32> to vector<2x17x17xf32>
    %44 = arith.subf %40, %43 : vector<2x17x17xf32>
    %45 = math.exp %44 : vector<2x17x17xf32>
    %cst_16 = arith.constant dense<0.000000e+00> : vector<2x17xf32>
    %46 = vector.multi_reduction <add>, %45, %cst_16 [2] : vector<2x17x17xf32> to vector<2x17xf32>
    %47 = vector.shape_cast %46 : vector<2x17xf32> to vector<2x17x1xf32>
    %48 = tpu.reciprocal %47 {approx = true} : vector<2x17x1xf32> -> vector<2x17x1xf32>
    %49 = vector.broadcast %48 : vector<2x17x1xf32> to vector<2x17x17xf32>
    %50 = arith.mulf %45, %49 : vector<2x17x17xf32>
    %51 = tpu.transpose %50, [1, 0, 2] : vector<2x17x17xf32> -> vector<17x2x17xf32>
    %c0_17 = arith.constant 0 : index
    %c0_18 = arith.constant 0 : index
    %c0_19 = arith.constant 0 : index
    %c0_20 = arith.constant 0 : index
    %52 = vector.load %arg6[%c0_17, %c0_18, %c0_19, %c0_20] : memref<1x17x2x17xf32, #tpu.memory_space<vmem>>, vector<1x17x2x17xf32>
    %53 = vector.shape_cast %52 : vector<1x17x2x17xf32> to vector<17x2x17xf32>
    %54 = vector.shape_cast %51 : vector<17x2x17xf32> to vector<1x17x2x17xf32>
    tpu.vector_store %arg6[%c0_17, %c0_18, %c0_19, %c0_20], %54 {strides = array<i32>} : memref<1x17x2x17xf32, #tpu.memory_space<vmem>>, vector<1x17x2x17xf32>,
    %c0_21 = arith.constant 0 : index
    %c0_22 = arith.constant 0 : index
    %c0_23 = arith.constant 0 : index
    %55 = vector.load %arg5[%c0_21, %c0_22, %c0_23] : memref<52x32x32xf32, #tpu.memory_space<vmem>>, vector<1x32x32xf32>
    %56 = vector.shape_cast %55 : vector<1x32x32xf32> to vector<32x32xf32>
    %57 = arith.truncf %56 : vector<32x32xf32> to vector<32x32xbf16>
    %cst_24 = arith.constant dense<0.000000e+00> : vector<17x32xf32>
    %58 = tpu.matmul %24, %57, %cst_24 {dimension_numbers = #tpu.dot_dimension_numbers<[1], [0], [0], [1], [0, 0, 1, 1], [], []>} : vector<17x32xbf16>, vector<32x32xbf16>, vector<17x32xf32> -> vector<17x32xf32>
    %c0_25 = arith.constant 0 : index
    %c0_26 = arith.constant 0 : index
    %c0_27 = arith.constant 0 : index
    %c0_28 = arith.constant 0 : index
    %59 = vector.load %arg7[%c0_25, %c0_26, %c0_27, %c0_28] : memref<1x52x17x32xf32, #tpu.memory_space<vmem>>, vector<1x1x17x32xf32>
    %60 = vector.shape_cast %59 : vector<1x1x17x32xf32> to vector<17x32xf32>
    %61 = vector.shape_cast %58 : vector<17x32xf32> to vector<1x1x17x32xf32>
    tpu.vector_store %arg7[%c0_25, %c0_26, %c0_27, %c0_28], %61 {strides = array<i32>} : memref<1x52x17x32xf32, #tpu.memory_space<vmem>>, vector<1x1x17x32xf32>,
    %c1 = arith.constant 1 : index
    %c0_29 = arith.constant 0 : index
    %c0_30 = arith.constant 0 : index
    %62 = vector.load %arg5[%c1, %c0_29, %c0_30] : memref<52x32x32xf32, #tpu.memory_space<vmem>>, vector<1x32x32xf32>
    %63 = vector.shape_cast %62 : vector<1x32x32xf32> to vector<32x32xf32>
    %64 = arith.truncf %63 : vector<32x32xf32> to vector<32x32xbf16>
    %cst_31 = arith.constant dense<0.000000e+00> : vector<17x32xf32>
    %65 = tpu.matmul %24, %64, %cst_31 {dimension_numbers = #tpu.dot_dimension_numbers<[1], [0], [0], [1], [0, 0, 1, 1], [], []>} : vector<17x32xbf16>, vector<32x32xbf16>, vector<17x32xf32> -> vector<17x32xf32>
    %c0_32 = arith.constant 0 : index
    %c1_33 = arith.constant 1 : index
    %c0_34 = arith.constant 0 : index
    %c0_35 = arith.constant 0 : index
    %66 = vector.load %arg7[%c0_32, %c1_33, %c0_34, %c0_35] : memref<1x52x17x32xf32, #tpu.memory_space<vmem>>, vector<1x1x17x32xf32>
    %67 = vector.shape_cast %66 : vector<1x1x17x32xf32> to vector<17x32xf32>
    %68 = vector.shape_cast %65 : vector<17x32xf32> to vector<1x1x17x32xf32>
    tpu.vector_store %arg7[%c0_32, %c1_33, %c0_34, %c0_35], %68 {strides = array<i32>} : memref<1x52x17x32xf32, #tpu.memory_space<vmem>>, vector<1x1x17x32xf32>,
    %c2 = arith.constant 2 : index
    %c0_36 = arith.constant 0 : index
    %c0_37 = arith.constant 0 : index
    %69 = vector.load %arg5[%c2, %c0_36, %c0_37] : memref<52x32x32xf32, #tpu.memory_space<vmem>>, vector<1x32x32xf32>
    %70 = vector.shape_cast %69 : vector<1x32x32xf32> to vector<32x32xf32>
    %71 = arith.truncf %70 : vector<32x32xf32> to vector<32x32xbf16>
    %cst_38 = arith.constant dense<0.000000e+00> : vector<17x32xf32>
    %72 = tpu.matmul %24, %71, %cst_38 {dimension_numbers = #tpu.dot_dimension_numbers<[1], [0], [0], [1], [0, 0, 1, 1], [], []>} : vector<17x32xbf16>, vector<32x32xbf16>, vector<17x32xf32> -> vector<17x32xf32>
    %c0_39 = arith.constant 0 : index
    %c2_40 = arith.constant 2 : index
    %c0_41 = arith.constant 0 : index
    %c0_42 = arith.constant 0 : index
    %73 = vector.load %arg7[%c0_39, %c2_40, %c0_41, %c0_42] : memref<1x52x17x32xf32, #tpu.memory_space<vmem>>, vector<1x1x17x32xf32>
    %74 = vector.shape_cast %73 : vector<1x1x17x32xf32> to vector<17x32xf32>
    %75 = vector.shape_cast %72 : vector<17x32xf32> to vector<1x1x17x32xf32>
    tpu.vector_store %arg7[%c0_39, %c2_40, %c0_41, %c0_42], %75 {strides = array<i32>} : memref<1x52x17x32xf32, #tpu.memory_space<vmem>>, vector<1x1x17x32xf32>,
    %c3 = arith.constant 3 : index
    %c0_43 = arith.constant 0 : index
    %c0_44 = arith.constant 0 : index
    %76 = vector.load %arg5[%c3, %c0_43, %c0_44] : memref<52x32x32xf32, #tpu.memory_space<vmem>>, vector<1x32x32xf32>
    %77 = vector.shape_cast %76 : vector<1x32x32xf32> to vector<32x32xf32>
    %78 = arith.truncf %77 : vector<32x32xf32> to vector<32x32xbf16>
    %cst_45 = arith.constant dense<0.000000e+00> : vector<17x32xf32>
    %79 = tpu.matmul %24, %78, %cst_45 {dimension_numbers = #tpu.dot_dimension_numbers<[1], [0], [0], [1], [0, 0, 1, 1], [], []>} : vector<17x32xbf16>, vector<32x32xbf16>, vector<17x32xf32> -> vector<17x32xf32>
    %c0_46 = arith.constant 0 : index
    %c3_47 = arith.constant 3 : index
    %c0_48 = arith.constant 0 : index
    %c0_49 = arith.constant 0 : index
    %80 = vector.load %arg7[%c0_46, %c3_47, %c0_48, %c0_49] : memref<1x52x17x32xf32, #tpu.memory_space<vmem>>, vector<1x1x17x32xf32>
    %81 = vector.shape_cast %80 : vector<1x1x17x32xf32> to vector<17x32xf32>
    %82 = vector.shape_cast %79 : vector<17x32xf32> to vector<1x1x17x32xf32>
    tpu.vector_store %arg7[%c0_46, %c3_47, %c0_48, %c0_49], %82 {strides = array<i32>} : memref<1x52x17x32xf32, #tpu.memory_space<vmem>>, vector<1x1x17x32xf32>,
    %c4 = arith.constant 4 : index
    %c0_50 = arith.constant 0 : index
    %c0_51 = arith.constant 0 : index
    %83 = vector.load %arg5[%c4, %c0_50, %c0_51] : memref<52x32x32xf32, #tpu.memory_space<vmem>>, vector<1x32x32xf32>
    %84 = vector.shape_cast %83 : vector<1x32x32xf32> to vector<32x32xf32>
    %85 = arith.truncf %84 : vector<32x32xf32> to vector<32x32xbf16>
    %cst_52 = arith.constant dense<0.000000e+00> : vector<17x32xf32>
    %86 = tpu.matmul %24, %85, %cst_52 {dimension_numbers = #tpu.dot_dimension_numbers<[1], [0], [0], [1], [0, 0, 1, 1], [], []>} : vector<17x32xbf16>, vector<32x32xbf16>, vector<17x32xf32> -> vector<17x32xf32>
    %c0_53 = arith.constant 0 : index
    %c4_54 = arith.constant 4 : index
    %c0_55 = arith.constant 0 : index
    %c0_56 = arith.constant 0 : index
    %87 = vector.load %arg7[%c0_53, %c4_54, %c0_55, %c0_56] : memref<1x52x17x32xf32, #tpu.memory_space<vmem>>, vector<1x1x17x32xf32>
    %88 = vector.shape_cast %87 : vector<1x1x17x32xf32> to vector<17x32xf32>
    %89 = vector.shape_cast %86 : vector<17x32xf32> to vector<1x1x17x32xf32>
    tpu.vector_store %arg7[%c0_53, %c4_54, %c0_55, %c0_56], %89 {strides = array<i32>} : memref<1x52x17x32xf32, #tpu.memory_space<vmem>>, vector<1x1x17x32xf32>,
    %c5 = arith.constant 5 : index
    %c0_57 = arith.constant 0 : index
    %c0_58 = arith.constant 0 : index
    %90 = vector.load %arg5[%c5, %c0_57, %c0_58] : memref<52x32x32xf32, #tpu.memory_space<vmem>>, vector<1x32x32xf32>
    %91 = vector.shape_cast %90 : vector<1x32x32xf32> to vector<32x32xf32>
    %92 = arith.truncf %91 : vector<32x32xf32> to vector<32x32xbf16>
    %cst_59 = arith.constant dense<0.000000e+00> : vector<17x32xf32>
    %93 = tpu.matmul %24, %92, %cst_59 {dimension_numbers = #tpu.dot_dimension_numbers<[1], [0], [0], [1], [0, 0, 1, 1], [], []>} : vector<17x32xbf16>, vector<32x32xbf16>, vector<17x32xf32> -> vector<17x32xf32>
    %c0_60 = arith.constant 0 : index
    %c5_61 = arith.constant 5 : index
    %c0_62 = arith.constant 0 : index
    %c0_63 = arith.constant 0 : index
    %94 = vector.load %arg7[%c0_60, %c5_61, %c0_62, %c0_63] : memref<1x52x17x32xf32, #tpu.memory_space<vmem>>, vector<1x1x17x32xf32>
    %95 = vector.shape_cast %94 : vector<1x1x17x32xf32> to vector<17x32xf32>
    %96 = vector.shape_cast %93 : vector<17x32xf32> to vector<1x1x17x32xf32>
    tpu.vector_store %arg7[%c0_60, %c5_61, %c0_62, %c0_63], %96 {strides = array<i32>} : memref<1x52x17x32xf32, #tpu.memory_space<vmem>>, vector<1x1x17x32xf32>,
    %c6 = arith.constant 6 : index
    %c0_64 = arith.constant 0 : index
    %c0_65 = arith.constant 0 : index
    %97 = vector.load %arg5[%c6, %c0_64, %c0_65] : memref<52x32x32xf32, #tpu.memory_space<vmem>>, vector<1x32x32xf32>
    %98 = vector.shape_cast %97 : vector<1x32x32xf32> to vector<32x32xf32>
    %99 = arith.truncf %98 : vector<32x32xf32> to vector<32x32xbf16>
    %cst_66 = arith.constant dense<0.000000e+00> : vector<17x32xf32>
    %100 = tpu.matmul %24, %99, %cst_66 {dimension_numbers = #tpu.dot_dimension_numbers<[1], [0], [0], [1], [0, 0, 1, 1], [], []>} : vector<17x32xbf16>, vector<32x32xbf16>, vector<17x32xf32> -> vector<17x32xf32>
    %c0_67 = arith.constant 0 : index
    %c6_68 = arith.constant 6 : index
    %c0_69 = arith.constant 0 : index
    %c0_70 = arith.constant 0 : index
    %101 = vector.load %arg7[%c0_67, %c6_68, %c0_69, %c0_70] : memref<1x52x17x32xf32, #tpu.memory_space<vmem>>, vector<1x1x17x32xf32>
    %102 = vector.shape_cast %101 : vector<1x1x17x32xf32> to vector<17x32xf32>
    %103 = vector.shape_cast %100 : vector<17x32xf32> to vector<1x1x17x32xf32>
    tpu.vector_store %arg7[%c0_67, %c6_68, %c0_69, %c0_70], %103 {strides = array<i32>} : memref<1x52x17x32xf32, #tpu.memory_space<vmem>>, vector<1x1x17x32xf32>,
    %c7 = arith.constant 7 : index
    %c0_71 = arith.constant 0 : index
    %c0_72 = arith.constant 0 : index
    %104 = vector.load %arg5[%c7, %c0_71, %c0_72] : memref<52x32x32xf32, #tpu.memory_space<vmem>>, vector<1x32x32xf32>
    %105 = vector.shape_cast %104 : vector<1x32x32xf32> to vector<32x32xf32>
    %106 = arith.truncf %105 : vector<32x32xf32> to vector<32x32xbf16>
    %cst_73 = arith.constant dense<0.000000e+00> : vector<17x32xf32>
    %107 = tpu.matmul %24, %106, %cst_73 {dimension_numbers = #tpu.dot_dimension_numbers<[1], [0], [0], [1], [0, 0, 1, 1], [], []>} : vector<17x32xbf16>, vector<32x32xbf16>, vector<17x32xf32> -> vector<17x32xf32>
    %c0_74 = arith.constant 0 : index
    %c7_75 = arith.constant 7 : index
    %c0_76 = arith.constant 0 : index
    %c0_77 = arith.constant 0 : index
    %108 = vector.load %arg7[%c0_74, %c7_75, %c0_76, %c0_77] : memref<1x52x17x32xf32, #tpu.memory_space<vmem>>, vector<1x1x17x32xf32>
    %109 = vector.shape_cast %108 : vector<1x1x17x32xf32> to vector<17x32xf32>
    %110 = vector.shape_cast %107 : vector<17x32xf32> to vector<1x1x17x32xf32>
    tpu.vector_store %arg7[%c0_74, %c7_75, %c0_76, %c0_77], %110 {strides = array<i32>} : memref<1x52x17x32xf32, #tpu.memory_space<vmem>>, vector<1x1x17x32xf32>,
    %c8 = arith.constant 8 : index
    %c0_78 = arith.constant 0 : index
    %c0_79 = arith.constant 0 : index
    %111 = vector.load %arg5[%c8, %c0_78, %c0_79] : memref<52x32x32xf32, #tpu.memory_space<vmem>>, vector<1x32x32xf32>
    %112 = vector.shape_cast %111 : vector<1x32x32xf32> to vector<32x32xf32>
    %113 = arith.truncf %112 : vector<32x32xf32> to vector<32x32xbf16>
    %cst_80 = arith.constant dense<0.000000e+00> : vector<17x32xf32>
    %114 = tpu.matmul %24, %113, %cst_80 {dimension_numbers = #tpu.dot_dimension_numbers<[1], [0], [0], [1], [0, 0, 1, 1], [], []>} : vector<17x32xbf16>, vector<32x32xbf16>, vector<17x32xf32> -> vector<17x32xf32>
    %c0_81 = arith.constant 0 : index
    %c8_82 = arith.constant 8 : index
    %c0_83 = arith.constant 0 : index
    %c0_84 = arith.constant 0 : index
    %115 = vector.load %arg7[%c0_81, %c8_82, %c0_83, %c0_84] : memref<1x52x17x32xf32, #tpu.memory_space<vmem>>, vector<1x1x17x32xf32>
    %116 = vector.shape_cast %115 : vector<1x1x17x32xf32> to vector<17x32xf32>
    %117 = vector.shape_cast %114 : vector<17x32xf32> to vector<1x1x17x32xf32>
    tpu.vector_store %arg7[%c0_81, %c8_82, %c0_83, %c0_84], %117 {strides = array<i32>} : memref<1x52x17x32xf32, #tpu.memory_space<vmem>>, vector<1x1x17x32xf32>,
    %c9 = arith.constant 9 : index
    %c0_85 = arith.constant 0 : index
    %c0_86 = arith.constant 0 : index
    %118 = vector.load %arg5[%c9, %c0_85, %c0_86] : memref<52x32x32xf32, #tpu.memory_space<vmem>>, vector<1x32x32xf32>
    %119 = vector.shape_cast %118 : vector<1x32x32xf32> to vector<32x32xf32>
    %120 = arith.truncf %119 : vector<32x32xf32> to vector<32x32xbf16>
    %cst_87 = arith.constant dense<0.000000e+00> : vector<17x32xf32>
    %121 = tpu.matmul %24, %120, %cst_87 {dimension_numbers = #tpu.dot_dimension_numbers<[1], [0], [0], [1], [0, 0, 1, 1], [], []>} : vector<17x32xbf16>, vector<32x32xbf16>, vector<17x32xf32> -> vector<17x32xf32>
    %c0_88 = arith.constant 0 : index
    %c9_89 = arith.constant 9 : index
    %c0_90 = arith.constant 0 : index
    %c0_91 = arith.constant 0 : index
    %122 = vector.load %arg7[%c0_88, %c9_89, %c0_90, %c0_91] : memref<1x52x17x32xf32, #tpu.memory_space<vmem>>, vector<1x1x17x32xf32>
    %123 = vector.shape_cast %122 : vector<1x1x17x32xf32> to vector<17x32xf32>
    %124 = vector.shape_cast %121 : vector<17x32xf32> to vector<1x1x17x32xf32>
    tpu.vector_store %arg7[%c0_88, %c9_89, %c0_90, %c0_91], %124 {strides = array<i32>} : memref<1x52x17x32xf32, #tpu.memory_space<vmem>>, vector<1x1x17x32xf32>,
    %c10 = arith.constant 10 : index
    %c0_92 = arith.constant 0 : index
    %c0_93 = arith.constant 0 : index
    %125 = vector.load %arg5[%c10, %c0_92, %c0_93] : memref<52x32x32xf32, #tpu.memory_space<vmem>>, vector<1x32x32xf32>
    %126 = vector.shape_cast %125 : vector<1x32x32xf32> to vector<32x32xf32>
    %127 = arith.truncf %126 : vector<32x32xf32> to vector<32x32xbf16>
    %cst_94 = arith.constant dense<0.000000e+00> : vector<17x32xf32>
    %128 = tpu.matmul %24, %127, %cst_94 {dimension_numbers = #tpu.dot_dimension_numbers<[1], [0], [0], [1], [0, 0, 1, 1], [], []>} : vector<17x32xbf16>, vector<32x32xbf16>, vector<17x32xf32> -> vector<17x32xf32>
    %c0_95 = arith.constant 0 : index
    %c10_96 = arith.constant 10 : index
    %c0_97 = arith.constant 0 : index
    %c0_98 = arith.constant 0 : index
    %129 = vector.load %arg7[%c0_95, %c10_96, %c0_97, %c0_98] : memref<1x52x17x32xf32, #tpu.memory_space<vmem>>, vector<1x1x17x32xf32>
    %130 = vector.shape_cast %129 : vector<1x1x17x32xf32> to vector<17x32xf32>
    %131 = vector.shape_cast %128 : vector<17x32xf32> to vector<1x1x17x32xf32>
    tpu.vector_store %arg7[%c0_95, %c10_96, %c0_97, %c0_98], %131 {strides = array<i32>} : memref<1x52x17x32xf32, #tpu.memory_space<vmem>>, vector<1x1x17x32xf32>,
    %c11 = arith.constant 11 : index
    %c0_99 = arith.constant 0 : index
    %c0_100 = arith.constant 0 : index
    %132 = vector.load %arg5[%c11, %c0_99, %c0_100] : memref<52x32x32xf32, #tpu.memory_space<vmem>>, vector<1x32x32xf32>
    %133 = vector.shape_cast %132 : vector<1x32x32xf32> to vector<32x32xf32>
    %134 = arith.truncf %133 : vector<32x32xf32> to vector<32x32xbf16>
    %cst_101 = arith.constant dense<0.000000e+00> : vector<17x32xf32>
    %135 = tpu.matmul %24, %134, %cst_101 {dimension_numbers = #tpu.dot_dimension_numbers<[1], [0], [0], [1], [0, 0, 1, 1], [], []>} : vector<17x32xbf16>, vector<32x32xbf16>, vector<17x32xf32> -> vector<17x32xf32>
    %c0_102 = arith.constant 0 : index
    %c11_103 = arith.constant 11 : index
    %c0_104 = arith.constant 0 : index
    %c0_105 = arith.constant 0 : index
    %136 = vector.load %arg7[%c0_102, %c11_103, %c0_104, %c0_105] : memref<1x52x17x32xf32, #tpu.memory_space<vmem>>, vector<1x1x17x32xf32>
    %137 = vector.shape_cast %136 : vector<1x1x17x32xf32> to vector<17x32xf32>
    %138 = vector.shape_cast %135 : vector<17x32xf32> to vector<1x1x17x32xf32>
    tpu.vector_store %arg7[%c0_102, %c11_103, %c0_104, %c0_105], %138 {strides = array<i32>} : memref<1x52x17x32xf32, #tpu.memory_space<vmem>>, vector<1x1x17x32xf32>,
    %c12 = arith.constant 12 : index
    %c0_106 = arith.constant 0 : index
    %c0_107 = arith.constant 0 : index
    %139 = vector.load %arg5[%c12, %c0_106, %c0_107] : memref<52x32x32xf32, #tpu.memory_space<vmem>>, vector<1x32x32xf32>
    %140 = vector.shape_cast %139 : vector<1x32x32xf32> to vector<32x32xf32>
    %141 = arith.truncf %140 : vector<32x32xf32> to vector<32x32xbf16>
    %cst_108 = arith.constant dense<0.000000e+00> : vector<17x32xf32>
    %142 = tpu.matmul %24, %141, %cst_108 {dimension_numbers = #tpu.dot_dimension_numbers<[1], [0], [0], [1], [0, 0, 1, 1], [], []>} : vector<17x32xbf16>, vector<32x32xbf16>, vector<17x32xf32> -> vector<17x32xf32>
    %c0_109 = arith.constant 0 : index
    %c12_110 = arith.constant 12 : index
    %c0_111 = arith.constant 0 : index
    %c0_112 = arith.constant 0 : index
    %143 = vector.load %arg7[%c0_109, %c12_110, %c0_111, %c0_112] : memref<1x52x17x32xf32, #tpu.memory_space<vmem>>, vector<1x1x17x32xf32>
    %144 = vector.shape_cast %143 : vector<1x1x17x32xf32> to vector<17x32xf32>
    %145 = vector.shape_cast %142 : vector<17x32xf32> to vector<1x1x17x32xf32>
    tpu.vector_store %arg7[%c0_109, %c12_110, %c0_111, %c0_112], %145 {strides = array<i32>} : memref<1x52x17x32xf32, #tpu.memory_space<vmem>>, vector<1x1x17x32xf32>,
    %c13 = arith.constant 13 : index
    %c0_113 = arith.constant 0 : index
    %c0_114 = arith.constant 0 : index
    %146 = vector.load %arg5[%c13, %c0_113, %c0_114] : memref<52x32x32xf32, #tpu.memory_space<vmem>>, vector<1x32x32xf32>
    %147 = vector.shape_cast %146 : vector<1x32x32xf32> to vector<32x32xf32>
    %148 = arith.truncf %147 : vector<32x32xf32> to vector<32x32xbf16>
    %cst_115 = arith.constant dense<0.000000e+00> : vector<17x32xf32>
    %149 = tpu.matmul %24, %148, %cst_115 {dimension_numbers = #tpu.dot_dimension_numbers<[1], [0], [0], [1], [0, 0, 1, 1], [], []>} : vector<17x32xbf16>, vector<32x32xbf16>, vector<17x32xf32> -> vector<17x32xf32>
    %c0_116 = arith.constant 0 : index
    %c13_117 = arith.constant 13 : index
    %c0_118 = arith.constant 0 : index
    %c0_119 = arith.constant 0 : index
    %150 = vector.load %arg7[%c0_116, %c13_117, %c0_118, %c0_119] : memref<1x52x17x32xf32, #tpu.memory_space<vmem>>, vector<1x1x17x32xf32>
    %151 = vector.shape_cast %150 : vector<1x1x17x32xf32> to vector<17x32xf32>
    %152 = vector.shape_cast %149 : vector<17x32xf32> to vector<1x1x17x32xf32>
    tpu.vector_store %arg7[%c0_116, %c13_117, %c0_118, %c0_119], %152 {strides = array<i32>} : memref<1x52x17x32xf32, #tpu.memory_space<vmem>>, vector<1x1x17x32xf32>,
    %c14 = arith.constant 14 : index
    %c0_120 = arith.constant 0 : index
    %c0_121 = arith.constant 0 : index
    %153 = vector.load %arg5[%c14, %c0_120, %c0_121] : memref<52x32x32xf32, #tpu.memory_space<vmem>>, vector<1x32x32xf32>
    %154 = vector.shape_cast %153 : vector<1x32x32xf32> to vector<32x32xf32>
    %155 = arith.truncf %154 : vector<32x32xf32> to vector<32x32xbf16>
    %cst_122 = arith.constant dense<0.000000e+00> : vector<17x32xf32>
    %156 = tpu.matmul %24, %155, %cst_122 {dimension_numbers = #tpu.dot_dimension_numbers<[1], [0], [0], [1], [0, 0, 1, 1], [], []>} : vector<17x32xbf16>, vector<32x32xbf16>, vector<17x32xf32> -> vector<17x32xf32>
    %c0_123 = arith.constant 0 : index
    %c14_124 = arith.constant 14 : index
    %c0_125 = arith.constant 0 : index
    %c0_126 = arith.constant 0 : index
    %157 = vector.load %arg7[%c0_123, %c14_124, %c0_125, %c0_126] : memref<1x52x17x32xf32, #tpu.memory_space<vmem>>, vector<1x1x17x32xf32>
    %158 = vector.shape_cast %157 : vector<1x1x17x32xf32> to vector<17x32xf32>
    %159 = vector.shape_cast %156 : vector<17x32xf32> to vector<1x1x17x32xf32>
    tpu.vector_store %arg7[%c0_123, %c14_124, %c0_125, %c0_126], %159 {strides = array<i32>} : memref<1x52x17x32xf32, #tpu.memory_space<vmem>>, vector<1x1x17x32xf32>,
    %c15 = arith.constant 15 : index
    %c0_127 = arith.constant 0 : index
    %c0_128 = arith.constant 0 : index
    %160 = vector.load %arg5[%c15, %c0_127, %c0_128] : memref<52x32x32xf32, #tpu.memory_space<vmem>>, vector<1x32x32xf32>
    %161 = vector.shape_cast %160 : vector<1x32x32xf32> to vector<32x32xf32>
    %162 = arith.truncf %161 : vector<32x32xf32> to vector<32x32xbf16>
    %cst_129 = arith.constant dense<0.000000e+00> : vector<17x32xf32>
    %163 = tpu.matmul %24, %162, %cst_129 {dimension_numbers = #tpu.dot_dimension_numbers<[1], [0], [0], [1], [0, 0, 1, 1], [], []>} : vector<17x32xbf16>, vector<32x32xbf16>, vector<17x32xf32> -> vector<17x32xf32>
    %c0_130 = arith.constant 0 : index
    %c15_131 = arith.constant 15 : index
    %c0_132 = arith.constant 0 : index
    %c0_133 = arith.constant 0 : index
    %164 = vector.load %arg7[%c0_130, %c15_131, %c0_132, %c0_133] : memref<1x52x17x32xf32, #tpu.memory_space<vmem>>, vector<1x1x17x32xf32>
    %165 = vector.shape_cast %164 : vector<1x1x17x32xf32> to vector<17x32xf32>
    %166 = vector.shape_cast %163 : vector<17x32xf32> to vector<1x1x17x32xf32>
    tpu.vector_store %arg7[%c0_130, %c15_131, %c0_132, %c0_133], %166 {strides = array<i32>} : memref<1x52x17x32xf32, #tpu.memory_space<vmem>>, vector<1x1x17x32xf32>,
    %c16 = arith.constant 16 : index
    %c0_134 = arith.constant 0 : index
    %c0_135 = arith.constant 0 : index
    %167 = vector.load %arg5[%c16, %c0_134, %c0_135] : memref<52x32x32xf32, #tpu.memory_space<vmem>>, vector<1x32x32xf32>
    %168 = vector.shape_cast %167 : vector<1x32x32xf32> to vector<32x32xf32>
    %169 = arith.truncf %168 : vector<32x32xf32> to vector<32x32xbf16>
    %cst_136 = arith.constant dense<0.000000e+00> : vector<17x32xf32>
    %170 = tpu.matmul %24, %169, %cst_136 {dimension_numbers = #tpu.dot_dimension_numbers<[1], [0], [0], [1], [0, 0, 1, 1], [], []>} : vector<17x32xbf16>, vector<32x32xbf16>, vector<17x32xf32> -> vector<17x32xf32>
    %c0_137 = arith.constant 0 : index
    %c16_138 = arith.constant 16 : index
    %c0_139 = arith.constant 0 : index
    %c0_140 = arith.constant 0 : index
    %171 = vector.load %arg7[%c0_137, %c16_138, %c0_139, %c0_140] : memref<1x52x17x32xf32, #tpu.memory_space<vmem>>, vector<1x1x17x32xf32>
    %172 = vector.shape_cast %171 : vector<1x1x17x32xf32> to vector<17x32xf32>
    %173 = vector.shape_cast %170 : vector<17x32xf32> to vector<1x1x17x32xf32>
    tpu.vector_store %arg7[%c0_137, %c16_138, %c0_139, %c0_140], %173 {strides = array<i32>} : memref<1x52x17x32xf32, #tpu.memory_space<vmem>>, vector<1x1x17x32xf32>,
    %c17 = arith.constant 17 : index
    %c0_141 = arith.constant 0 : index
    %c0_142 = arith.constant 0 : index
    %174 = vector.load %arg5[%c17, %c0_141, %c0_142] : memref<52x32x32xf32, #tpu.memory_space<vmem>>, vector<1x32x32xf32>
    %175 = vector.shape_cast %174 : vector<1x32x32xf32> to vector<32x32xf32>
    %176 = arith.truncf %175 : vector<32x32xf32> to vector<32x32xbf16>
    %cst_143 = arith.constant dense<0.000000e+00> : vector<17x32xf32>
    %177 = tpu.matmul %24, %176, %cst_143 {dimension_numbers = #tpu.dot_dimension_numbers<[1], [0], [0], [1], [0, 0, 1, 1], [], []>} : vector<17x32xbf16>, vector<32x32xbf16>, vector<17x32xf32> -> vector<17x32xf32>
    %c0_144 = arith.constant 0 : index
    %c17_145 = arith.constant 17 : index
    %c0_146 = arith.constant 0 : index
    %c0_147 = arith.constant 0 : index
    %178 = vector.load %arg7[%c0_144, %c17_145, %c0_146, %c0_147] : memref<1x52x17x32xf32, #tpu.memory_space<vmem>>, vector<1x1x17x32xf32>
    %179 = vector.shape_cast %178 : vector<1x1x17x32xf32> to vector<17x32xf32>
    %180 = vector.shape_cast %177 : vector<17x32xf32> to vector<1x1x17x32xf32>
    tpu.vector_store %arg7[%c0_144, %c17_145, %c0_146, %c0_147], %180 {strides = array<i32>} : memref<1x52x17x32xf32, #tpu.memory_space<vmem>>, vector<1x1x17x32xf32>,
    %c18 = arith.constant 18 : index
    %c0_148 = arith.constant 0 : index
    %c0_149 = arith.constant 0 : index
    %181 = vector.load %arg5[%c18, %c0_148, %c0_149] : memref<52x32x32xf32, #tpu.memory_space<vmem>>, vector<1x32x32xf32>
    %182 = vector.shape_cast %181 : vector<1x32x32xf32> to vector<32x32xf32>
    %183 = arith.truncf %182 : vector<32x32xf32> to vector<32x32xbf16>
    %cst_150 = arith.constant dense<0.000000e+00> : vector<17x32xf32>
    %184 = tpu.matmul %24, %183, %cst_150 {dimension_numbers = #tpu.dot_dimension_numbers<[1], [0], [0], [1], [0, 0, 1, 1], [], []>} : vector<17x32xbf16>, vector<32x32xbf16>, vector<17x32xf32> -> vector<17x32xf32>
    %c0_151 = arith.constant 0 : index
    %c18_152 = arith.constant 18 : index
    %c0_153 = arith.constant 0 : index
    %c0_154 = arith.constant 0 : index
    %185 = vector.load %arg7[%c0_151, %c18_152, %c0_153, %c0_154] : memref<1x52x17x32xf32, #tpu.memory_space<vmem>>, vector<1x1x17x32xf32>
    %186 = vector.shape_cast %185 : vector<1x1x17x32xf32> to vector<17x32xf32>
    %187 = vector.shape_cast %184 : vector<17x32xf32> to vector<1x1x17x32xf32>
    tpu.vector_store %arg7[%c0_151, %c18_152, %c0_153, %c0_154], %187 {strides = array<i32>} : memref<1x52x17x32xf32, #tpu.memory_space<vmem>>, vector<1x1x17x32xf32>,
    %c19 = arith.constant 19 : index
    %c0_155 = arith.constant 0 : index
    %c0_156 = arith.constant 0 : index
    %188 = vector.load %arg5[%c19, %c0_155, %c0_156] : memref<52x32x32xf32, #tpu.memory_space<vmem>>, vector<1x32x32xf32>
    %189 = vector.shape_cast %188 : vector<1x32x32xf32> to vector<32x32xf32>
    %190 = arith.truncf %189 : vector<32x32xf32> to vector<32x32xbf16>
    %cst_157 = arith.constant dense<0.000000e+00> : vector<17x32xf32>
    %191 = tpu.matmul %24, %190, %cst_157 {dimension_numbers = #tpu.dot_dimension_numbers<[1], [0], [0], [1], [0, 0, 1, 1], [], []>} : vector<17x32xbf16>, vector<32x32xbf16>, vector<17x32xf32> -> vector<17x32xf32>
    %c0_158 = arith.constant 0 : index
    %c19_159 = arith.constant 19 : index
    %c0_160 = arith.constant 0 : index
    %c0_161 = arith.constant 0 : index
    %192 = vector.load %arg7[%c0_158, %c19_159, %c0_160, %c0_161] : memref<1x52x17x32xf32, #tpu.memory_space<vmem>>, vector<1x1x17x32xf32>
    %193 = vector.shape_cast %192 : vector<1x1x17x32xf32> to vector<17x32xf32>
    %194 = vector.shape_cast %191 : vector<17x32xf32> to vector<1x1x17x32xf32>
    tpu.vector_store %arg7[%c0_158, %c19_159, %c0_160, %c0_161], %194 {strides = array<i32>} : memref<1x52x17x32xf32, #tpu.memory_space<vmem>>, vector<1x1x17x32xf32>,
    %c20 = arith.constant 20 : index
    %c0_162 = arith.constant 0 : index
    %c0_163 = arith.constant 0 : index
    %195 = vector.load %arg5[%c20, %c0_162, %c0_163] : memref<52x32x32xf32, #tpu.memory_space<vmem>>, vector<1x32x32xf32>
    %196 = vector.shape_cast %195 : vector<1x32x32xf32> to vector<32x32xf32>
    %197 = arith.truncf %196 : vector<32x32xf32> to vector<32x32xbf16>
    %cst_164 = arith.constant dense<0.000000e+00> : vector<17x32xf32>
    %198 = tpu.matmul %24, %197, %cst_164 {dimension_numbers = #tpu.dot_dimension_numbers<[1], [0], [0], [1], [0, 0, 1, 1], [], []>} : vector<17x32xbf16>, vector<32x32xbf16>, vector<17x32xf32> -> vector<17x32xf32>
    %c0_165 = arith.constant 0 : index
    %c20_166 = arith.constant 20 : index
    %c0_167 = arith.constant 0 : index
    %c0_168 = arith.constant 0 : index
    %199 = vector.load %arg7[%c0_165, %c20_166, %c0_167, %c0_168] : memref<1x52x17x32xf32, #tpu.memory_space<vmem>>, vector<1x1x17x32xf32>
    %200 = vector.shape_cast %199 : vector<1x1x17x32xf32> to vector<17x32xf32>
    %201 = vector.shape_cast %198 : vector<17x32xf32> to vector<1x1x17x32xf32>
    tpu.vector_store %arg7[%c0_165, %c20_166, %c0_167, %c0_168], %201 {strides = array<i32>} : memref<1x52x17x32xf32, #tpu.memory_space<vmem>>, vector<1x1x17x32xf32>,
    %c21 = arith.constant 21 : index
    %c0_169 = arith.constant 0 : index
    %c0_170 = arith.constant 0 : index
    %202 = vector.load %arg5[%c21, %c0_169, %c0_170] : memref<52x32x32xf32, #tpu.memory_space<vmem>>, vector<1x32x32xf32>
    %203 = vector.shape_cast %202 : vector<1x32x32xf32> to vector<32x32xf32>
    %204 = arith.truncf %203 : vector<32x32xf32> to vector<32x32xbf16>
    %cst_171 = arith.constant dense<0.000000e+00> : vector<17x32xf32>
    %205 = tpu.matmul %24, %204, %cst_171 {dimension_numbers = #tpu.dot_dimension_numbers<[1], [0], [0], [1], [0, 0, 1, 1], [], []>} : vector<17x32xbf16>, vector<32x32xbf16>, vector<17x32xf32> -> vector<17x32xf32>
    %c0_172 = arith.constant 0 : index
    %c21_173 = arith.constant 21 : index
    %c0_174 = arith.constant 0 : index
    %c0_175 = arith.constant 0 : index
    %206 = vector.load %arg7[%c0_172, %c21_173, %c0_174, %c0_175] : memref<1x52x17x32xf32, #tpu.memory_space<vmem>>, vector<1x1x17x32xf32>
    %207 = vector.shape_cast %206 : vector<1x1x17x32xf32> to vector<17x32xf32>
    %208 = vector.shape_cast %205 : vector<17x32xf32> to vector<1x1x17x32xf32>
    tpu.vector_store %arg7[%c0_172, %c21_173, %c0_174, %c0_175], %208 {strides = array<i32>} : memref<1x52x17x32xf32, #tpu.memory_space<vmem>>, vector<1x1x17x32xf32>,
    %c22 = arith.constant 22 : index
    %c0_176 = arith.constant 0 : index
    %c0_177 = arith.constant 0 : index
    %209 = vector.load %arg5[%c22, %c0_176, %c0_177] : memref<52x32x32xf32, #tpu.memory_space<vmem>>, vector<1x32x32xf32>
    %210 = vector.shape_cast %209 : vector<1x32x32xf32> to vector<32x32xf32>
    %211 = arith.truncf %210 : vector<32x32xf32> to vector<32x32xbf16>
    %cst_178 = arith.constant dense<0.000000e+00> : vector<17x32xf32>
    %212 = tpu.matmul %24, %211, %cst_178 {dimension_numbers = #tpu.dot_dimension_numbers<[1], [0], [0], [1], [0, 0, 1, 1], [], []>} : vector<17x32xbf16>, vector<32x32xbf16>, vector<17x32xf32> -> vector<17x32xf32>
    %c0_179 = arith.constant 0 : index
    %c22_180 = arith.constant 22 : index
    %c0_181 = arith.constant 0 : index
    %c0_182 = arith.constant 0 : index
    %213 = vector.load %arg7[%c0_179, %c22_180, %c0_181, %c0_182] : memref<1x52x17x32xf32, #tpu.memory_space<vmem>>, vector<1x1x17x32xf32>
    %214 = vector.shape_cast %213 : vector<1x1x17x32xf32> to vector<17x32xf32>
    %215 = vector.shape_cast %212 : vector<17x32xf32> to vector<1x1x17x32xf32>
    tpu.vector_store %arg7[%c0_179, %c22_180, %c0_181, %c0_182], %215 {strides = array<i32>} : memref<1x52x17x32xf32, #tpu.memory_space<vmem>>, vector<1x1x17x32xf32>,
    %c23 = arith.constant 23 : index
    %c0_183 = arith.constant 0 : index
    %c0_184 = arith.constant 0 : index
    %216 = vector.load %arg5[%c23, %c0_183, %c0_184] : memref<52x32x32xf32, #tpu.memory_space<vmem>>, vector<1x32x32xf32>
    %217 = vector.shape_cast %216 : vector<1x32x32xf32> to vector<32x32xf32>
    %218 = arith.truncf %217 : vector<32x32xf32> to vector<32x32xbf16>
    %cst_185 = arith.constant dense<0.000000e+00> : vector<17x32xf32>
    %219 = tpu.matmul %24, %218, %cst_185 {dimension_numbers = #tpu.dot_dimension_numbers<[1], [0], [0], [1], [0, 0, 1, 1], [], []>} : vector<17x32xbf16>, vector<32x32xbf16>, vector<17x32xf32> -> vector<17x32xf32>
    %c0_186 = arith.constant 0 : index
    %c23_187 = arith.constant 23 : index
    %c0_188 = arith.constant 0 : index
    %c0_189 = arith.constant 0 : index
    %220 = vector.load %arg7[%c0_186, %c23_187, %c0_188, %c0_189] : memref<1x52x17x32xf32, #tpu.memory_space<vmem>>, vector<1x1x17x32xf32>
    %221 = vector.shape_cast %220 : vector<1x1x17x32xf32> to vector<17x32xf32>
    %222 = vector.shape_cast %219 : vector<17x32xf32> to vector<1x1x17x32xf32>
    tpu.vector_store %arg7[%c0_186, %c23_187, %c0_188, %c0_189], %222 {strides = array<i32>} : memref<1x52x17x32xf32, #tpu.memory_space<vmem>>, vector<1x1x17x32xf32>,
    %c24 = arith.constant 24 : index
    %c0_190 = arith.constant 0 : index
    %c0_191 = arith.constant 0 : index
    %223 = vector.load %arg5[%c24, %c0_190, %c0_191] : memref<52x32x32xf32, #tpu.memory_space<vmem>>, vector<1x32x32xf32>
    %224 = vector.shape_cast %223 : vector<1x32x32xf32> to vector<32x32xf32>
    %225 = arith.truncf %224 : vector<32x32xf32> to vector<32x32xbf16>
    %cst_192 = arith.constant dense<0.000000e+00> : vector<17x32xf32>
    %226 = tpu.matmul %24, %225, %cst_192 {dimension_numbers = #tpu.dot_dimension_numbers<[1], [0], [0], [1], [0, 0, 1, 1], [], []>} : vector<17x32xbf16>, vector<32x32xbf16>, vector<17x32xf32> -> vector<17x32xf32>
    %c0_193 = arith.constant 0 : index
    %c24_194 = arith.constant 24 : index
    %c0_195 = arith.constant 0 : index
    %c0_196 = arith.constant 0 : index
    %227 = vector.load %arg7[%c0_193, %c24_194, %c0_195, %c0_196] : memref<1x52x17x32xf32, #tpu.memory_space<vmem>>, vector<1x1x17x32xf32>
    %228 = vector.shape_cast %227 : vector<1x1x17x32xf32> to vector<17x32xf32>
    %229 = vector.shape_cast %226 : vector<17x32xf32> to vector<1x1x17x32xf32>
    tpu.vector_store %arg7[%c0_193, %c24_194, %c0_195, %c0_196], %229 {strides = array<i32>} : memref<1x52x17x32xf32, #tpu.memory_space<vmem>>, vector<1x1x17x32xf32>,
    %c25 = arith.constant 25 : index
    %c0_197 = arith.constant 0 : index
    %c0_198 = arith.constant 0 : index
    %230 = vector.load %arg5[%c25, %c0_197, %c0_198] : memref<52x32x32xf32, #tpu.memory_space<vmem>>, vector<1x32x32xf32>
    %231 = vector.shape_cast %230 : vector<1x32x32xf32> to vector<32x32xf32>
    %232 = arith.truncf %231 : vector<32x32xf32> to vector<32x32xbf16>
    %cst_199 = arith.constant dense<0.000000e+00> : vector<17x32xf32>
    %233 = tpu.matmul %24, %232, %cst_199 {dimension_numbers = #tpu.dot_dimension_numbers<[1], [0], [0], [1], [0, 0, 1, 1], [], []>} : vector<17x32xbf16>, vector<32x32xbf16>, vector<17x32xf32> -> vector<17x32xf32>
    %c0_200 = arith.constant 0 : index
    %c25_201 = arith.constant 25 : index
    %c0_202 = arith.constant 0 : index
    %c0_203 = arith.constant 0 : index
    %234 = vector.load %arg7[%c0_200, %c25_201, %c0_202, %c0_203] : memref<1x52x17x32xf32, #tpu.memory_space<vmem>>, vector<1x1x17x32xf32>
    %235 = vector.shape_cast %234 : vector<1x1x17x32xf32> to vector<17x32xf32>
    %236 = vector.shape_cast %233 : vector<17x32xf32> to vector<1x1x17x32xf32>
    tpu.vector_store %arg7[%c0_200, %c25_201, %c0_202, %c0_203], %236 {strides = array<i32>} : memref<1x52x17x32xf32, #tpu.memory_space<vmem>>, vector<1x1x17x32xf32>,
    %c26 = arith.constant 26 : index
    %c0_204 = arith.constant 0 : index
    %c0_205 = arith.constant 0 : index
    %237 = vector.load %arg5[%c26, %c0_204, %c0_205] : memref<52x32x32xf32, #tpu.memory_space<vmem>>, vector<1x32x32xf32>
    %238 = vector.shape_cast %237 : vector<1x32x32xf32> to vector<32x32xf32>
    %239 = arith.truncf %238 : vector<32x32xf32> to vector<32x32xbf16>
    %cst_206 = arith.constant dense<0.000000e+00> : vector<17x32xf32>
    %240 = tpu.matmul %24, %239, %cst_206 {dimension_numbers = #tpu.dot_dimension_numbers<[1], [0], [0], [1], [0, 0, 1, 1], [], []>} : vector<17x32xbf16>, vector<32x32xbf16>, vector<17x32xf32> -> vector<17x32xf32>
    %c0_207 = arith.constant 0 : index
    %c26_208 = arith.constant 26 : index
    %c0_209 = arith.constant 0 : index
    %c0_210 = arith.constant 0 : index
    %241 = vector.load %arg7[%c0_207, %c26_208, %c0_209, %c0_210] : memref<1x52x17x32xf32, #tpu.memory_space<vmem>>, vector<1x1x17x32xf32>
    %242 = vector.shape_cast %241 : vector<1x1x17x32xf32> to vector<17x32xf32>
    %243 = vector.shape_cast %240 : vector<17x32xf32> to vector<1x1x17x32xf32>
    tpu.vector_store %arg7[%c0_207, %c26_208, %c0_209, %c0_210], %243 {strides = array<i32>} : memref<1x52x17x32xf32, #tpu.memory_space<vmem>>, vector<1x1x17x32xf32>,
    %c27 = arith.constant 27 : index
    %c0_211 = arith.constant 0 : index
    %c0_212 = arith.constant 0 : index
    %244 = vector.load %arg5[%c27, %c0_211, %c0_212] : memref<52x32x32xf32, #tpu.memory_space<vmem>>, vector<1x32x32xf32>
    %245 = vector.shape_cast %244 : vector<1x32x32xf32> to vector<32x32xf32>
    %246 = arith.truncf %245 : vector<32x32xf32> to vector<32x32xbf16>
    %cst_213 = arith.constant dense<0.000000e+00> : vector<17x32xf32>
    %247 = tpu.matmul %24, %246, %cst_213 {dimension_numbers = #tpu.dot_dimension_numbers<[1], [0], [0], [1], [0, 0, 1, 1], [], []>} : vector<17x32xbf16>, vector<32x32xbf16>, vector<17x32xf32> -> vector<17x32xf32>
    %c0_214 = arith.constant 0 : index
    %c27_215 = arith.constant 27 : index
    %c0_216 = arith.constant 0 : index
    %c0_217 = arith.constant 0 : index
    %248 = vector.load %arg7[%c0_214, %c27_215, %c0_216, %c0_217] : memref<1x52x17x32xf32, #tpu.memory_space<vmem>>, vector<1x1x17x32xf32>
    %249 = vector.shape_cast %248 : vector<1x1x17x32xf32> to vector<17x32xf32>
    %250 = vector.shape_cast %247 : vector<17x32xf32> to vector<1x1x17x32xf32>
    tpu.vector_store %arg7[%c0_214, %c27_215, %c0_216, %c0_217], %250 {strides = array<i32>} : memref<1x52x17x32xf32, #tpu.memory_space<vmem>>, vector<1x1x17x32xf32>,
    %c28 = arith.constant 28 : index
    %c0_218 = arith.constant 0 : index
    %c0_219 = arith.constant 0 : index
    %251 = vector.load %arg5[%c28, %c0_218, %c0_219] : memref<52x32x32xf32, #tpu.memory_space<vmem>>, vector<1x32x32xf32>
    %252 = vector.shape_cast %251 : vector<1x32x32xf32> to vector<32x32xf32>
    %253 = arith.truncf %252 : vector<32x32xf32> to vector<32x32xbf16>
    %cst_220 = arith.constant dense<0.000000e+00> : vector<17x32xf32>
    %254 = tpu.matmul %24, %253, %cst_220 {dimension_numbers = #tpu.dot_dimension_numbers<[1], [0], [0], [1], [0, 0, 1, 1], [], []>} : vector<17x32xbf16>, vector<32x32xbf16>, vector<17x32xf32> -> vector<17x32xf32>
    %c0_221 = arith.constant 0 : index
    %c28_222 = arith.constant 28 : index
    %c0_223 = arith.constant 0 : index
    %c0_224 = arith.constant 0 : index
    %255 = vector.load %arg7[%c0_221, %c28_222, %c0_223, %c0_224] : memref<1x52x17x32xf32, #tpu.memory_space<vmem>>, vector<1x1x17x32xf32>
    %256 = vector.shape_cast %255 : vector<1x1x17x32xf32> to vector<17x32xf32>
    %257 = vector.shape_cast %254 : vector<17x32xf32> to vector<1x1x17x32xf32>
    tpu.vector_store %arg7[%c0_221, %c28_222, %c0_223, %c0_224], %257 {strides = array<i32>} : memref<1x52x17x32xf32, #tpu.memory_space<vmem>>, vector<1x1x17x32xf32>,
    %c29 = arith.constant 29 : index
    %c0_225 = arith.constant 0 : index
    %c0_226 = arith.constant 0 : index
    %258 = vector.load %arg5[%c29, %c0_225, %c0_226] : memref<52x32x32xf32, #tpu.memory_space<vmem>>, vector<1x32x32xf32>
    %259 = vector.shape_cast %258 : vector<1x32x32xf32> to vector<32x32xf32>
    %260 = arith.truncf %259 : vector<32x32xf32> to vector<32x32xbf16>
    %cst_227 = arith.constant dense<0.000000e+00> : vector<17x32xf32>
    %261 = tpu.matmul %24, %260, %cst_227 {dimension_numbers = #tpu.dot_dimension_numbers<[1], [0], [0], [1], [0, 0, 1, 1], [], []>} : vector<17x32xbf16>, vector<32x32xbf16>, vector<17x32xf32> -> vector<17x32xf32>
    %c0_228 = arith.constant 0 : index
    %c29_229 = arith.constant 29 : index
    %c0_230 = arith.constant 0 : index
    %c0_231 = arith.constant 0 : index
    %262 = vector.load %arg7[%c0_228, %c29_229, %c0_230, %c0_231] : memref<1x52x17x32xf32, #tpu.memory_space<vmem>>, vector<1x1x17x32xf32>
    %263 = vector.shape_cast %262 : vector<1x1x17x32xf32> to vector<17x32xf32>
    %264 = vector.shape_cast %261 : vector<17x32xf32> to vector<1x1x17x32xf32>
    tpu.vector_store %arg7[%c0_228, %c29_229, %c0_230, %c0_231], %264 {strides = array<i32>} : memref<1x52x17x32xf32, #tpu.memory_space<vmem>>, vector<1x1x17x32xf32>,
    %c30 = arith.constant 30 : index
    %c0_232 = arith.constant 0 : index
    %c0_233 = arith.constant 0 : index
    %265 = vector.load %arg5[%c30, %c0_232, %c0_233] : memref<52x32x32xf32, #tpu.memory_space<vmem>>, vector<1x32x32xf32>
    %266 = vector.shape_cast %265 : vector<1x32x32xf32> to vector<32x32xf32>
    %267 = arith.truncf %266 : vector<32x32xf32> to vector<32x32xbf16>
    %cst_234 = arith.constant dense<0.000000e+00> : vector<17x32xf32>
    %268 = tpu.matmul %24, %267, %cst_234 {dimension_numbers = #tpu.dot_dimension_numbers<[1], [0], [0], [1], [0, 0, 1, 1], [], []>} : vector<17x32xbf16>, vector<32x32xbf16>, vector<17x32xf32> -> vector<17x32xf32>
    %c0_235 = arith.constant 0 : index
    %c30_236 = arith.constant 30 : index
    %c0_237 = arith.constant 0 : index
    %c0_238 = arith.constant 0 : index
    %269 = vector.load %arg7[%c0_235, %c30_236, %c0_237, %c0_238] : memref<1x52x17x32xf32, #tpu.memory_space<vmem>>, vector<1x1x17x32xf32>
    %270 = vector.shape_cast %269 : vector<1x1x17x32xf32> to vector<17x32xf32>
    %271 = vector.shape_cast %268 : vector<17x32xf32> to vector<1x1x17x32xf32>
    tpu.vector_store %arg7[%c0_235, %c30_236, %c0_237, %c0_238], %271 {strides = array<i32>} : memref<1x52x17x32xf32, #tpu.memory_space<vmem>>, vector<1x1x17x32xf32>,
    %c31 = arith.constant 31 : index
    %c0_239 = arith.constant 0 : index
    %c0_240 = arith.constant 0 : index
    %272 = vector.load %arg5[%c31, %c0_239, %c0_240] : memref<52x32x32xf32, #tpu.memory_space<vmem>>, vector<1x32x32xf32>
    %273 = vector.shape_cast %272 : vector<1x32x32xf32> to vector<32x32xf32>
    %274 = arith.truncf %273 : vector<32x32xf32> to vector<32x32xbf16>
    %cst_241 = arith.constant dense<0.000000e+00> : vector<17x32xf32>
    %275 = tpu.matmul %24, %274, %cst_241 {dimension_numbers = #tpu.dot_dimension_numbers<[1], [0], [0], [1], [0, 0, 1, 1], [], []>} : vector<17x32xbf16>, vector<32x32xbf16>, vector<17x32xf32> -> vector<17x32xf32>
    %c0_242 = arith.constant 0 : index
    %c31_243 = arith.constant 31 : index
    %c0_244 = arith.constant 0 : index
    %c0_245 = arith.constant 0 : index
    %276 = vector.load %arg7[%c0_242, %c31_243, %c0_244, %c0_245] : memref<1x52x17x32xf32, #tpu.memory_space<vmem>>, vector<1x1x17x32xf32>
    %277 = vector.shape_cast %276 : vector<1x1x17x32xf32> to vector<17x32xf32>
    %278 = vector.shape_cast %275 : vector<17x32xf32> to vector<1x1x17x32xf32>
    tpu.vector_store %arg7[%c0_242, %c31_243, %c0_244, %c0_245], %278 {strides = array<i32>} : memref<1x52x17x32xf32, #tpu.memory_space<vmem>>, vector<1x1x17x32xf32>,
    %c32 = arith.constant 32 : index
    %c0_246 = arith.constant 0 : index
    %c0_247 = arith.constant 0 : index
    %279 = vector.load %arg5[%c32, %c0_246, %c0_247] : memref<52x32x32xf32, #tpu.memory_space<vmem>>, vector<1x32x32xf32>
    %280 = vector.shape_cast %279 : vector<1x32x32xf32> to vector<32x32xf32>
    %281 = arith.truncf %280 : vector<32x32xf32> to vector<32x32xbf16>
    %cst_248 = arith.constant dense<0.000000e+00> : vector<17x32xf32>
    %282 = tpu.matmul %24, %281, %cst_248 {dimension_numbers = #tpu.dot_dimension_numbers<[1], [0], [0], [1], [0, 0, 1, 1], [], []>} : vector<17x32xbf16>, vector<32x32xbf16>, vector<17x32xf32> -> vector<17x32xf32>
    %c0_249 = arith.constant 0 : index
    %c32_250 = arith.constant 32 : index
    %c0_251 = arith.constant 0 : index
    %c0_252 = arith.constant 0 : index
    %283 = vector.load %arg7[%c0_249, %c32_250, %c0_251, %c0_252] : memref<1x52x17x32xf32, #tpu.memory_space<vmem>>, vector<1x1x17x32xf32>
    %284 = vector.shape_cast %283 : vector<1x1x17x32xf32> to vector<17x32xf32>
    %285 = vector.shape_cast %282 : vector<17x32xf32> to vector<1x1x17x32xf32>
    tpu.vector_store %arg7[%c0_249, %c32_250, %c0_251, %c0_252], %285 {strides = array<i32>} : memref<1x52x17x32xf32, #tpu.memory_space<vmem>>, vector<1x1x17x32xf32>,
    %c33 = arith.constant 33 : index
    %c0_253 = arith.constant 0 : index
    %c0_254 = arith.constant 0 : index
    %286 = vector.load %arg5[%c33, %c0_253, %c0_254] : memref<52x32x32xf32, #tpu.memory_space<vmem>>, vector<1x32x32xf32>
    %287 = vector.shape_cast %286 : vector<1x32x32xf32> to vector<32x32xf32>
    %288 = arith.truncf %287 : vector<32x32xf32> to vector<32x32xbf16>
    %cst_255 = arith.constant dense<0.000000e+00> : vector<17x32xf32>
    %289 = tpu.matmul %24, %288, %cst_255 {dimension_numbers = #tpu.dot_dimension_numbers<[1], [0], [0], [1], [0, 0, 1, 1], [], []>} : vector<17x32xbf16>, vector<32x32xbf16>, vector<17x32xf32> -> vector<17x32xf32>
    %c0_256 = arith.constant 0 : index
    %c33_257 = arith.constant 33 : index
    %c0_258 = arith.constant 0 : index
    %c0_259 = arith.constant 0 : index
    %290 = vector.load %arg7[%c0_256, %c33_257, %c0_258, %c0_259] : memref<1x52x17x32xf32, #tpu.memory_space<vmem>>, vector<1x1x17x32xf32>
    %291 = vector.shape_cast %290 : vector<1x1x17x32xf32> to vector<17x32xf32>
    %292 = vector.shape_cast %289 : vector<17x32xf32> to vector<1x1x17x32xf32>
    tpu.vector_store %arg7[%c0_256, %c33_257, %c0_258, %c0_259], %292 {strides = array<i32>} : memref<1x52x17x32xf32, #tpu.memory_space<vmem>>, vector<1x1x17x32xf32>,
    %c34 = arith.constant 34 : index
    %c0_260 = arith.constant 0 : index
    %c0_261 = arith.constant 0 : index
    %293 = vector.load %arg5[%c34, %c0_260, %c0_261] : memref<52x32x32xf32, #tpu.memory_space<vmem>>, vector<1x32x32xf32>
    %294 = vector.shape_cast %293 : vector<1x32x32xf32> to vector<32x32xf32>
    %295 = arith.truncf %294 : vector<32x32xf32> to vector<32x32xbf16>
    %cst_262 = arith.constant dense<0.000000e+00> : vector<17x32xf32>
    %296 = tpu.matmul %24, %295, %cst_262 {dimension_numbers = #tpu.dot_dimension_numbers<[1], [0], [0], [1], [0, 0, 1, 1], [], []>} : vector<17x32xbf16>, vector<32x32xbf16>, vector<17x32xf32> -> vector<17x32xf32>
    %c0_263 = arith.constant 0 : index
    %c34_264 = arith.constant 34 : index
    %c0_265 = arith.constant 0 : index
    %c0_266 = arith.constant 0 : index
    %297 = vector.load %arg7[%c0_263, %c34_264, %c0_265, %c0_266] : memref<1x52x17x32xf32, #tpu.memory_space<vmem>>, vector<1x1x17x32xf32>
    %298 = vector.shape_cast %297 : vector<1x1x17x32xf32> to vector<17x32xf32>
    %299 = vector.shape_cast %296 : vector<17x32xf32> to vector<1x1x17x32xf32>
    tpu.vector_store %arg7[%c0_263, %c34_264, %c0_265, %c0_266], %299 {strides = array<i32>} : memref<1x52x17x32xf32, #tpu.memory_space<vmem>>, vector<1x1x17x32xf32>,
    %c35 = arith.constant 35 : index
    %c0_267 = arith.constant 0 : index
    %c0_268 = arith.constant 0 : index
    %300 = vector.load %arg5[%c35, %c0_267, %c0_268] : memref<52x32x32xf32, #tpu.memory_space<vmem>>, vector<1x32x32xf32>
    %301 = vector.shape_cast %300 : vector<1x32x32xf32> to vector<32x32xf32>
    %302 = arith.truncf %301 : vector<32x32xf32> to vector<32x32xbf16>
    %cst_269 = arith.constant dense<0.000000e+00> : vector<17x32xf32>
    %303 = tpu.matmul %24, %302, %cst_269 {dimension_numbers = #tpu.dot_dimension_numbers<[1], [0], [0], [1], [0, 0, 1, 1], [], []>} : vector<17x32xbf16>, vector<32x32xbf16>, vector<17x32xf32> -> vector<17x32xf32>
    %c0_270 = arith.constant 0 : index
    %c35_271 = arith.constant 35 : index
    %c0_272 = arith.constant 0 : index
    %c0_273 = arith.constant 0 : index
    %304 = vector.load %arg7[%c0_270, %c35_271, %c0_272, %c0_273] : memref<1x52x17x32xf32, #tpu.memory_space<vmem>>, vector<1x1x17x32xf32>
    %305 = vector.shape_cast %304 : vector<1x1x17x32xf32> to vector<17x32xf32>
    %306 = vector.shape_cast %303 : vector<17x32xf32> to vector<1x1x17x32xf32>
    tpu.vector_store %arg7[%c0_270, %c35_271, %c0_272, %c0_273], %306 {strides = array<i32>} : memref<1x52x17x32xf32, #tpu.memory_space<vmem>>, vector<1x1x17x32xf32>,
    %c36 = arith.constant 36 : index
    %c0_274 = arith.constant 0 : index
    %c0_275 = arith.constant 0 : index
    %307 = vector.load %arg5[%c36, %c0_274, %c0_275] : memref<52x32x32xf32, #tpu.memory_space<vmem>>, vector<1x32x32xf32>
    %308 = vector.shape_cast %307 : vector<1x32x32xf32> to vector<32x32xf32>
    %309 = arith.truncf %308 : vector<32x32xf32> to vector<32x32xbf16>
    %cst_276 = arith.constant dense<0.000000e+00> : vector<17x32xf32>
    %310 = tpu.matmul %24, %309, %cst_276 {dimension_numbers = #tpu.dot_dimension_numbers<[1], [0], [0], [1], [0, 0, 1, 1], [], []>} : vector<17x32xbf16>, vector<32x32xbf16>, vector<17x32xf32> -> vector<17x32xf32>
    %c0_277 = arith.constant 0 : index
    %c36_278 = arith.constant 36 : index
    %c0_279 = arith.constant 0 : index
    %c0_280 = arith.constant 0 : index
    %311 = vector.load %arg7[%c0_277, %c36_278, %c0_279, %c0_280] : memref<1x52x17x32xf32, #tpu.memory_space<vmem>>, vector<1x1x17x32xf32>
    %312 = vector.shape_cast %311 : vector<1x1x17x32xf32> to vector<17x32xf32>
    %313 = vector.shape_cast %310 : vector<17x32xf32> to vector<1x1x17x32xf32>
    tpu.vector_store %arg7[%c0_277, %c36_278, %c0_279, %c0_280], %313 {strides = array<i32>} : memref<1x52x17x32xf32, #tpu.memory_space<vmem>>, vector<1x1x17x32xf32>,
    %c37 = arith.constant 37 : index
    %c0_281 = arith.constant 0 : index
    %c0_282 = arith.constant 0 : index
    %314 = vector.load %arg5[%c37, %c0_281, %c0_282] : memref<52x32x32xf32, #tpu.memory_space<vmem>>, vector<1x32x32xf32>
    %315 = vector.shape_cast %314 : vector<1x32x32xf32> to vector<32x32xf32>
    %316 = arith.truncf %315 : vector<32x32xf32> to vector<32x32xbf16>
    %cst_283 = arith.constant dense<0.000000e+00> : vector<17x32xf32>
    %317 = tpu.matmul %24, %316, %cst_283 {dimension_numbers = #tpu.dot_dimension_numbers<[1], [0], [0], [1], [0, 0, 1, 1], [], []>} : vector<17x32xbf16>, vector<32x32xbf16>, vector<17x32xf32> -> vector<17x32xf32>
    %c0_284 = arith.constant 0 : index
    %c37_285 = arith.constant 37 : index
    %c0_286 = arith.constant 0 : index
    %c0_287 = arith.constant 0 : index
    %318 = vector.load %arg7[%c0_284, %c37_285, %c0_286, %c0_287] : memref<1x52x17x32xf32, #tpu.memory_space<vmem>>, vector<1x1x17x32xf32>
    %319 = vector.shape_cast %318 : vector<1x1x17x32xf32> to vector<17x32xf32>
    %320 = vector.shape_cast %317 : vector<17x32xf32> to vector<1x1x17x32xf32>
    tpu.vector_store %arg7[%c0_284, %c37_285, %c0_286, %c0_287], %320 {strides = array<i32>} : memref<1x52x17x32xf32, #tpu.memory_space<vmem>>, vector<1x1x17x32xf32>,
    %c38 = arith.constant 38 : index
    %c0_288 = arith.constant 0 : index
    %c0_289 = arith.constant 0 : index
    %321 = vector.load %arg5[%c38, %c0_288, %c0_289] : memref<52x32x32xf32, #tpu.memory_space<vmem>>, vector<1x32x32xf32>
    %322 = vector.shape_cast %321 : vector<1x32x32xf32> to vector<32x32xf32>
    %323 = arith.truncf %322 : vector<32x32xf32> to vector<32x32xbf16>
    %cst_290 = arith.constant dense<0.000000e+00> : vector<17x32xf32>
    %324 = tpu.matmul %24, %323, %cst_290 {dimension_numbers = #tpu.dot_dimension_numbers<[1], [0], [0], [1], [0, 0, 1, 1], [], []>} : vector<17x32xbf16>, vector<32x32xbf16>, vector<17x32xf32> -> vector<17x32xf32>
    %c0_291 = arith.constant 0 : index
    %c38_292 = arith.constant 38 : index
    %c0_293 = arith.constant 0 : index
    %c0_294 = arith.constant 0 : index
    %325 = vector.load %arg7[%c0_291, %c38_292, %c0_293, %c0_294] : memref<1x52x17x32xf32, #tpu.memory_space<vmem>>, vector<1x1x17x32xf32>
    %326 = vector.shape_cast %325 : vector<1x1x17x32xf32> to vector<17x32xf32>
    %327 = vector.shape_cast %324 : vector<17x32xf32> to vector<1x1x17x32xf32>
    tpu.vector_store %arg7[%c0_291, %c38_292, %c0_293, %c0_294], %327 {strides = array<i32>} : memref<1x52x17x32xf32, #tpu.memory_space<vmem>>, vector<1x1x17x32xf32>,
    %c39 = arith.constant 39 : index
    %c0_295 = arith.constant 0 : index
    %c0_296 = arith.constant 0 : index
    %328 = vector.load %arg5[%c39, %c0_295, %c0_296] : memref<52x32x32xf32, #tpu.memory_space<vmem>>, vector<1x32x32xf32>
    %329 = vector.shape_cast %328 : vector<1x32x32xf32> to vector<32x32xf32>
    %330 = arith.truncf %329 : vector<32x32xf32> to vector<32x32xbf16>
    %cst_297 = arith.constant dense<0.000000e+00> : vector<17x32xf32>
    %331 = tpu.matmul %24, %330, %cst_297 {dimension_numbers = #tpu.dot_dimension_numbers<[1], [0], [0], [1], [0, 0, 1, 1], [], []>} : vector<17x32xbf16>, vector<32x32xbf16>, vector<17x32xf32> -> vector<17x32xf32>
    %c0_298 = arith.constant 0 : index
    %c39_299 = arith.constant 39 : index
    %c0_300 = arith.constant 0 : index
    %c0_301 = arith.constant 0 : index
    %332 = vector.load %arg7[%c0_298, %c39_299, %c0_300, %c0_301] : memref<1x52x17x32xf32, #tpu.memory_space<vmem>>, vector<1x1x17x32xf32>
    %333 = vector.shape_cast %332 : vector<1x1x17x32xf32> to vector<17x32xf32>
    %334 = vector.shape_cast %331 : vector<17x32xf32> to vector<1x1x17x32xf32>
    tpu.vector_store %arg7[%c0_298, %c39_299, %c0_300, %c0_301], %334 {strides = array<i32>} : memref<1x52x17x32xf32, #tpu.memory_space<vmem>>, vector<1x1x17x32xf32>,
    %c40 = arith.constant 40 : index
    %c0_302 = arith.constant 0 : index
    %c0_303 = arith.constant 0 : index
    %335 = vector.load %arg5[%c40, %c0_302, %c0_303] : memref<52x32x32xf32, #tpu.memory_space<vmem>>, vector<1x32x32xf32>
    %336 = vector.shape_cast %335 : vector<1x32x32xf32> to vector<32x32xf32>
    %337 = arith.truncf %336 : vector<32x32xf32> to vector<32x32xbf16>
    %cst_304 = arith.constant dense<0.000000e+00> : vector<17x32xf32>
    %338 = tpu.matmul %24, %337, %cst_304 {dimension_numbers = #tpu.dot_dimension_numbers<[1], [0], [0], [1], [0, 0, 1, 1], [], []>} : vector<17x32xbf16>, vector<32x32xbf16>, vector<17x32xf32> -> vector<17x32xf32>
    %c0_305 = arith.constant 0 : index
    %c40_306 = arith.constant 40 : index
    %c0_307 = arith.constant 0 : index
    %c0_308 = arith.constant 0 : index
    %339 = vector.load %arg7[%c0_305, %c40_306, %c0_307, %c0_308] : memref<1x52x17x32xf32, #tpu.memory_space<vmem>>, vector<1x1x17x32xf32>
    %340 = vector.shape_cast %339 : vector<1x1x17x32xf32> to vector<17x32xf32>
    %341 = vector.shape_cast %338 : vector<17x32xf32> to vector<1x1x17x32xf32>
    tpu.vector_store %arg7[%c0_305, %c40_306, %c0_307, %c0_308], %341 {strides = array<i32>} : memref<1x52x17x32xf32, #tpu.memory_space<vmem>>, vector<1x1x17x32xf32>,
    %c41 = arith.constant 41 : index
    %c0_309 = arith.constant 0 : index
    %c0_310 = arith.constant 0 : index
    %342 = vector.load %arg5[%c41, %c0_309, %c0_310] : memref<52x32x32xf32, #tpu.memory_space<vmem>>, vector<1x32x32xf32>
    %343 = vector.shape_cast %342 : vector<1x32x32xf32> to vector<32x32xf32>
    %344 = arith.truncf %343 : vector<32x32xf32> to vector<32x32xbf16>
    %cst_311 = arith.constant dense<0.000000e+00> : vector<17x32xf32>
    %345 = tpu.matmul %24, %344, %cst_311 {dimension_numbers = #tpu.dot_dimension_numbers<[1], [0], [0], [1], [0, 0, 1, 1], [], []>} : vector<17x32xbf16>, vector<32x32xbf16>, vector<17x32xf32> -> vector<17x32xf32>
    %c0_312 = arith.constant 0 : index
    %c41_313 = arith.constant 41 : index
    %c0_314 = arith.constant 0 : index
    %c0_315 = arith.constant 0 : index
    %346 = vector.load %arg7[%c0_312, %c41_313, %c0_314, %c0_315] : memref<1x52x17x32xf32, #tpu.memory_space<vmem>>, vector<1x1x17x32xf32>
    %347 = vector.shape_cast %346 : vector<1x1x17x32xf32> to vector<17x32xf32>
    %348 = vector.shape_cast %345 : vector<17x32xf32> to vector<1x1x17x32xf32>
    tpu.vector_store %arg7[%c0_312, %c41_313, %c0_314, %c0_315], %348 {strides = array<i32>} : memref<1x52x17x32xf32, #tpu.memory_space<vmem>>, vector<1x1x17x32xf32>,
    %c42 = arith.constant 42 : index
    %c0_316 = arith.constant 0 : index
    %c0_317 = arith.constant 0 : index
    %349 = vector.load %arg5[%c42, %c0_316, %c0_317] : memref<52x32x32xf32, #tpu.memory_space<vmem>>, vector<1x32x32xf32>
    %350 = vector.shape_cast %349 : vector<1x32x32xf32> to vector<32x32xf32>
    %351 = arith.truncf %350 : vector<32x32xf32> to vector<32x32xbf16>
    %cst_318 = arith.constant dense<0.000000e+00> : vector<17x32xf32>
    %352 = tpu.matmul %24, %351, %cst_318 {dimension_numbers = #tpu.dot_dimension_numbers<[1], [0], [0], [1], [0, 0, 1, 1], [], []>} : vector<17x32xbf16>, vector<32x32xbf16>, vector<17x32xf32> -> vector<17x32xf32>
    %c0_319 = arith.constant 0 : index
    %c42_320 = arith.constant 42 : index
    %c0_321 = arith.constant 0 : index
    %c0_322 = arith.constant 0 : index
    %353 = vector.load %arg7[%c0_319, %c42_320, %c0_321, %c0_322] : memref<1x52x17x32xf32, #tpu.memory_space<vmem>>, vector<1x1x17x32xf32>
    %354 = vector.shape_cast %353 : vector<1x1x17x32xf32> to vector<17x32xf32>
    %355 = vector.shape_cast %352 : vector<17x32xf32> to vector<1x1x17x32xf32>
    tpu.vector_store %arg7[%c0_319, %c42_320, %c0_321, %c0_322], %355 {strides = array<i32>} : memref<1x52x17x32xf32, #tpu.memory_space<vmem>>, vector<1x1x17x32xf32>,
    %c43 = arith.constant 43 : index
    %c0_323 = arith.constant 0 : index
    %c0_324 = arith.constant 0 : index
    %356 = vector.load %arg5[%c43, %c0_323, %c0_324] : memref<52x32x32xf32, #tpu.memory_space<vmem>>, vector<1x32x32xf32>
    %357 = vector.shape_cast %356 : vector<1x32x32xf32> to vector<32x32xf32>
    %358 = arith.truncf %357 : vector<32x32xf32> to vector<32x32xbf16>
    %cst_325 = arith.constant dense<0.000000e+00> : vector<17x32xf32>
    %359 = tpu.matmul %24, %358, %cst_325 {dimension_numbers = #tpu.dot_dimension_numbers<[1], [0], [0], [1], [0, 0, 1, 1], [], []>} : vector<17x32xbf16>, vector<32x32xbf16>, vector<17x32xf32> -> vector<17x32xf32>
    %c0_326 = arith.constant 0 : index
    %c43_327 = arith.constant 43 : index
    %c0_328 = arith.constant 0 : index
    %c0_329 = arith.constant 0 : index
    %360 = vector.load %arg7[%c0_326, %c43_327, %c0_328, %c0_329] : memref<1x52x17x32xf32, #tpu.memory_space<vmem>>, vector<1x1x17x32xf32>
    %361 = vector.shape_cast %360 : vector<1x1x17x32xf32> to vector<17x32xf32>
    %362 = vector.shape_cast %359 : vector<17x32xf32> to vector<1x1x17x32xf32>
    tpu.vector_store %arg7[%c0_326, %c43_327, %c0_328, %c0_329], %362 {strides = array<i32>} : memref<1x52x17x32xf32, #tpu.memory_space<vmem>>, vector<1x1x17x32xf32>,
    %c44 = arith.constant 44 : index
    %c0_330 = arith.constant 0 : index
    %c0_331 = arith.constant 0 : index
    %363 = vector.load %arg5[%c44, %c0_330, %c0_331] : memref<52x32x32xf32, #tpu.memory_space<vmem>>, vector<1x32x32xf32>
    %364 = vector.shape_cast %363 : vector<1x32x32xf32> to vector<32x32xf32>
    %365 = arith.truncf %364 : vector<32x32xf32> to vector<32x32xbf16>
    %cst_332 = arith.constant dense<0.000000e+00> : vector<17x32xf32>
    %366 = tpu.matmul %24, %365, %cst_332 {dimension_numbers = #tpu.dot_dimension_numbers<[1], [0], [0], [1], [0, 0, 1, 1], [], []>} : vector<17x32xbf16>, vector<32x32xbf16>, vector<17x32xf32> -> vector<17x32xf32>
    %c0_333 = arith.constant 0 : index
    %c44_334 = arith.constant 44 : index
    %c0_335 = arith.constant 0 : index
    %c0_336 = arith.constant 0 : index
    %367 = vector.load %arg7[%c0_333, %c44_334, %c0_335, %c0_336] : memref<1x52x17x32xf32, #tpu.memory_space<vmem>>, vector<1x1x17x32xf32>
    %368 = vector.shape_cast %367 : vector<1x1x17x32xf32> to vector<17x32xf32>
    %369 = vector.shape_cast %366 : vector<17x32xf32> to vector<1x1x17x32xf32>
    tpu.vector_store %arg7[%c0_333, %c44_334, %c0_335, %c0_336], %369 {strides = array<i32>} : memref<1x52x17x32xf32, #tpu.memory_space<vmem>>, vector<1x1x17x32xf32>,
    %c45 = arith.constant 45 : index
    %c0_337 = arith.constant 0 : index
    %c0_338 = arith.constant 0 : index
    %370 = vector.load %arg5[%c45, %c0_337, %c0_338] : memref<52x32x32xf32, #tpu.memory_space<vmem>>, vector<1x32x32xf32>
    %371 = vector.shape_cast %370 : vector<1x32x32xf32> to vector<32x32xf32>
    %372 = arith.truncf %371 : vector<32x32xf32> to vector<32x32xbf16>
    %cst_339 = arith.constant dense<0.000000e+00> : vector<17x32xf32>
    %373 = tpu.matmul %24, %372, %cst_339 {dimension_numbers = #tpu.dot_dimension_numbers<[1], [0], [0], [1], [0, 0, 1, 1], [], []>} : vector<17x32xbf16>, vector<32x32xbf16>, vector<17x32xf32> -> vector<17x32xf32>
    %c0_340 = arith.constant 0 : index
    %c45_341 = arith.constant 45 : index
    %c0_342 = arith.constant 0 : index
    %c0_343 = arith.constant 0 : index
    %374 = vector.load %arg7[%c0_340, %c45_341, %c0_342, %c0_343] : memref<1x52x17x32xf32, #tpu.memory_space<vmem>>, vector<1x1x17x32xf32>
    %375 = vector.shape_cast %374 : vector<1x1x17x32xf32> to vector<17x32xf32>
    %376 = vector.shape_cast %373 : vector<17x32xf32> to vector<1x1x17x32xf32>
    tpu.vector_store %arg7[%c0_340, %c45_341, %c0_342, %c0_343], %376 {strides = array<i32>} : memref<1x52x17x32xf32, #tpu.memory_space<vmem>>, vector<1x1x17x32xf32>,
    %c46 = arith.constant 46 : index
    %c0_344 = arith.constant 0 : index
    %c0_345 = arith.constant 0 : index
    %377 = vector.load %arg5[%c46, %c0_344, %c0_345] : memref<52x32x32xf32, #tpu.memory_space<vmem>>, vector<1x32x32xf32>
    %378 = vector.shape_cast %377 : vector<1x32x32xf32> to vector<32x32xf32>
    %379 = arith.truncf %378 : vector<32x32xf32> to vector<32x32xbf16>
    %cst_346 = arith.constant dense<0.000000e+00> : vector<17x32xf32>
    %380 = tpu.matmul %24, %379, %cst_346 {dimension_numbers = #tpu.dot_dimension_numbers<[1], [0], [0], [1], [0, 0, 1, 1], [], []>} : vector<17x32xbf16>, vector<32x32xbf16>, vector<17x32xf32> -> vector<17x32xf32>
    %c0_347 = arith.constant 0 : index
    %c46_348 = arith.constant 46 : index
    %c0_349 = arith.constant 0 : index
    %c0_350 = arith.constant 0 : index
    %381 = vector.load %arg7[%c0_347, %c46_348, %c0_349, %c0_350] : memref<1x52x17x32xf32, #tpu.memory_space<vmem>>, vector<1x1x17x32xf32>
    %382 = vector.shape_cast %381 : vector<1x1x17x32xf32> to vector<17x32xf32>
    %383 = vector.shape_cast %380 : vector<17x32xf32> to vector<1x1x17x32xf32>
    tpu.vector_store %arg7[%c0_347, %c46_348, %c0_349, %c0_350], %383 {strides = array<i32>} : memref<1x52x17x32xf32, #tpu.memory_space<vmem>>, vector<1x1x17x32xf32>,
    %c47 = arith.constant 47 : index
    %c0_351 = arith.constant 0 : index
    %c0_352 = arith.constant 0 : index
    %384 = vector.load %arg5[%c47, %c0_351, %c0_352] : memref<52x32x32xf32, #tpu.memory_space<vmem>>, vector<1x32x32xf32>
    %385 = vector.shape_cast %384 : vector<1x32x32xf32> to vector<32x32xf32>
    %386 = arith.truncf %385 : vector<32x32xf32> to vector<32x32xbf16>
    %cst_353 = arith.constant dense<0.000000e+00> : vector<17x32xf32>
    %387 = tpu.matmul %24, %386, %cst_353 {dimension_numbers = #tpu.dot_dimension_numbers<[1], [0], [0], [1], [0, 0, 1, 1], [], []>} : vector<17x32xbf16>, vector<32x32xbf16>, vector<17x32xf32> -> vector<17x32xf32>
    %c0_354 = arith.constant 0 : index
    %c47_355 = arith.constant 47 : index
    %c0_356 = arith.constant 0 : index
    %c0_357 = arith.constant 0 : index
    %388 = vector.load %arg7[%c0_354, %c47_355, %c0_356, %c0_357] : memref<1x52x17x32xf32, #tpu.memory_space<vmem>>, vector<1x1x17x32xf32>
    %389 = vector.shape_cast %388 : vector<1x1x17x32xf32> to vector<17x32xf32>
    %390 = vector.shape_cast %387 : vector<17x32xf32> to vector<1x1x17x32xf32>
    tpu.vector_store %arg7[%c0_354, %c47_355, %c0_356, %c0_357], %390 {strides = array<i32>} : memref<1x52x17x32xf32, #tpu.memory_space<vmem>>, vector<1x1x17x32xf32>,
    %c48 = arith.constant 48 : index
    %c0_358 = arith.constant 0 : index
    %c0_359 = arith.constant 0 : index
    %391 = vector.load %arg5[%c48, %c0_358, %c0_359] : memref<52x32x32xf32, #tpu.memory_space<vmem>>, vector<1x32x32xf32>
    %392 = vector.shape_cast %391 : vector<1x32x32xf32> to vector<32x32xf32>
    %393 = arith.truncf %392 : vector<32x32xf32> to vector<32x32xbf16>
    %cst_360 = arith.constant dense<0.000000e+00> : vector<17x32xf32>
    %394 = tpu.matmul %24, %393, %cst_360 {dimension_numbers = #tpu.dot_dimension_numbers<[1], [0], [0], [1], [0, 0, 1, 1], [], []>} : vector<17x32xbf16>, vector<32x32xbf16>, vector<17x32xf32> -> vector<17x32xf32>
    %c0_361 = arith.constant 0 : index
    %c48_362 = arith.constant 48 : index
    %c0_363 = arith.constant 0 : index
    %c0_364 = arith.constant 0 : index
    %395 = vector.load %arg7[%c0_361, %c48_362, %c0_363, %c0_364] : memref<1x52x17x32xf32, #tpu.memory_space<vmem>>, vector<1x1x17x32xf32>
    %396 = vector.shape_cast %395 : vector<1x1x17x32xf32> to vector<17x32xf32>
    %397 = vector.shape_cast %394 : vector<17x32xf32> to vector<1x1x17x32xf32>
    tpu.vector_store %arg7[%c0_361, %c48_362, %c0_363, %c0_364], %397 {strides = array<i32>} : memref<1x52x17x32xf32, #tpu.memory_space<vmem>>, vector<1x1x17x32xf32>,
    %c49 = arith.constant 49 : index
    %c0_365 = arith.constant 0 : index
    %c0_366 = arith.constant 0 : index
    %398 = vector.load %arg5[%c49, %c0_365, %c0_366] : memref<52x32x32xf32, #tpu.memory_space<vmem>>, vector<1x32x32xf32>
    %399 = vector.shape_cast %398 : vector<1x32x32xf32> to vector<32x32xf32>
    %400 = arith.truncf %399 : vector<32x32xf32> to vector<32x32xbf16>
    %cst_367 = arith.constant dense<0.000000e+00> : vector<17x32xf32>
    %401 = tpu.matmul %24, %400, %cst_367 {dimension_numbers = #tpu.dot_dimension_numbers<[1], [0], [0], [1], [0, 0, 1, 1], [], []>} : vector<17x32xbf16>, vector<32x32xbf16>, vector<17x32xf32> -> vector<17x32xf32>
    %c0_368 = arith.constant 0 : index
    %c49_369 = arith.constant 49 : index
    %c0_370 = arith.constant 0 : index
    %c0_371 = arith.constant 0 : index
    %402 = vector.load %arg7[%c0_368, %c49_369, %c0_370, %c0_371] : memref<1x52x17x32xf32, #tpu.memory_space<vmem>>, vector<1x1x17x32xf32>
    %403 = vector.shape_cast %402 : vector<1x1x17x32xf32> to vector<17x32xf32>
    %404 = vector.shape_cast %401 : vector<17x32xf32> to vector<1x1x17x32xf32>
    tpu.vector_store %arg7[%c0_368, %c49_369, %c0_370, %c0_371], %404 {strides = array<i32>} : memref<1x52x17x32xf32, #tpu.memory_space<vmem>>, vector<1x1x17x32xf32>,
    %c50 = arith.constant 50 : index
    %c0_372 = arith.constant 0 : index
    %c0_373 = arith.constant 0 : index
    %405 = vector.load %arg5[%c50, %c0_372, %c0_373] : memref<52x32x32xf32, #tpu.memory_space<vmem>>, vector<1x32x32xf32>
    %406 = vector.shape_cast %405 : vector<1x32x32xf32> to vector<32x32xf32>
    %407 = arith.truncf %406 : vector<32x32xf32> to vector<32x32xbf16>
    %cst_374 = arith.constant dense<0.000000e+00> : vector<17x32xf32>
    %408 = tpu.matmul %24, %407, %cst_374 {dimension_numbers = #tpu.dot_dimension_numbers<[1], [0], [0], [1], [0, 0, 1, 1], [], []>} : vector<17x32xbf16>, vector<32x32xbf16>, vector<17x32xf32> -> vector<17x32xf32>
    %c0_375 = arith.constant 0 : index
    %c50_376 = arith.constant 50 : index
    %c0_377 = arith.constant 0 : index
    %c0_378 = arith.constant 0 : index
    %409 = vector.load %arg7[%c0_375, %c50_376, %c0_377, %c0_378] : memref<1x52x17x32xf32, #tpu.memory_space<vmem>>, vector<1x1x17x32xf32>
    %410 = vector.shape_cast %409 : vector<1x1x17x32xf32> to vector<17x32xf32>
    %411 = vector.shape_cast %408 : vector<17x32xf32> to vector<1x1x17x32xf32>
    tpu.vector_store %arg7[%c0_375, %c50_376, %c0_377, %c0_378], %411 {strides = array<i32>} : memref<1x52x17x32xf32, #tpu.memory_space<vmem>>, vector<1x1x17x32xf32>,
    %c51 = arith.constant 51 : index
    %c0_379 = arith.constant 0 : index
    %c0_380 = arith.constant 0 : index
    %412 = vector.load %arg5[%c51, %c0_379, %c0_380] : memref<52x32x32xf32, #tpu.memory_space<vmem>>, vector<1x32x32xf32>
    %413 = vector.shape_cast %412 : vector<1x32x32xf32> to vector<32x32xf32>
    %414 = arith.truncf %413 : vector<32x32xf32> to vector<32x32xbf16>
    %cst_381 = arith.constant dense<0.000000e+00> : vector<17x32xf32>
    %415 = tpu.matmul %24, %414, %cst_381 {dimension_numbers = #tpu.dot_dimension_numbers<[1], [0], [0], [1], [0, 0, 1, 1], [], []>} : vector<17x32xbf16>, vector<32x32xbf16>, vector<17x32xf32> -> vector<17x32xf32>
    %c0_382 = arith.constant 0 : index
    %c51_383 = arith.constant 51 : index
    %c0_384 = arith.constant 0 : index
    %c0_385 = arith.constant 0 : index
    %416 = vector.load %arg7[%c0_382, %c51_383, %c0_384, %c0_385] : memref<1x52x17x32xf32, #tpu.memory_space<vmem>>, vector<1x1x17x32xf32>
    %417 = vector.shape_cast %416 : vector<1x1x17x32xf32> to vector<17x32xf32>
    %418 = vector.shape_cast %415 : vector<17x32xf32> to vector<1x1x17x32xf32>
    tpu.vector_store %arg7[%c0_382, %c51_383, %c0_384, %c0_385], %418 {strides = array<i32>} : memref<1x52x17x32xf32, #tpu.memory_space<vmem>>, vector<1x1x17x32xf32>,
    return
  }
  func.func @transform_0(%arg0: i32) -> (i32, i32, i32) {
    %c0_i32 = arith.constant 0 : i32
    %c0_i32_0 = arith.constant 0 : i32
    %c0_i32_1 = arith.constant 0 : i32
    return %arg0, %c0_i32, %c0_i32_0 : i32, i32, i32
  }
  func.func @transform_1(%arg0: i32) -> (i32, i32) {
    %c0_i32 = arith.constant 0 : i32
    %c0_i32_0 = arith.constant 0 : i32
    %c0_i32_1 = arith.constant 0 : i32
    return %c0_i32, %c0_i32_0 : i32, i32
  }
  func.func @transform_2(%arg0: i32) -> (i32, i32) {
    %c0_i32 = arith.constant 0 : i32
    %c0_i32_0 = arith.constant 0 : i32
    %c0_i32_1 = arith.constant 0 : i32
    return %c0_i32, %c0_i32_0 : i32, i32
  }
  func.func @transform_3(%arg0: i32) -> (i32, i32) {
    %c0_i32 = arith.constant 0 : i32
    %c0_i32_0 = arith.constant 0 : i32
    %c0_i32_1 = arith.constant 0 : i32
    return %c0_i32, %c0_i32_0 : i32, i32
  }
  func.func @transform_4(%arg0: i32) -> (i32, i32, i32) {
    %c0_i32 = arith.constant 0 : i32
    %c0_i32_0 = arith.constant 0 : i32
    %c0_i32_1 = arith.constant 0 : i32
    %c0_i32_2 = arith.constant 0 : i32
    return %c0_i32, %c0_i32_0, %c0_i32_1 : i32, i32, i32
  }
  func.func @transform_5(%arg0: i32) -> (i32, i32, i32, i32) {
    %c0_i32 = arith.constant 0 : i32
    %c0_i32_0 = arith.constant 0 : i32
    %c0_i32_1 = arith.constant 0 : i32
    %c0_i32_2 = arith.constant 0 : i32
    return %arg0, %c0_i32, %c0_i32_0, %c0_i32_1 : i32, i32, i32, i32
  }
  func.func @transform_6(%arg0: i32) -> (i32, i32, i32, i32) {
    %c0_i32 = arith.constant 0 : i32
    %c0_i32_0 = arith.constant 0 : i32
    %c0_i32_1 = arith.constant 0 : i32
    %c0_i32_2 = arith.constant 0 : i32
    return %arg0, %c0_i32, %c0_i32_0, %c0_i32_1 : i32, i32, i32, i32
  }
}

</mosaic_0001>

<bundles_post_ra>
// kernel: tpu_custom_call.1
= control target key start
LH: loop header
LB: loop body
LE: loop exit
PB: predicated region body
PF: predicated region fallthrough
CT: control target
= control target key end

     0   :  { %12 = vsyncpa [#allocation3], 0  ;;  %s6797_s0 = inlined_call_operand.vmem [shape: f32[2,17,32], index: 0, kind: input, shape index: {}]   ;;  %s6798_s1 = inlined_call_operand.vmem [shape: f32[1,32], index: 1, kind: input, shape index: {}]   ;;  %s6799_s2 = inlined_call_operand.vmem [shape: f32[1,32], index: 2, kind: input, shape index: {}]   ;;  %s6800_s3 = inlined_call_operand.vmem [shape: f32[32,64], index: 3, kind: input, shape index: {}]   ;;  %s6801_s4 = inlined_call_operand.vmem [shape: f32[52,32,32], index: 4, kind: input, shape index: {}]   ;;  %s6802_s5 = inlined_call_operand.hbm [shape: f32[2,17,2,17], index: 5, kind: output, shape index: {0}]   ;;  %s6803_s6 = inlined_call_operand.vmem [shape: f32[2,52,17,32], index: 6, kind: output, shape index: {1}]  }
   0x1   :  { %14 = vsyncpa [#allocation3 + $0x1], 0  ;;  %s5355_s21 = smov 0   ;;  %s5357_s22 = smov 0  }
   0x2   :  { %s5359_s23 = smov 0   ;;  %s5361_s24 = smov 0  }
   0x3 LB: > { %s5376_s25 = sadd.s32 4294967295, %s5309_s24   ;;  %s4004_s26 = sadd.s32 4294967294, %s5309_s24   ;;  %s5309_s24 = sphi %s5361_s24, %s6809_s24   ;;  %s5305_s23 = sphi %s5359_s23, %s6808_s23   ;;  %s5301_s22 = sphi %s5357_s22, %s6807_s22   ;;  %s5297_s21 = sphi %s5355_s21, %s6806_s21  }
   0x4   : > { %s5380_s27 = sadd.s32 1, %s5309_s24   ;;  %s137_s28 = sadd.s32 1, %s5305_s23 }
   0x5   : > { %s134_s29 = ssub.s32 %s5309_s24, %s5380_s27  ;;  %p147_p0 = scmp.ne.s32.totalorder %s5305_s23, %s5301_s22 }
   0x6   : > { %p135_p1 = scmp.eq.s32.totalorder %s134_s29, 0  ;;  %p148_p2 = scmp.eq.s32.totalorder %s5376_s25, 1 }
   0x7   : > { %p153_p3 = scmp.ne.s32.totalorder %s5301_s22, %s5297_s21  ;;  %p154_p4 = scmp.eq.s32.totalorder %s4004_s26, 1 }
   0x8   : > { %s5391_s30 = scalar_select %p135_p1, %s5305_s23, %s137_s28  }
   0x9   : > { %p5393_p5 = por %p148_p2, %p147_p0  ;;  %p5397_p6 = por %p154_p4, %p153_p3 }
   0xa   : > { %p4007_p7 = scmp.ge.s32.totalorder %s5309_s24, 1  ;;  %p218_p8 = scmp.lt.s32.totalorder %s5309_s24, 3 }
   0xc   : > { %p219_p9 = pnand %p4007_p7, %p218_p8 }
   0xd   : > { %p253_p10 = scmp.lt.s32.totalorder (!%p219_p9), %s5376_s25, 1  ;;  %s5312_s12 = smov (!%p219_p9), 112  }
   0xe   : > { %222 = sbr.rel (%p219_p9) target bundleno = 1314 (0x522), region = 40  ;;  %s5317_s26 = smov (!%p219_p9), [#allocation2]  }
   0xf   : > { %s5171_s14 = smul.u32 (!%p219_p9), 544, %s5376_s25  ;;  %s5253_s28 = sshll.u32 (!%p219_p9), %s5317_s26, 4  ;;  %s5254_s28 = int_to_ptr.vmem [resolvable:$false] %s5253_s28 }
  0x10   : > { %s5255_s29 = scalar_lea.vmem (!%p219_p9), %s5254_s28, 1088 }
  0x11   : > { %s6735_s17 = scalar_lea.hbm (!%p219_p9), %s6802_s5, %s5171_s14 }
  0x13   : > { %s5405_s9 = scalar_select %p253_p10, %s5376_s25, 1  ;;  %vm269_vm0 = vcmask 261120   ;;  %vm276_vm1 = vcmask 253952   ;;  %v333_v21 = vld [vmem:[%s6800_s3 + $0x10] sm:$0xff]  ;;  %v334_v22 = vld [vmem:[%s6800_s3 + $0x18] sm:$0xff]  ;;  %v331_v24 = vld [vmem:[%s6800_s3] sm:$0xff] }
  0x14   : > { %v336_v23 = vpack.c.bf16 %v334_v22, %v333_v21  ;;  %v332_v25 = vld [vmem:[%s6800_s3 + $0x8] sm:$0xff]  ;;  %v4010_v38 = vld [vmem:[%s6798_s1] ss:$0 sm:$0xff]  ;;  %v5311_v52 = vmov 0.0   ;;  %vm5313_vm2 = vmmov 0   ;;  %vm406_vm3 = vcmask 130048  }
  0x15   : > { %s5169_s10 = smul.u32 24, %s5405_s9  ;;  %v335_v26 = vpack.c.bf16 %v332_v25, %v331_v24  ;;  %v4011_v44 = vld [vmem:[%s6799_s2] ss:$0 sm:$0xff]  ;;  %4722 = vmatprep.subr.mxu1 %v5311_v52  ;;  %4728 = vmatprep.mubr.msk.f32.mxu1 %vm5313_vm2, %v5311_v52  ;;  %v831_v61 = vld [vmem:[%s6801_s4 + $0x10] sm:$0xff]  ;;  %v832_v62 = vld [vmem:[%s6801_s4 + $0x18] sm:$0xff]  ;;  %vm603_vm4 = vcmask 138240  }
  0x16   : > { %4714 = vmatprep.subr.bf16.mxu0 %v336_v23  ;;  %v4074_v21 = vld [vmem:[%s6801_s4 + $0xc8] sm:$0xff]  ;;  %v4094_v24 = vld [vmem:[%s6801_s4 + $0x118] sm:$0xff]  ;;  %vm610_vm5 = vcmask 131072   ;;  %vm811_vm6 = vcmask 132096  }
  0x17   : > { %s257_s13 = scalar_lea.vmem %s6797_s0, %s5169_s10  ;;  %4715 = vmatpush3.bf16.msra.mxu0 %v336_v23  ;;  %v4093_v23 = vld [vmem:[%s6801_s4 + $0x110] sm:$0xff]  ;;  %s5170_s10 = smul.u32 1248, %s5405_s9 }
  0x18   : > { %v264_v0 = vld [vmem:[%s257_s13] sm:$0xff]  ;;  %v266_v1 = vld [vmem:[%s257_s13 + $0x10] sm:$0x1]  ;;  %v265_v2 = vld [vmem:[%s257_s13 + $0x8] sm:$0xff]  ;;  %4716 = vmatprep.subr.bf16.mxu0 %v335_v26  ;;  %s5314_s13 = smov 96   ;;  %v1305_v25 = vpack.c.bf16 %v4094_v24, %v4093_v23 }
  0x19   : > { %v270_v3 = vsel %vm269_vm0, %v264_v0, 0.0  ;;  %v277_v4 = vsel %vm276_vm1, %v266_v1, 0.0  ;;  %v273_v5 = vsel %vm269_vm0, %v265_v2, 0.0  ;;  %v4028_v24 = vld [vmem:[%s6801_s4 + $0x20] sm:$0xff]  ;;  %s6111_s20 = scalar_lea.vmem %s6803_s6, %s5170_s10 }
  0x1a   : > { %271 = vadd.xlane.f32.xlu0 %v270_v3  ;;  %278 = vadd.xlane.f32.xlu1 %v277_v4 }
  0x1b   : > { %4717 = vmatpush3.bf16.msra.mxu0 %v335_v26  ;;  %v4091_v26 = vld [vmem:[%s6801_s4 + $0x100] sm:$0xff] }
  0x1c   : > { %4737 = vmatprep.subr.mxu0 %v5311_v52 }
  0x1e   : > { %274 = vadd.xlane.f32.xlu0 %v273_v5  ;;  %v4039_v5 = vld [vmem:[%s6801_s4 + $0x50] sm:$0xff] }
  0xa3   : > { %v272_v6 = vpop.xlane.xlu0 %271  ;;  %v279_v7 = vpop.xlane.xlu1 %278 }
  0xa4   : > { %v281_v8 = vmul.f32 0.03125, %v272_v6  ;;  %v283_v9 = vmul.f32 0.03125, %v279_v7  ;;  %v4040_v6 = vld [vmem:[%s6801_s4 + $0x58] sm:$0xff] }
  0xa5   : > { %v951_v7 = vpack.c.bf16 %v4040_v6, %v4039_v5  ;;  %v4200_v5 = vld [vmem:[%s6801_s4 + $0x288] sm:$0xff] }
  0xa6   : > { %v284_v10 = vsub.f32 %v264_v0, %v281_v8  ;;  %v286_v11 = vsub.f32 %v266_v1, %v283_v9  ;;  %v834_v0 = vpack.c.bf16 %v832_v62, %v831_v61  ;;  %v829_v1 = vld [vmem:[%s6801_s4] sm:$0xff]  ;;  %v4038_v9 = vld [vmem:[%s6801_s4 + $0x48] sm:$0xff] }
  0xa7   : > { %v275_v12 = vpop.xlane.xlu0 %274  ;;  %v4037_v8 = vld [vmem:[%s6801_s4 + $0x40] sm:$0xff] }
  0xa8   : > { %v282_v13 = vmul.f32 0.03125, %v275_v12  ;;  %v287_v14 = vmul.f32 %v284_v10, %v284_v10  ;;  %v289_v15 = vmul.f32 %v286_v11, %v286_v11  ;;  %v4058_v12 = vld [vmem:[%s6801_s4 + $0x98] sm:$0xff]  ;;  %v4181_v62 = vld [vmem:[%s6801_s4 + $0x240] sm:$0xff] }
  0xaa   : > { %v285_v16 = vsub.f32 %v265_v2, %v282_v13  ;;  %v290_v17 = vsel %vm269_vm0, %v287_v14, 0.0  ;;  %v296_v18 = vsel %vm276_vm1, %v289_v15, 0.0  ;;  %v830_v2 = vld [vmem:[%s6801_s4 + $0x8] sm:$0xff]  ;;  %v4055_v14 = vld [vmem:[%s6801_s4 + $0x80] sm:$0xff] }
  0xab   : > { %291 = vadd.xlane.f32.xlu1 %v290_v17  ;;  %v833_v4 = vpack.c.bf16 %v830_v2, %v829_v1  ;;  %v4056_v15 = vld [vmem:[%s6801_s4 + $0x88] sm:$0xff]  ;;  %v4075_v17 = vld [vmem:[%s6801_s4 + $0xd0] sm:$0xff]  ;;  %v4202_v2 = vld [vmem:[%s6801_s4 + $0x298] sm:$0xff] }
  0xac   : > { %v288_v19 = vmul.f32 %v285_v16, %v285_v16  ;;  %v4201_v1 = vld [vmem:[%s6801_s4 + $0x290] sm:$0xff] }
  0xae   : > { %v293_v20 = vsel %vm269_vm0, %v288_v19, 0.0 }
  0xaf   : > { %297 = vadd.xlane.f32.xlu1 %v296_v18  ;;  %294 = vadd.xlane.f32.xlu0 %v293_v20  ;;  %v4076_v18 = vld [vmem:[%s6801_s4 + $0xd8] sm:$0xff]  ;;  %v4073_v20 = vld [vmem:[%s6801_s4 + $0xc0] sm:$0xff] }
  0xb0   : > { %v1187_v19 = vpack.c.bf16 %v4076_v18, %v4075_v17  ;;  %v1186_v22 = vpack.c.bf16 %v4074_v21, %v4073_v20  ;;  %v4235_v17 = vld [vmem:[%s6801_s4 + $0x300] sm:$0xff]  ;;  %v4030_v20 = vld [vmem:[%s6801_s4 + $0x30] sm:$0xff]  ;;  %v4031_v21 = vld [vmem:[%s6801_s4 + $0x38] sm:$0xff] }
  0xb1   : > { %v892_v23 = vpack.c.bf16 %v4031_v21, %v4030_v20  ;;  %v4120_v20 = vld [vmem:[%s6801_s4 + $0x170] sm:$0xff]  ;;  %v4121_v21 = vld [vmem:[%s6801_s4 + $0x178] sm:$0xff] }
 0x134   : > { %v292_v27 = vpop.xlane.xlu1 %291 }
 0x135   : > { %v299_v28 = vmul.f32 0.03125, %v292_v27  ;;  %v4092_v27 = vld [vmem:[%s6801_s4 + $0x108] sm:$0xff] }
 0x137   : > { %v302_v29 = vadd.f32 1e-05, %v299_v28  ;;  %v1304_v28 = vpack.c.bf16 %v4092_v27, %v4091_v26  ;;  %v4255_v27 = vld [vmem:[%s6801_s4 + $0x350] sm:$0xff] }
 0x138   : > { %v298_v30 = vpop.xlane.xlu1 %297  ;;  %v295_v31 = vpop.xlane.xlu0 %294 }
 0x139   : > { %5219 = vrsqrt.f32 %v302_v29  ;;  %v301_v32 = vmul.f32 0.03125, %v298_v30  ;;  %v300_v33 = vmul.f32 0.03125, %v295_v31  ;;  %v4111_v29 = vld [vmem:[%s6801_s4 + $0x150] sm:$0xff]  ;;  %v4112_v30 = vld [vmem:[%s6801_s4 + $0x158] sm:$0xff] }
 0x13a   : > { %v1423_v31 = vpack.c.bf16 %v4112_v30, %v4111_v29 }
 0x13b   : > { %v304_v34 = vadd.f32 1e-05, %v301_v32  ;;  %v303_v35 = vadd.f32 1e-05, %v300_v33  ;;  %v4109_v32 = vld [vmem:[%s6801_s4 + $0x140] sm:$0xff]  ;;  %v4110_v33 = vld [vmem:[%s6801_s4 + $0x148] sm:$0xff] }
 0x13d   : > { %5221 = vrsqrt.f32 %v304_v34  ;;  %v1422_v34 = vpack.c.bf16 %v4110_v33, %v4109_v32  ;;  %v4254_v32 = vld [vmem:[%s6801_s4 + $0x348] sm:$0xff]  ;;  %v4048_v33 = vld [vmem:[%s6801_s4 + $0x70] sm:$0xff] }
 0x13e   : > { %5223 = vrsqrt.f32 %v303_v35  ;;  %v4129_v35 = vld [vmem:[%s6801_s4 + $0x190] sm:$0xff] }
 0x146   : > { %v5220_v36 = vpop.eup %5219 }
 0x147   : > { %v308_v37 = vmul.f32 %v5220_v36, %v284_v10  ;;  %v950_v10 = vpack.c.bf16 %v4038_v9, %v4037_v8  ;;  %v4130_v36 = vld [vmem:[%s6801_s4 + $0x198] sm:$0xff] }
 0x148   : > { %v4220_v8 = vld [vmem:[%s6801_s4 + $0x2d8] sm:$0xff] }
 0x149   : > { %v317_v42 = vmul.f32 %v4010_v38, %v308_v37  ;;  %v1541_v37 = vpack.c.bf16 %v4130_v36, %v4129_v35  ;;  %v4273_v36 = vld [vmem:[%s6801_s4 + $0x390] sm:$0xff] }
 0x14a   : > { %v5222_v39 = vpop.eup %5221 }
 0x14b   : > { %v5224_v40 = vpop.eup %5223  ;;  %v310_v41 = vmul.f32 %v5222_v39, %v286_v11  ;;  %v326_v48 = vadd.f32 %v4011_v44, %v317_v42  ;;  %v4057_v11 = vld [vmem:[%s6801_s4 + $0x90] sm:$0xff]  ;;  %v4128_v39 = vld [vmem:[%s6801_s4 + $0x188] sm:$0xff]  ;;  %v4148_v42 = vld [vmem:[%s6801_s4 + $0x1d8] sm:$0xff] }
 0x14c   : > { %v309_v43 = vmul.f32 %v5224_v40, %v285_v16  ;;  %v1069_v13 = vpack.c.bf16 %v4058_v12, %v4057_v11  ;;  %v1068_v16 = vpack.c.bf16 %v4056_v15, %v4055_v14  ;;  %v4218_v11 = vld [vmem:[%s6801_s4 + $0x2c8] sm:$0xff]  ;;  %v4237_v14 = vld [vmem:[%s6801_s4 + $0x310] sm:$0xff]  ;;  %v4238_v15 = vld [vmem:[%s6801_s4 + $0x318] sm:$0xff] }
 0x14d   : > { %v319_v45 = vmul.f32 %v4010_v38, %v310_v41  ;;  %v4147_v41 = vld [vmem:[%s6801_s4 + $0x1d0] sm:$0xff] }
 0x14e   : > { %v318_v46 = vmul.f32 %v4010_v38, %v309_v43  ;;  %v4127_v38 = vld [vmem:[%s6801_s4 + $0x180] sm:$0xff]  ;;  %v1659_v43 = vpack.c.bf16 %v4148_v42, %v4147_v41  ;;  %v4272_v41 = vld [vmem:[%s6801_s4 + $0x388] sm:$0xff] }
 0x14f   : > { %v328_v47 = vadd.f32 %v4011_v44, %v319_v45  ;;  %v1540_v40 = vpack.c.bf16 %v4128_v39, %v4127_v38  ;;  %v4146_v45 = vld [vmem:[%s6801_s4 + $0x1c8] sm:$0xff]  ;;  %v4046_v38 = vld [vmem:[%s6801_s4 + $0x60] sm:$0xff] }
 0x150   : > { %v327_v49 = vadd.f32 %v4011_v44, %v318_v46  ;;  %v4145_v44 = vld [vmem:[%s6801_s4 + $0x1c0] sm:$0xff]  ;;  %v4047_v39 = vld [vmem:[%s6801_s4 + $0x68] sm:$0xff] }
 0x151   : > { %v5435_v50 = vpack.c.bf16 %v328_v47, %v328_v47  ;;  %v1658_v46 = vpack.c.bf16 %v4146_v45, %v4145_v44  ;;  %v4165_v47 = vld [vmem:[%s6801_s4 + $0x210] sm:$0xff]  ;;  %v1009_v42 = vpack.c.bf16 %v4047_v39, %v4046_v38  ;;  %v4361_v39 = vld [vmem:[%s6801_s4 + $0x4c0] sm:$0xff] }
 0x152   : > { %v5437_v51 = vpack.c.bf16 %v327_v49, %v326_v48  ;;  %v4166_v48 = vld [vmem:[%s6801_s4 + $0x218] sm:$0xff]  ;;  %v4291_v45 = vld [vmem:[%s6801_s4 + $0x3d0] sm:$0xff] }
 0x153   : > { %v1777_v49 = vpack.c.bf16 %v4166_v48, %v4165_v47  ;;  %v4064_v48 = vld [vmem:[%s6801_s4 + $0xa0] sm:$0xff] }
 0x154   : > { %4718 = vmatprep.mubr.msk.bf16.mxu0 %vm269_vm0, %v5437_v51 }
 0x155   : > { %4719 = vmatmul.mubr.msk.bf16.vlgmr.msra.gmra.mxu0 %vm269_vm0, %v5435_v50 }
 0x156   : > { %4743 = vmatprep.mubr.msk.f32.mxu0 %vm5313_vm2, %v5311_v52 }
 0x215   : > { %v4720_v53 = vpop.f32.mrf.mxu0 }
 0x216   : > { %398 = vrot.lane.b32.xlu0 %v4720_v53, %s5312_s12 }
 0x217   : > { %v377_v54 = vpop.f32.mrf.mxu0 }
 0x219   : > { %v4721_v55 = vpop.f32.mrf.mxu0 }
 0x21b   : > { %v380_v56 = vpop.f32.mrf.mxu0 }
 0x21c   : > { %396 = vrot.lane.b32.xlu1 %v380_v56, %s5312_s12 }
 0x220   : > { %394 = vrot.lane.b32.xlu1 %v377_v54, %s5312_s12 }
 0x224   : > { %404 = vrot.lane.b32.xlu1 %v4720_v53, %s5314_s13 }
 0x228   : > { %402 = vrot.lane.b32.xlu1 %v380_v56, %s5314_s13 }
 0x22c   : > { %400 = vrot.lane.b32.xlu1 %v377_v54, %s5314_s13 }
 0x288   : > { %v5449_v57 = vpop.permute.xlu0 %398 }
 0x289   : > { %503 = vrot.lane.b32.xlu0 %v5449_v57, %s5314_s13 }
 0x28e   : > { %v5452_v58 = vpop.permute.xlu1 %396 }
 0x28f   : > { %501 = vrot.lane.b32.xlu0 %v5452_v58, %s5314_s13 }
 0x292   : > { %v5455_v59 = vpop.permute.xlu1 %394 }
 0x293   : > { %499 = vrot.lane.b32.xlu0 %v5455_v59, %s5314_s13 }
 0x296   : > { %v405_v60 = vpop.permute.xlu1 %404 }
 0x297   : > { %4723 = vmatpush3.xpose.msk.msra.mxu1 %vm406_vm3, %v405_v60  ;;  %v4184_v60 = vld [vmem:[%s6801_s4 + $0x258] sm:$0xff] }
 0x298   : > { %4724 = vmatprep.subr.mxu1 %v5311_v52 }
 0x29a   : > { %v403_v63 = vpop.permute.xlu1 %402 }
 0x29b   : > { %4725 = vmatpush3.xpose.msk.msra.mxu1 %vm406_vm3, %v403_v63  ;;  %v4182_v63 = vld [vmem:[%s6801_s4 + $0x248] sm:$0xff] }
 0x29c   : > { %4726 = vmatprep.subr.mxu1 %v5311_v52 }
 0x29e   : > { %v401_v3 = vpop.permute.xlu1 %400 }
 0x29f   : > { %4727 = vmatpush3.xpose.msk.msra.mxu1 %vm406_vm3, %v401_v3  ;;  %v2013_v3 = vpack.c.bf16 %v4202_v2, %v4201_v1  ;;  %v4082_v2 = vld [vmem:[%s6801_s4 + $0xe0] sm:$0xff] }
 0x2a0   : > { %4752 = vmatprep.subr.bf16.mxu1 %v834_v0 }
 0x2a2   : > { %4729 = vmatmul.mubr.msk.f32.vlgmr.msra.gmra.mxu1 %vm406_vm3, %v377_v54  ;;  %v4164_v54 = vld [vmem:[%s6801_s4 + $0x208] sm:$0xff] }
 0x2a3   : > { %4731 = vmatprep.mubr.msk.f32.mxu1 %vm5313_vm2, %v5311_v52  ;;  %4753 = vmatpush3.bf16.msra.mxu1 %v834_v0  ;;  %v1894_v0 = vpack.c.bf16 %v4182_v63, %v4181_v62  ;;  %v4309_v63 = vld [vmem:[%s6801_s4 + $0x410] sm:$0xff] }
 0x2a4   : > { %4754 = vmatprep.subr.bf16.mxu1 %v833_v4 }
 0x2a6   : > { %4732 = vmatmul.mubr.msk.f32.gmra.mxu1 %vm406_vm3, %v380_v56  ;;  %v4183_v56 = vld [vmem:[%s6801_s4 + $0x250] sm:$0xff] }
 0x2a7   : > { %4734 = vmatprep.mubr.msk.f32.mxu1 %vm5313_vm2, %v5311_v52  ;;  %4755 = vmatpush3.bf16.msra.mxu1 %v833_v4  ;;  %v1895_v61 = vpack.c.bf16 %v4184_v60, %v4183_v56  ;;  %v4199_v4 = vld [vmem:[%s6801_s4 + $0x280] sm:$0xff]  ;;  %v4084_v60 = vld [vmem:[%s6801_s4 + $0xf0] sm:$0xff] }
 0x2a8   : > { %4768 = vmatprep.subr.bf16.mxu1 %v951_v7  ;;  %v2012_v6 = vpack.c.bf16 %v4200_v5, %v4199_v4  ;;  %v4307_v5 = vld [vmem:[%s6801_s4 + $0x400] sm:$0xff] }
 0x2aa   : > { %4735 = vmatmul.mubr.msk.f32.gmra.mxu1 %vm406_vm3, %v4720_v53  ;;  %v4163_v53 = vld [vmem:[%s6801_s4 + $0x200] sm:$0xff] }
 0x2ab   : > { %4756 = vmatprep.mubr.msk.bf16.mxu1 %vm269_vm0, %v5437_v51  ;;  %v1776_v55 = vpack.c.bf16 %v4164_v54, %v4163_v53  ;;  %v4289_v54 = vld [vmem:[%s6801_s4 + $0x3c0] sm:$0xff] }
 0x2ae   : > { %4757 = vmatmul.mubr.msk.bf16.vlgmr.msra.gmra.mxu1 %vm269_vm0, %v5435_v50 }
 0x2af   : > { %4769 = vmatpush3.bf16.msra.mxu1 %v951_v7  ;;  %4772 = vmatprep.mubr.msk.bf16.mxu1 %vm269_vm0, %v5437_v51  ;;  %v4219_v7 = vld [vmem:[%s6801_s4 + $0x2d0] sm:$0xff] }
 0x2b0   : > { %4770 = vmatprep.subr.bf16.mxu1 %v950_v10  ;;  %v2131_v9 = vpack.c.bf16 %v4220_v8, %v4219_v7  ;;  %v4102_v8 = vld [vmem:[%s6801_s4 + $0x130] sm:$0xff] }
 0x2b3   : > { %4771 = vmatpush3.bf16.msra.mxu1 %v950_v10  ;;  %v4217_v10 = vld [vmem:[%s6801_s4 + $0x2c0] sm:$0xff] }
 0x2b4   : > { %4784 = vmatprep.subr.bf16.mxu1 %v1069_v13 }
 0x2b6   : > { %4773 = vmatmul.mubr.msk.bf16.vlgmr.msra.gmra.mxu1 %vm269_vm0, %v5435_v50 }
 0x2b7   : > { %4785 = vmatpush3.bf16.msra.mxu1 %v1069_v13  ;;  %4788 = vmatprep.mubr.msk.bf16.mxu1 %vm269_vm0, %v5437_v51  ;;  %v2130_v13 = vpack.c.bf16 %v4218_v11, %v4217_v10  ;;  %v4327_v11 = vld [vmem:[%s6801_s4 + $0x450] sm:$0xff] }
 0x2b8   : > { %4786 = vmatprep.subr.bf16.mxu1 %v1068_v16 }
 0x2bb   : > { %4787 = vmatpush3.bf16.msra.mxu1 %v1068_v16  ;;  %v2249_v16 = vpack.c.bf16 %v4238_v15, %v4237_v14  ;;  %v4100_v14 = vld [vmem:[%s6801_s4 + $0x120] sm:$0xff]  ;;  %v4101_v15 = vld [vmem:[%s6801_s4 + $0x128] sm:$0xff] }
 0x2bc   : > { %4800 = vmatprep.subr.bf16.mxu1 %v1187_v19 }
 0x2be   : > { %4789 = vmatmul.mubr.msk.bf16.vlgmr.msra.gmra.mxu1 %vm269_vm0, %v5435_v50 }
 0x2bf   : > { %4801 = vmatpush3.bf16.msra.mxu1 %v1187_v19  ;;  %4804 = vmatprep.mubr.msk.bf16.mxu1 %vm269_vm0, %v5437_v51  ;;  %v4236_v19 = vld [vmem:[%s6801_s4 + $0x308] sm:$0xff] }
 0x2c0   : > { %4802 = vmatprep.subr.bf16.mxu1 %v1186_v22 }
 0x2c3   : > { %4803 = vmatpush3.bf16.msra.mxu1 %v1186_v22  ;;  %v2248_v22 = vpack.c.bf16 %v4236_v19, %v4235_v17  ;;  %v4325_v17 = vld [vmem:[%s6801_s4 + $0x440] sm:$0xff]  ;;  %v1363_v19 = vpack.c.bf16 %v4101_v15, %v4100_v14  ;;  %v4191_v14 = vld [vmem:[%s6801_s4 + $0x268] sm:$0xff] }
 0x2c4   : > { %4816 = vmatprep.subr.bf16.mxu1 %v1305_v25 }
 0x2c6   : > { %4805 = vmatmul.mubr.msk.bf16.vlgmr.msra.gmra.mxu1 %vm269_vm0, %v5435_v50 }
 0x2c7   : > { %4817 = vmatpush3.bf16.msra.mxu1 %v1305_v25  ;;  %4820 = vmatprep.mubr.msk.bf16.mxu1 %vm269_vm0, %v5437_v51  ;;  %v4029_v25 = vld [vmem:[%s6801_s4 + $0x28] sm:$0xff] }
 0x2c8   : > { %4818 = vmatprep.subr.bf16.mxu1 %v1304_v28  ;;  %v891_v29 = vpack.c.bf16 %v4029_v25, %v4028_v24  ;;  %v4346_v24 = vld [vmem:[%s6801_s4 + $0x498] sm:$0xff]  ;;  %v1482_v25 = vpack.c.bf16 %v4121_v21, %v4120_v20 }
 0x2c9   : > { %v4211_v20 = vld [vmem:[%s6801_s4 + $0x2b8] sm:$0xff] }
 0x2cb   : > { %4819 = vmatpush3.bf16.msra.mxu1 %v1304_v28  ;;  %v4256_v28 = vld [vmem:[%s6801_s4 + $0x358] sm:$0xff] }
 0x2cc   : > { %4832 = vmatprep.subr.bf16.mxu1 %v1423_v31  ;;  %v2367_v30 = vpack.c.bf16 %v4256_v28, %v4255_v27  ;;  %v4119_v27 = vld [vmem:[%s6801_s4 + $0x168] sm:$0xff] }
 0x2ce   : > { %4821 = vmatmul.mubr.msk.bf16.vlgmr.msra.gmra.mxu1 %vm269_vm0, %v5435_v50 }
 0x2cf   : > { %4833 = vmatpush3.bf16.msra.mxu1 %v1423_v31  ;;  %4836 = vmatprep.mubr.msk.bf16.mxu1 %vm269_vm0, %v5437_v51  ;;  %v4253_v31 = vld [vmem:[%s6801_s4 + $0x340] sm:$0xff] }
 0x2d0   : > { %4834 = vmatprep.subr.bf16.mxu1 %v1422_v34 }
 0x2d3   : > { %4835 = vmatpush3.bf16.msra.mxu1 %v1422_v34  ;;  %v2366_v34 = vpack.c.bf16 %v4254_v32, %v4253_v31  ;;  %v4138_v32 = vld [vmem:[%s6801_s4 + $0x1b0] sm:$0xff] }
 0x2d4   : > { %4848 = vmatprep.subr.bf16.mxu1 %v1541_v37 }
 0x2d6   : > { %4837 = vmatmul.mubr.msk.bf16.vlgmr.msra.gmra.mxu1 %vm269_vm0, %v5435_v50 }
 0x2d7   : > { %4849 = vmatpush3.bf16.msra.mxu1 %v1541_v37  ;;  %4852 = vmatprep.mubr.msk.bf16.mxu1 %vm269_vm0, %v5437_v51  ;;  %v4274_v37 = vld [vmem:[%s6801_s4 + $0x398] sm:$0xff] }
 0x2d8   : > { %4850 = vmatprep.subr.bf16.mxu1 %v1540_v40 }
 0x2db   : > { %4851 = vmatpush3.bf16.msra.mxu1 %v1540_v40  ;;  %v4271_v40 = vld [vmem:[%s6801_s4 + $0x380] sm:$0xff] }
 0x2dc   : > { %4864 = vmatprep.subr.bf16.mxu1 %v1659_v43  ;;  %v2484_v44 = vpack.c.bf16 %v4272_v41, %v4271_v40  ;;  %v4362_v40 = vld [vmem:[%s6801_s4 + $0x4c8] sm:$0xff] }
 0x2de   : > { %4853 = vmatmul.mubr.msk.bf16.vlgmr.msra.gmra.mxu1 %vm269_vm0, %v5435_v50 }
 0x2df   : > { %4865 = vmatpush3.bf16.msra.mxu1 %v1659_v43  ;;  %4868 = vmatprep.mubr.msk.bf16.mxu1 %vm269_vm0, %v5437_v51  ;;  %v4066_v43 = vld [vmem:[%s6801_s4 + $0xb0] sm:$0xff] }
 0x2e0   : > { %4866 = vmatprep.subr.bf16.mxu1 %v1658_v46 }
 0x2e3   : > { %4867 = vmatpush3.bf16.msra.mxu1 %v1658_v46  ;;  %v4292_v46 = vld [vmem:[%s6801_s4 + $0x3d8] sm:$0xff] }
 0x2e4   : > { %4880 = vmatprep.subr.bf16.mxu1 %v1777_v49  ;;  %v2603_v53 = vpack.c.bf16 %v4292_v46, %v4291_v45  ;;  %v4382_v45 = vld [vmem:[%s6801_s4 + $0x518] sm:$0xff] }
 0x2e6   : > { %4869 = vmatmul.mubr.msk.bf16.vlgmr.msra.gmra.mxu1 %vm269_vm0, %v5435_v50 }
 0x2e7   : > { %4881 = vmatpush3.bf16.msra.mxu1 %v1777_v49  ;;  %4884 = vmatprep.mubr.msk.bf16.mxu1 %vm269_vm0, %v5437_v51  ;;  %v4065_v49 = vld [vmem:[%s6801_s4 + $0xa8] sm:$0xff] }
 0x2e8   : > { %4882 = vmatprep.subr.bf16.mxu1 %v1776_v55  ;;  %v1127_v56 = vpack.c.bf16 %v4065_v49, %v4064_v48  ;;  %v4155_v48 = vld [vmem:[%s6801_s4 + $0x1e8] sm:$0xff] }
 0x2eb   : > { %4883 = vmatpush3.bf16.msra.mxu1 %v1776_v55  ;;  %v4290_v55 = vld [vmem:[%s6801_s4 + $0x3c8] sm:$0xff] }
 0x2ec   : > { %4896 = vmatprep.subr.bf16.mxu1 %v1895_v61  ;;  %v2602_v62 = vpack.c.bf16 %v4290_v55, %v4289_v54  ;;  %v4380_v54 = vld [vmem:[%s6801_s4 + $0x508] sm:$0xff] }
 0x2ee   : > { %4885 = vmatmul.mubr.msk.bf16.vlgmr.msra.gmra.mxu1 %vm269_vm0, %v5435_v50 }
 0x2ef   : > { %4897 = vmatpush3.bf16.msra.mxu1 %v1895_v61  ;;  %4900 = vmatprep.mubr.msk.bf16.mxu1 %vm269_vm0, %v5437_v51  ;;  %v4085_v61 = vld [vmem:[%s6801_s4 + $0xf8] sm:$0xff] }
 0x2f0   : > { %4898 = vmatprep.subr.bf16.mxu1 %v1894_v0  ;;  %v1246_v1 = vpack.c.bf16 %v4085_v61, %v4084_v60  ;;  %v4175_v60 = vld [vmem:[%s6801_s4 + $0x238] sm:$0xff] }
 0x2f3   : > { %4899 = vmatpush3.bf16.msra.mxu1 %v1894_v0  ;;  %v4310_v0 = vld [vmem:[%s6801_s4 + $0x418] sm:$0xff] }
 0x2f4   : > { %4912 = vmatprep.subr.bf16.mxu1 %v2013_v3  ;;  %v2721_v4 = vpack.c.bf16 %v4310_v0, %v4309_v63  ;;  %v4400_v63 = vld [vmem:[%s6801_s4 + $0x558] sm:$0xff] }
 0x2f6   : > { %4901 = vmatmul.mubr.msk.bf16.vlgmr.msra.gmra.mxu1 %vm269_vm0, %v5435_v50 }
 0x2f7   : > { %4913 = vmatpush3.bf16.msra.mxu1 %v2013_v3  ;;  %4916 = vmatprep.mubr.msk.bf16.mxu1 %vm269_vm0, %v5437_v51  ;;  %v4083_v3 = vld [vmem:[%s6801_s4 + $0xe8] sm:$0xff] }
 0x2f8   : > { %4914 = vmatprep.subr.bf16.mxu1 %v2012_v6  ;;  %v1245_v7 = vpack.c.bf16 %v4083_v3, %v4082_v2  ;;  %v4173_v2 = vld [vmem:[%s6801_s4 + $0x228] sm:$0xff] }
 0x2fb   : > { %v504_v12 = vpop.permute.xlu0 %503  ;;  %4915 = vmatpush3.bf16.msra.mxu1 %v2012_v6  ;;  %v4308_v6 = vld [vmem:[%s6801_s4 + $0x408] sm:$0xff] }
 0x2fc   : > { %4738 = vmatpush3.xpose.msk.msra.mxu0 %vm406_vm3, %v504_v12  ;;  %4928 = vmatprep.subr.bf16.mxu1 %v2131_v9  ;;  %v2720_v10 = vpack.c.bf16 %v4308_v6, %v4307_v5  ;;  %v4328_v12 = vld [vmem:[%s6801_s4 + $0x458] sm:$0xff]  ;;  %v4398_v5 = vld [vmem:[%s6801_s4 + $0x548] sm:$0xff] }
 0x2fd   : > { %4739 = vmatprep.subr.mxu0 %v5311_v52 }
 0x2fe   : > { %4917 = vmatmul.mubr.msk.bf16.vlgmr.msra.gmra.mxu1 %vm269_vm0, %v5435_v50 }
 0x2ff   : > { %4929 = vmatpush3.bf16.msra.mxu1 %v2131_v9  ;;  %4932 = vmatprep.mubr.msk.bf16.mxu1 %vm269_vm0, %v5437_v51  ;;  %v4103_v9 = vld [vmem:[%s6801_s4 + $0x138] sm:$0xff] }
 0x300   : > { %4930 = vmatprep.subr.bf16.mxu1 %v2130_v13 }
 0x301   : > { %v502_v18 = vpop.permute.xlu0 %501 }
 0x302   : > { %4740 = vmatpush3.xpose.msk.msra.mxu0 %vm406_vm3, %v502_v18  ;;  %v4326_v18 = vld [vmem:[%s6801_s4 + $0x448] sm:$0xff] }
 0x303   : > { %4931 = vmatpush3.bf16.msra.mxu1 %v2130_v13  ;;  %4741 = vmatprep.subr.mxu0 %v5311_v52  ;;  %v1364_v13 = vpack.c.bf16 %v4103_v9, %v4102_v8  ;;  %v4193_v8 = vld [vmem:[%s6801_s4 + $0x278] sm:$0xff] }
 0x304   : > { %4944 = vmatprep.subr.bf16.mxu1 %v2249_v16 }
 0x305   : > { %v500_v26 = vpop.permute.xlu0 %499 }
 0x306   : > { %4742 = vmatpush3.xpose.msk.msra.mxu0 %vm406_vm3, %v500_v26  ;;  %4933 = vmatmul.mubr.msk.bf16.vlgmr.msra.gmra.mxu1 %vm269_vm0, %v5435_v50  ;;  %v4118_v26 = vld [vmem:[%s6801_s4 + $0x160] sm:$0xff] }
 0x307   : > { %4945 = vmatpush3.bf16.msra.mxu1 %v2249_v16  ;;  %4948 = vmatprep.mubr.msk.bf16.mxu1 %vm269_vm0, %v5437_v51  ;;  %v2839_v16 = vpack.c.bf16 %v4328_v12, %v4327_v11  ;;  %v1481_v31 = vpack.c.bf16 %v4119_v27, %v4118_v26  ;;  %v4418_v11 = vld [vmem:[%s6801_s4 + $0x598] sm:$0xff]  ;;  %v4209_v26 = vld [vmem:[%s6801_s4 + $0x2a8] sm:$0xff] }
 0x308   : > { %4946 = vmatprep.subr.bf16.mxu1 %v2248_v22  ;;  %4760 = vmatprep.subr.bf16.mxu0 %v892_v23 }
 0x309   : > { %4744 = vmatmul.mubr.msk.f32.vlgmr.msra.gmra.mxu0 %vm406_vm3, %v5455_v59  ;;  %v4049_v59 = vld [vmem:[%s6801_s4 + $0x78] sm:$0xff] }
 0x30a   : > { %4746 = vmatprep.mubr.msk.f32.mxu0 %vm5313_vm2, %v5311_v52  ;;  %4761 = vmatpush3.bf16.msra.mxu0 %v892_v23  ;;  %v1010_v35 = vpack.c.bf16 %v4049_v59, %v4048_v33  ;;  %v4345_v23 = vld [vmem:[%s6801_s4 + $0x490] sm:$0xff]  ;;  %v4139_v33 = vld [vmem:[%s6801_s4 + $0x1b8] sm:$0xff] }
 0x30b   : > { %4947 = vmatpush3.bf16.msra.mxu1 %v2248_v22  ;;  %4762 = vmatprep.subr.bf16.mxu0 %v891_v29  ;;  %v2838_v22 = vpack.c.bf16 %v4326_v18, %v4325_v17  ;;  %v2957_v28 = vpack.c.bf16 %v4346_v24, %v4345_v23  ;;  %v4416_v17 = vld [vmem:[%s6801_s4 + $0x588] sm:$0xff]  ;;  %v4436_v23 = vld [vmem:[%s6801_s4 + $0x5d8] sm:$0xff] }
 0x30c   : > { %4960 = vmatprep.subr.bf16.mxu1 %v2367_v30 }
 0x30d   : > { %4747 = vmatmul.mubr.msk.f32.gmra.mxu0 %vm406_vm3, %v5452_v58  ;;  %v2485_v58 = vpack.c.bf16 %v4274_v37, %v4273_v36  ;;  %v1600_v36 = vpack.c.bf16 %v4139_v33, %v4138_v32  ;;  %v4136_v37 = vld [vmem:[%s6801_s4 + $0x1a0] sm:$0xff]  ;;  %v4229_v32 = vld [vmem:[%s6801_s4 + $0x2f8] sm:$0xff] }
 0x30e   : > { %4949 = vmatmul.mubr.msk.bf16.vlgmr.msra.gmra.mxu1 %vm269_vm0, %v5435_v50  ;;  %4749 = vmatprep.mubr.msk.f32.mxu0 %vm5313_vm2, %v5311_v52 }
 0x30f   : > { %4961 = vmatpush3.bf16.msra.mxu1 %v2367_v30  ;;  %4964 = vmatprep.mubr.msk.bf16.mxu1 %vm269_vm0, %v5437_v51  ;;  %v4344_v30 = vld [vmem:[%s6801_s4 + $0x488] sm:$0xff] }
 0x310   : > { %4763 = vmatpush3.bf16.msra.mxu0 %v891_v29  ;;  %4962 = vmatprep.subr.bf16.mxu1 %v2366_v34  ;;  %v4343_v29 = vld [vmem:[%s6801_s4 + $0x480] sm:$0xff] }
 0x311   : > { %4750 = vmatmul.mubr.msk.f32.gmra.mxu0 %vm406_vm3, %v5449_v57  ;;  %4776 = vmatprep.subr.bf16.mxu0 %v1010_v35  ;;  %v4067_v57 = vld [vmem:[%s6801_s4 + $0xb8] sm:$0xff]  ;;  %v2956_v59 = vpack.c.bf16 %v4344_v30, %v4343_v29  ;;  %v4434_v29 = vld [vmem:[%s6801_s4 + $0x5c8] sm:$0xff] }
 0x312   : > { %4764 = vmatprep.mubr.msk.bf16.mxu0 %vm269_vm0, %v5437_v51  ;;  %v1128_v47 = vpack.c.bf16 %v4067_v57, %v4066_v43  ;;  %v4157_v43 = vld [vmem:[%s6801_s4 + $0x1f8] sm:$0xff]  ;;  %v3074_v57 = vpack.c.bf16 %v4362_v40, %v4361_v39  ;;  %v4451_v39 = vld [vmem:[%s6801_s4 + $0x600] sm:$0xff]  ;;  %v4452_v40 = vld [vmem:[%s6801_s4 + $0x608] sm:$0xff] }
 0x313   : > { %4963 = vmatpush3.bf16.msra.mxu1 %v2366_v34  ;;  %v4363_v34 = vld [vmem:[%s6801_s4 + $0x4d0] sm:$0xff] }
 0x314   : > { %4976 = vmatprep.subr.bf16.mxu1 %v2485_v58 }
 0x315   : > { %4765 = vmatmul.mubr.msk.bf16.vlgmr.msra.gmra.mxu0 %vm269_vm0, %v5435_v50 }
 0x316   : > { %4777 = vmatpush3.bf16.msra.mxu0 %v1010_v35  ;;  %4780 = vmatprep.mubr.msk.bf16.mxu0 %vm269_vm0, %v5437_v51  ;;  %v4364_v35 = vld [vmem:[%s6801_s4 + $0x4d8] sm:$0xff] }
 0x317   : > { %4965 = vmatmul.mubr.msk.bf16.vlgmr.msra.gmra.mxu1 %vm269_vm0, %v5435_v50  ;;  %4778 = vmatprep.subr.bf16.mxu0 %v1009_v42  ;;  %v3075_v38 = vpack.c.bf16 %v4364_v35, %v4363_v34  ;;  %v4454_v34 = vld [vmem:[%s6801_s4 + $0x618] sm:$0xff] }
 0x318   : > { %4977 = vmatpush3.bf16.msra.mxu1 %v2485_v58  ;;  %4980 = vmatprep.mubr.msk.bf16.mxu1 %vm269_vm0, %v5437_v51  ;;  %v4137_v58 = vld [vmem:[%s6801_s4 + $0x1a8] sm:$0xff] }
 0x319   : > { %4978 = vmatprep.subr.bf16.mxu1 %v2484_v44  ;;  %v1599_v41 = vpack.c.bf16 %v4137_v58, %v4136_v37  ;;  %v4226_v37 = vld [vmem:[%s6801_s4 + $0x2e0] sm:$0xff] }
 0x31a   : > { %4779 = vmatpush3.bf16.msra.mxu0 %v1009_v42  ;;  %v4156_v42 = vld [vmem:[%s6801_s4 + $0x1f0] sm:$0xff] }
 0x31b   : > { %4792 = vmatprep.subr.bf16.mxu0 %v1128_v47  ;;  %v1718_v46 = vpack.c.bf16 %v4157_v43, %v4156_v42  ;;  %v4246_v43 = vld [vmem:[%s6801_s4 + $0x330] sm:$0xff] }
 0x31c   : > { %4979 = vmatpush3.bf16.msra.mxu1 %v2484_v44  ;;  %v4381_v44 = vld [vmem:[%s6801_s4 + $0x510] sm:$0xff] }
 0x31d   : > { %4781 = vmatmul.mubr.msk.bf16.vlgmr.msra.gmra.mxu0 %vm269_vm0, %v5435_v50  ;;  %4992 = vmatprep.subr.bf16.mxu1 %v2603_v53  ;;  %v3193_v49 = vpack.c.bf16 %v4382_v45, %v4381_v44 }
 0x31e   : > { %4793 = vmatpush3.bf16.msra.mxu0 %v1128_v47  ;;  %4796 = vmatprep.mubr.msk.bf16.mxu0 %vm269_vm0, %v5437_v51  ;;  %v4154_v47 = vld [vmem:[%s6801_s4 + $0x1e0] sm:$0xff] }
 0x31f   : > { %4981 = vmatmul.mubr.msk.bf16.vlgmr.msra.gmra.mxu1 %vm269_vm0, %v5435_v50  ;;  %4794 = vmatprep.subr.bf16.mxu0 %v1127_v56  ;;  %v1717_v55 = vpack.c.bf16 %v4155_v48, %v4154_v47  ;;  %v4471_v48 = vld [vmem:[%s6801_s4 + $0x650] sm:$0xff] }
 0x320   : > { %4993 = vmatpush3.bf16.msra.mxu1 %v2603_v53  ;;  %4996 = vmatprep.mubr.msk.bf16.mxu1 %vm269_vm0, %v5437_v51  ;;  %v4379_v53 = vld [vmem:[%s6801_s4 + $0x500] sm:$0xff] }
 0x321   : > { %4994 = vmatprep.subr.bf16.mxu1 %v2602_v62  ;;  %v3192_v61 = vpack.c.bf16 %v4380_v54, %v4379_v53 }
 0x322   : > { %4795 = vmatpush3.bf16.msra.mxu0 %v1127_v56  ;;  %v4174_v56 = vld [vmem:[%s6801_s4 + $0x230] sm:$0xff] }
 0x323   : > { %4808 = vmatprep.subr.bf16.mxu0 %v1246_v1  ;;  %v1836_v0 = vpack.c.bf16 %v4175_v60, %v4174_v56 }
 0x324   : > { %4995 = vmatpush3.bf16.msra.mxu1 %v2602_v62  ;;  %v4399_v62 = vld [vmem:[%s6801_s4 + $0x550] sm:$0xff] }
 0x325   : > { %4797 = vmatmul.mubr.msk.bf16.vlgmr.msra.gmra.mxu0 %vm269_vm0, %v5435_v50  ;;  %5008 = vmatprep.subr.bf16.mxu1 %v2721_v4  ;;  %v3311_v3 = vpack.c.bf16 %v4400_v63, %v4399_v62  ;;  %v4245_v63 = vld [vmem:[%s6801_s4 + $0x328] sm:$0xff] }
 0x326   : > { %4809 = vmatpush3.bf16.msra.mxu0 %v1246_v1  ;;  %4812 = vmatprep.mubr.msk.bf16.mxu0 %vm269_vm0, %v5437_v51  ;;  %v4172_v1 = vld [vmem:[%s6801_s4 + $0x220] sm:$0xff] }
 0x327   : > { %4997 = vmatmul.mubr.msk.bf16.vlgmr.msra.gmra.mxu1 %vm269_vm0, %v5435_v50  ;;  %4810 = vmatprep.subr.bf16.mxu0 %v1245_v7  ;;  %v1835_v6 = vpack.c.bf16 %v4173_v2, %v4172_v1  ;;  %v4470_v1 = vld [vmem:[%s6801_s4 + $0x648] sm:$0xff] }
 0x328   : > { %5009 = vmatpush3.bf16.msra.mxu1 %v2721_v4  ;;  %5012 = vmatprep.mubr.msk.bf16.mxu1 %vm269_vm0, %v5437_v51  ;;  %v4397_v4 = vld [vmem:[%s6801_s4 + $0x540] sm:$0xff] }
 0x329   : > { %5010 = vmatprep.subr.bf16.mxu1 %v2720_v10  ;;  %v3310_v9 = vpack.c.bf16 %v4398_v5, %v4397_v4  ;;  %v4264_v4 = vld [vmem:[%s6801_s4 + $0x370] sm:$0xff]  ;;  %v4265_v5 = vld [vmem:[%s6801_s4 + $0x378] sm:$0xff] }
 0x32a   : > { %4811 = vmatpush3.bf16.msra.mxu0 %v1245_v7  ;;  %v4192_v7 = vld [vmem:[%s6801_s4 + $0x270] sm:$0xff] }
 0x32b   : > { %4824 = vmatprep.subr.bf16.mxu0 %v1364_v13  ;;  %v1954_v12 = vpack.c.bf16 %v4193_v8, %v4192_v7 }
 0x32c   : > { %5011 = vmatpush3.bf16.msra.mxu1 %v2720_v10  ;;  %v4417_v10 = vld [vmem:[%s6801_s4 + $0x590] sm:$0xff] }
 0x32d   : > { %4813 = vmatmul.mubr.msk.bf16.vlgmr.msra.gmra.mxu0 %vm269_vm0, %v5435_v50  ;;  %5024 = vmatprep.subr.bf16.mxu1 %v2839_v16  ;;  %v3429_v15 = vpack.c.bf16 %v4418_v11, %v4417_v10  ;;  %v2426_v10 = vpack.c.bf16 %v4265_v5, %v4264_v4  ;;  %v4352_v4 = vld [vmem:[%s6801_s4 + $0x4a0] sm:$0xff]  ;;  %v4353_v5 = vld [vmem:[%s6801_s4 + $0x4a8] sm:$0xff] }
 0x32e   : > { %4825 = vmatpush3.bf16.msra.mxu0 %v1364_v13  ;;  %4828 = vmatprep.mubr.msk.bf16.mxu0 %vm269_vm0, %v5437_v51  ;;  %v4190_v13 = vld [vmem:[%s6801_s4 + $0x260] sm:$0xff] }
 0x32f   : > { %5013 = vmatmul.mubr.msk.bf16.vlgmr.msra.gmra.mxu1 %vm269_vm0, %v5435_v50  ;;  %4826 = vmatprep.subr.bf16.mxu0 %v1363_v19  ;;  %v1953_v18 = vpack.c.bf16 %v4191_v14, %v4190_v13  ;;  %v4263_v13 = vld [vmem:[%s6801_s4 + $0x368] sm:$0xff] }
 0x330   : > { %5025 = vmatpush3.bf16.msra.mxu1 %v2839_v16  ;;  %5028 = vmatprep.mubr.msk.bf16.mxu1 %vm269_vm0, %v5437_v51  ;;  %v4415_v16 = vld [vmem:[%s6801_s4 + $0x580] sm:$0xff] }
 0x331   : > { %5026 = vmatprep.subr.bf16.mxu1 %v2838_v22  ;;  %v3428_v21 = vpack.c.bf16 %v4416_v17, %v4415_v16  ;;  %v4282_v17 = vld [vmem:[%s6801_s4 + $0x3b0] sm:$0xff] }
 0x332   : > { %4827 = vmatpush3.bf16.msra.mxu0 %v1363_v19  ;;  %v4210_v19 = vld [vmem:[%s6801_s4 + $0x2b0] sm:$0xff] }
 0x333   : > { %4840 = vmatprep.subr.bf16.mxu0 %v1482_v25  ;;  %v2072_v24 = vpack.c.bf16 %v4211_v20, %v4210_v19 }
 0x334   : > { %5027 = vmatpush3.bf16.msra.mxu1 %v2838_v22  ;;  %v4435_v22 = vld [vmem:[%s6801_s4 + $0x5d0] sm:$0xff] }
 0x335   : > { %4829 = vmatmul.mubr.msk.bf16.vlgmr.msra.gmra.mxu0 %vm269_vm0, %v5435_v50  ;;  %5040 = vmatprep.subr.bf16.mxu1 %v2957_v28  ;;  %v3547_v27 = vpack.c.bf16 %v4436_v23, %v4435_v22  ;;  %v4280_v22 = vld [vmem:[%s6801_s4 + $0x3a0] sm:$0xff]  ;;  %v4281_v23 = vld [vmem:[%s6801_s4 + $0x3a8] sm:$0xff] }
 0x336   : > { %4841 = vmatpush3.bf16.msra.mxu0 %v1482_v25  ;;  %4844 = vmatprep.mubr.msk.bf16.mxu0 %vm269_vm0, %v5437_v51  ;;  %v4208_v25 = vld [vmem:[%s6801_s4 + $0x2a0] sm:$0xff] }
 0x337   : > { %5029 = vmatmul.mubr.msk.bf16.vlgmr.msra.gmra.mxu1 %vm269_vm0, %v5435_v50  ;;  %4842 = vmatprep.subr.bf16.mxu0 %v1481_v31  ;;  %v2071_v30 = vpack.c.bf16 %v4209_v26, %v4208_v25  ;;  %v2543_v25 = vpack.c.bf16 %v4281_v23, %v4280_v22 }
 0x338   : > { %5041 = vmatpush3.bf16.msra.mxu1 %v2957_v28  ;;  %5044 = vmatprep.mubr.msk.bf16.mxu1 %vm269_vm0, %v5437_v51  ;;  %v4433_v28 = vld [vmem:[%s6801_s4 + $0x5c0] sm:$0xff] }
 0x339   : > { %5042 = vmatprep.subr.bf16.mxu1 %v2956_v59  ;;  %v3546_v33 = vpack.c.bf16 %v4434_v29, %v4433_v28  ;;  %v4301_v28 = vld [vmem:[%s6801_s4 + $0x3f8] sm:$0xff] }
 0x33a   : > { %4843 = vmatpush3.bf16.msra.mxu0 %v1481_v31  ;;  %v4228_v31 = vld [vmem:[%s6801_s4 + $0x2f0] sm:$0xff] }
 0x33b   : > { %4856 = vmatprep.subr.bf16.mxu0 %v1600_v36  ;;  %v2190_v35 = vpack.c.bf16 %v4229_v32, %v4228_v31  ;;  %v4298_v32 = vld [vmem:[%s6801_s4 + $0x3e0] sm:$0xff] }
 0x33c   : > { %5043 = vmatpush3.bf16.msra.mxu1 %v2956_v59  ;;  %v4453_v59 = vld [vmem:[%s6801_s4 + $0x610] sm:$0xff] }
 0x33d   : > { %4845 = vmatmul.mubr.msk.bf16.vlgmr.msra.gmra.mxu0 %vm269_vm0, %v5435_v50  ;;  %5056 = vmatprep.subr.bf16.mxu1 %v3075_v38 }
 0x33e   : > { %4857 = vmatpush3.bf16.msra.mxu0 %v1600_v36  ;;  %4860 = vmatprep.mubr.msk.bf16.mxu0 %vm269_vm0, %v5437_v51  ;;  %v3665_v36 = vpack.c.bf16 %v4454_v34, %v4453_v59 }
 0x33f   : > { %5045 = vmatmul.mubr.msk.bf16.vlgmr.msra.gmra.mxu1 %vm269_vm0, %v5435_v50  ;;  %4858 = vmatprep.subr.bf16.mxu0 %v1599_v41 }
 0x340   : > { %5057 = vmatpush3.bf16.msra.mxu1 %v3075_v38  ;;  %5060 = vmatprep.mubr.msk.bf16.mxu1 %vm269_vm0, %v5437_v51  ;;  %v4227_v38 = vld [vmem:[%s6801_s4 + $0x2e8] sm:$0xff] }
 0x341   : > { %5058 = vmatprep.subr.bf16.mxu1 %v3074_v57  ;;  %v2189_v45 = vpack.c.bf16 %v4227_v38, %v4226_v37  ;;  %v4319_v37 = vld [vmem:[%s6801_s4 + $0x438] sm:$0xff] }
 0x342   : > { %4859 = vmatpush3.bf16.msra.mxu0 %v1599_v41 }
 0x343   : > { %4872 = vmatprep.subr.bf16.mxu0 %v1718_v46 }
 0x344   : > { %5059 = vmatpush3.bf16.msra.mxu1 %v3074_v57  ;;  %v4247_v57 = vld [vmem:[%s6801_s4 + $0x338] sm:$0xff] }
 0x345   : > { %4861 = vmatmul.mubr.msk.bf16.vlgmr.msra.gmra.mxu0 %vm269_vm0, %v5435_v50  ;;  %5072 = vmatprep.subr.bf16.mxu1 %v3193_v49  ;;  %v2308_v54 = vpack.c.bf16 %v4247_v57, %v4246_v43 }
 0x346   : > { %4873 = vmatpush3.bf16.msra.mxu0 %v1718_v46  ;;  %4876 = vmatprep.mubr.msk.bf16.mxu0 %vm269_vm0, %v5437_v51  ;;  %v3664_v46 = vpack.c.bf16 %v4452_v40, %v4451_v39  ;;  %v4316_v40 = vld [vmem:[%s6801_s4 + $0x420] sm:$0xff] }
 0x347   : > { %5061 = vmatmul.mubr.msk.bf16.vlgmr.msra.gmra.mxu1 %vm269_vm0, %v5435_v50  ;;  %4874 = vmatprep.subr.bf16.mxu0 %v1717_v55 }
 0x348   : > { %5073 = vmatpush3.bf16.msra.mxu1 %v3193_v49  ;;  %5076 = vmatprep.mubr.msk.bf16.mxu1 %vm269_vm0, %v5437_v51  ;;  %v4472_v49 = vld [vmem:[%s6801_s4 + $0x658] sm:$0xff] }
 0x349   : > { %5074 = vmatprep.subr.bf16.mxu1 %v3192_v61  ;;  %v3783_v60 = vpack.c.bf16 %v4472_v49, %v4471_v48 }
 0x34a   : > { %4875 = vmatpush3.bf16.msra.mxu0 %v1717_v55 }
 0x34b   : > { %4888 = vmatprep.subr.bf16.mxu0 %v1836_v0 }
 0x34c   : > { %5075 = vmatpush3.bf16.msra.mxu1 %v3192_v61  ;;  %v4244_v61 = vld [vmem:[%s6801_s4 + $0x320] sm:$0xff] }
 0x34d   : > { %4877 = vmatmul.mubr.msk.bf16.vlgmr.msra.gmra.mxu0 %vm269_vm0, %v5435_v50  ;;  %5088 = vmatprep.subr.bf16.mxu1 %v3311_v3  ;;  %v2307_v7 = vpack.c.bf16 %v4245_v63, %v4244_v61  ;;  %v4355_v63 = vld [vmem:[%s6801_s4 + $0x4b8] sm:$0xff] }
 0x34e   : > { %4889 = vmatpush3.bf16.msra.mxu0 %v1836_v0  ;;  %4892 = vmatprep.mubr.msk.bf16.mxu0 %vm269_vm0, %v5437_v51  ;;  %v4469_v0 = vld [vmem:[%s6801_s4 + $0x640] sm:$0xff] }
 0x34f   : > { %5077 = vmatmul.mubr.msk.bf16.vlgmr.msra.gmra.mxu1 %vm269_vm0, %v5435_v50  ;;  %4890 = vmatprep.subr.bf16.mxu0 %v1835_v6  ;;  %v3782_v8 = vpack.c.bf16 %v4470_v1, %v4469_v0 }
 0x350   : > { %5089 = vmatpush3.bf16.msra.mxu1 %v3311_v3  ;;  %5092 = vmatprep.mubr.msk.bf16.mxu1 %vm269_vm0, %v5437_v51 }
 0x351   : > { %5090 = vmatprep.subr.bf16.mxu1 %v3310_v9 }
 0x352   : > { %4891 = vmatpush3.bf16.msra.mxu0 %v1835_v6 }
 0x353   : > { %4904 = vmatprep.subr.bf16.mxu0 %v1954_v12 }
 0x354   : > { %5091 = vmatpush3.bf16.msra.mxu1 %v3310_v9 }
 0x355   : > { %4893 = vmatmul.mubr.msk.bf16.vlgmr.msra.gmra.mxu0 %vm269_vm0, %v5435_v50  ;;  %5104 = vmatprep.subr.bf16.mxu1 %v3429_v15 }
 0x356   : > { %4905 = vmatpush3.bf16.msra.mxu0 %v1954_v12  ;;  %4908 = vmatprep.mubr.msk.bf16.mxu0 %vm269_vm0, %v5437_v51  ;;  %v4262_v12 = vld [vmem:[%s6801_s4 + $0x360] sm:$0xff] }
 0x357   : > { %5093 = vmatmul.mubr.msk.bf16.vlgmr.msra.gmra.mxu1 %vm269_vm0, %v5435_v50  ;;  %4906 = vmatprep.subr.bf16.mxu0 %v1953_v18 }
 0x358   : > { %5105 = vmatpush3.bf16.msra.mxu1 %v3429_v15  ;;  %5108 = vmatprep.mubr.msk.bf16.mxu1 %vm269_vm0, %v5437_v51  ;;  %v2425_v15 = vpack.c.bf16 %v4263_v13, %v4262_v12 }
 0x359   : > { %5106 = vmatprep.subr.bf16.mxu1 %v3428_v21 }
 0x35a   : > { %4907 = vmatpush3.bf16.msra.mxu0 %v1953_v18  ;;  %v4283_v18 = vld [vmem:[%s6801_s4 + $0x3b8] sm:$0xff] }
 0x35b   : > { %4920 = vmatprep.subr.bf16.mxu0 %v2072_v24  ;;  %v2544_v20 = vpack.c.bf16 %v4283_v18, %v4282_v17 }
 0x35c   : > { %5107 = vmatpush3.bf16.msra.mxu1 %v3428_v21 }
 0x35d   : > { %4909 = vmatmul.mubr.msk.bf16.vlgmr.msra.gmra.mxu0 %vm269_vm0, %v5435_v50  ;;  %5120 = vmatprep.subr.bf16.mxu1 %v3547_v27 }
 0x35e   : > { %4921 = vmatpush3.bf16.msra.mxu0 %v2072_v24  ;;  %4924 = vmatprep.mubr.msk.bf16.mxu0 %vm269_vm0, %v5437_v51 }
 0x35f   : > { %5109 = vmatmul.mubr.msk.bf16.vlgmr.msra.gmra.mxu1 %vm269_vm0, %v5435_v50  ;;  %4922 = vmatprep.subr.bf16.mxu0 %v2071_v30 }
 0x360   : > { %5121 = vmatpush3.bf16.msra.mxu1 %v3547_v27  ;;  %5124 = vmatprep.mubr.msk.bf16.mxu1 %vm269_vm0, %v5437_v51  ;;  %v4300_v27 = vld [vmem:[%s6801_s4 + $0x3f0] sm:$0xff] }
 0x361   : > { %5122 = vmatprep.subr.bf16.mxu1 %v3546_v33 }
 0x362   : > { %v485_v58 = vpop.f32.mrf.mxu1  ;;  %4923 = vmatpush3.bf16.msra.mxu0 %v2071_v30  ;;  %v2662_v30 = vpack.c.bf16 %v4301_v28, %v4300_v27 }
 0x363   : > { %v6065_v41 = vmul.f32 0.25, %v485_v58  ;;  %4936 = vmatprep.subr.bf16.mxu0 %v2190_v35 }
 0x364   : > { %5123 = vmatpush3.bf16.msra.mxu1 %v3546_v33  ;;  %v4730_v42 = vpop.f32.mrf.mxu1  ;;  %v4299_v33 = vld [vmem:[%s6801_s4 + $0x3e8] sm:$0xff] }
 0x365   : > { %4925 = vmatmul.mubr.msk.bf16.vlgmr.msra.gmra.mxu0 %vm269_vm0, %v5435_v50  ;;  %5136 = vmatprep.subr.bf16.mxu1 %v3665_v36  ;;  %v604_v44 = vsel %vm603_vm4, %v6065_v41, -inf  ;;  %v2661_v34 = vpack.c.bf16 %v4299_v33, %v4298_v32  ;;  %v4317_v42 = vld [vmem:[%s6801_s4 + $0x428] sm:$0xff] }
 0x366   : > { %4937 = vmatpush3.bf16.msra.mxu0 %v2190_v35  ;;  %4940 = vmatprep.mubr.msk.bf16.mxu0 %vm269_vm0, %v5437_v51  ;;  %v490_v47 = vpop.f32.mrf.mxu1  ;;  %v2779_v57 = vpack.c.bf16 %v4317_v42, %v4316_v40 }
 0x367   : > { %5125 = vmatmul.mubr.msk.bf16.vlgmr.msra.gmra.mxu1 %vm269_vm0, %v5435_v50  ;;  %605 = vmax.xlane.f32.xlu1 %v604_v44  ;;  %v6087_v53 = vmul.f32 0.25, %v490_v47 }
 0x368   : > { %5137 = vmatpush3.bf16.msra.mxu1 %v3665_v36  ;;  %5140 = vmatprep.mubr.msk.bf16.mxu1 %vm269_vm0, %v5437_v51  ;;  %v4733_v55 = vpop.f32.mrf.mxu1  ;;  %v4318_v36 = vld [vmem:[%s6801_s4 + $0x430] sm:$0xff] }
 0x369   : > { %4938 = vmatprep.subr.bf16.mxu0 %v2189_v45  ;;  %5138 = vmatprep.subr.bf16.mxu1 %v3664_v46  ;;  %v607_v56 = vsel %vm603_vm4, %v6087_v53, -inf  ;;  %v2780_v38 = vpack.c.bf16 %v4319_v37, %v4318_v36  ;;  %v4335_v55 = vld [vmem:[%s6801_s4 + $0x468] sm:$0xff] }
 0x36a   : > { %4939 = vmatpush3.bf16.msra.mxu0 %v2189_v45  ;;  %608 = vmax.xlane.f32.xlu0 %v607_v56  ;;  %v495_v62 = vpop.f32.mrf.mxu1  ;;  %v4336_v45 = vld [vmem:[%s6801_s4 + $0x470] sm:$0xff] }
 0x36b   : > { %v6106_v2 = vmul.f32 0.25, %v495_v62  ;;  %4952 = vmatprep.subr.bf16.mxu0 %v2308_v54  ;;  %v4354_v62 = vld [vmem:[%s6801_s4 + $0x4b0] sm:$0xff] }
 0x36c   : > { %5139 = vmatpush3.bf16.msra.mxu1 %v3664_v46  ;;  %v4736_v3 = vpop.f32.mrf.mxu1  ;;  %v4337_v46 = vld [vmem:[%s6801_s4 + $0x478] sm:$0xff]  ;;  %v3016_v1 = vpack.c.bf16 %v4355_v63, %v4354_v62 }
 0x36d   : > { %4941 = vmatmul.mubr.msk.bf16.vlgmr.msra.gmra.mxu0 %vm269_vm0, %v5435_v50  ;;  %5152 = vmatprep.subr.bf16.mxu1 %v3783_v60  ;;  %v611_v6 = vsel %vm610_vm5, %v6106_v2, -inf  ;;  %v2898_v48 = vpack.c.bf16 %v4337_v46, %v4336_v45 }
 0x36e   : > { %4953 = vmatpush3.bf16.msra.mxu0 %v2308_v54  ;;  %4956 = vmatprep.mubr.msk.bf16.mxu0 %vm269_vm0, %v5437_v51  ;;  %v4758_v9 = vpop.f32.mrf.mxu1  ;;  %v4334_v54 = vld [vmem:[%s6801_s4 + $0x460] sm:$0xff] }
 0x36f   : > { %5141 = vmatmul.mubr.msk.bf16.vlgmr.msra.gmra.mxu1 %vm269_vm0, %v5435_v50  ;;  %612 = vmax.xlane.f32.xlu1 %v611_v6  ;;  %885 = vst.msk [vmem:[%s6111_s20 + $0x10] sm:$0x1] %vm276_vm1, %v4758_v9  ;;  %v4372_v9 = vld [vmem:[%s6801_s4 + $0x4f0] sm:$0xff] }
 0x370   : > { %5153 = vmatpush3.bf16.msra.mxu1 %v3783_v60  ;;  %5156 = vmatprep.mubr.msk.bf16.mxu1 %vm269_vm0, %v5437_v51  ;;  %v869_v11 = vpop.f32.mrf.mxu1  ;;  %v2897_v60 = vpack.c.bf16 %v4335_v55, %v4334_v54 }
 0x371   : > { %883 = vst.msk [vmem:[%s6111_s20] sm:$0xff] %vm269_vm0, %v869_v11  ;;  %4954 = vmatprep.subr.bf16.mxu0 %v2307_v7  ;;  %5154 = vmatprep.subr.bf16.mxu1 %v3782_v8 }
 0x372   : > { %v4759_v14 = vpop.f32.mrf.mxu1  ;;  %4955 = vmatpush3.bf16.msra.mxu0 %v2307_v7  ;;  %v3015_v7 = vpack.c.bf16 %v4353_v5, %v4352_v4 }
 0x373   : > { %4968 = vmatprep.subr.bf16.mxu0 %v2426_v10  ;;  %v4370_v14 = vld [vmem:[%s6801_s4 + $0x4e0] sm:$0xff] }
 0x374   : > { %5155 = vmatpush3.bf16.msra.mxu1 %v3782_v8  ;;  %v872_v16 = vpop.f32.mrf.mxu1 }
 0x375   : > { %884 = vst.msk [vmem:[%s6111_s20 + $0x8] sm:$0xff] %vm269_vm0, %v872_v16  ;;  %4957 = vmatmul.mubr.msk.bf16.vlgmr.msra.gmra.mxu0 %vm269_vm0, %v5435_v50 }
 0x376   : > { %v4774_v19 = vpop.f32.mrf.mxu1  ;;  %4969 = vmatpush3.bf16.msra.mxu0 %v2426_v10  ;;  %4972 = vmatprep.mubr.msk.bf16.mxu0 %vm269_vm0, %v5437_v51  ;;  %v4373_v10 = vld [vmem:[%s6801_s4 + $0x4f8] sm:$0xff] }
 0x377   : > { %4045 = vst.msk [vmem:[%s6111_s20 + $0x40] sm:$0x1] %vm276_vm1, %v4774_v19  ;;  %5157 = vmatmul.mubr.msk.bf16.vlgmr.msra.gmra.mxu1 %vm269_vm0, %v5435_v50  ;;  %4970 = vmatprep.subr.bf16.mxu0 %v2425_v15  ;;  %v3134_v12 = vpack.c.bf16 %v4373_v10, %v4372_v9  ;;  %v4390_v19 = vld [vmem:[%s6801_s4 + $0x530] sm:$0xff] }
 0x378   : > { %v986_v21 = vpop.f32.mrf.mxu1 }
 0x379   : > { %4043 = vst.msk [vmem:[%s6111_s20 + $0x30] sm:$0xff] %vm269_vm0, %v986_v21 }
 0x37a   : > { %v4775_v24 = vpop.f32.mrf.mxu1  ;;  %4971 = vmatpush3.bf16.msra.mxu0 %v2425_v15  ;;  %v4371_v15 = vld [vmem:[%s6801_s4 + $0x4e8] sm:$0xff] }
 0x37b   : > { %4984 = vmatprep.subr.bf16.mxu0 %v2544_v20  ;;  %v3133_v17 = vpack.c.bf16 %v4371_v15, %v4370_v14  ;;  %v4388_v24 = vld [vmem:[%s6801_s4 + $0x520] sm:$0xff]  ;;  %v4480_v15 = vld [vmem:[%s6801_s4 + $0x670] sm:$0xff] }
 0x37c   : > { %v989_v26 = vpop.f32.mrf.mxu1 }
 0x37d   : > { %4044 = vst.msk [vmem:[%s6111_s20 + $0x38] sm:$0xff] %vm269_vm0, %v989_v26  ;;  %4973 = vmatmul.mubr.msk.bf16.vlgmr.msra.gmra.mxu0 %vm269_vm0, %v5435_v50 }
 0x37e   : > { %v4790_v29 = vpop.f32.mrf.mxu1  ;;  %4985 = vmatpush3.bf16.msra.mxu0 %v2544_v20  ;;  %4988 = vmatprep.mubr.msk.bf16.mxu0 %vm269_vm0, %v5437_v51  ;;  %v4391_v20 = vld [vmem:[%s6801_s4 + $0x538] sm:$0xff] }
 0x37f   : > { %4063 = vst.msk [vmem:[%s6111_s20 + $0x70] sm:$0x1] %vm276_vm1, %v4790_v29  ;;  %4986 = vmatprep.subr.bf16.mxu0 %v2543_v25  ;;  %v3252_v22 = vpack.c.bf16 %v4391_v20, %v4390_v19  ;;  %v4408_v29 = vld [vmem:[%s6801_s4 + $0x570] sm:$0xff] }
 0x380   : > { %v1104_v31 = vpop.f32.mrf.mxu1 }
 0x381   : > { %4061 = vst.msk [vmem:[%s6111_s20 + $0x60] sm:$0xff] %vm269_vm0, %v1104_v31 }
 0x382   : > { %v4791_v59 = vpop.f32.mrf.mxu1  ;;  %4987 = vmatpush3.bf16.msra.mxu0 %v2543_v25  ;;  %v4389_v25 = vld [vmem:[%s6801_s4 + $0x528] sm:$0xff] }
 0x383   : > { %5000 = vmatprep.subr.bf16.mxu0 %v2662_v30  ;;  %v3251_v27 = vpack.c.bf16 %v4389_v25, %v4388_v24  ;;  %v4406_v59 = vld [vmem:[%s6801_s4 + $0x560] sm:$0xff]  ;;  %v4479_v25 = vld [vmem:[%s6801_s4 + $0x668] sm:$0xff] }
 0x384   : > { %v1107_v35 = vpop.f32.mrf.mxu1  ;;  %v4478_v24 = vld [vmem:[%s6801_s4 + $0x660] sm:$0xff] }
 0x385   : > { %4062 = vst.msk [vmem:[%s6111_s20 + $0x68] sm:$0xff] %vm269_vm0, %v1107_v35  ;;  %4989 = vmatmul.mubr.msk.bf16.vlgmr.msra.gmra.mxu0 %vm269_vm0, %v5435_v50 }
 0x386   : > { %v4806_v58 = vpop.f32.mrf.mxu1  ;;  %5001 = vmatpush3.bf16.msra.mxu0 %v2662_v30  ;;  %5004 = vmatprep.mubr.msk.bf16.mxu0 %vm269_vm0, %v5437_v51  ;;  %v4409_v30 = vld [vmem:[%s6801_s4 + $0x578] sm:$0xff] }
 0x387   : > { %4081 = vst.msk [vmem:[%s6111_s20 + $0xa0] sm:$0x1] %vm276_vm1, %v4806_v58  ;;  %5002 = vmatprep.subr.bf16.mxu0 %v2661_v34  ;;  %v3370_v32 = vpack.c.bf16 %v4409_v30, %v4408_v29  ;;  %v4426_v58 = vld [vmem:[%s6801_s4 + $0x5b0] sm:$0xff]  ;;  %v3841_v30 = vpack.c.bf16 %v4479_v25, %v4478_v24 }
 0x388   : > { %v1222_v39 = vpop.f32.mrf.mxu1 }
 0x389   : > { %4079 = vst.msk [vmem:[%s6111_s20 + $0x90] sm:$0xff] %vm269_vm0, %v1222_v39 }
 0x38a   : > { %v4807_v43 = vpop.f32.mrf.mxu1  ;;  %5003 = vmatpush3.bf16.msra.mxu0 %v2661_v34  ;;  %v4407_v34 = vld [vmem:[%s6801_s4 + $0x568] sm:$0xff] }
 0x38b   : > { %5016 = vmatprep.subr.bf16.mxu0 %v2780_v38  ;;  %v3369_v36 = vpack.c.bf16 %v4407_v34, %v4406_v59  ;;  %v4424_v43 = vld [vmem:[%s6801_s4 + $0x5a0] sm:$0xff] }
 0x38c   : > { %v1225_v44 = vpop.f32.mrf.mxu1 }
 0x38d   : > { %4080 = vst.msk [vmem:[%s6111_s20 + $0x98] sm:$0xff] %vm269_vm0, %v1225_v44  ;;  %5005 = vmatmul.mubr.msk.bf16.vlgmr.msra.gmra.mxu0 %vm269_vm0, %v5435_v50 }
 0x38e   : > { %v4822_v47 = vpop.f32.mrf.mxu1  ;;  %5017 = vmatpush3.bf16.msra.mxu0 %v2780_v38  ;;  %5020 = vmatprep.mubr.msk.bf16.mxu0 %vm269_vm0, %v5437_v51  ;;  %v4427_v38 = vld [vmem:[%s6801_s4 + $0x5b8] sm:$0xff] }
 0x38f   : > { %4099 = vst.msk [vmem:[%s6111_s20 + $0xd0] sm:$0x1] %vm276_vm1, %v4822_v47  ;;  %5018 = vmatprep.subr.bf16.mxu0 %v2779_v57  ;;  %v3488_v40 = vpack.c.bf16 %v4427_v38, %v4426_v58  ;;  %v4444_v47 = vld [vmem:[%s6801_s4 + $0x5f0] sm:$0xff] }
 0x390   : > { %v1340_v49 = vpop.f32.mrf.mxu1 }
 0x391   : > { %4097 = vst.msk [vmem:[%s6111_s20 + $0xc0] sm:$0xff] %vm269_vm0, %v1340_v49 }
 0x392   : > { %v4823_v56 = vpop.f32.mrf.mxu1  ;;  %5019 = vmatpush3.bf16.msra.mxu0 %v2779_v57  ;;  %v4425_v57 = vld [vmem:[%s6801_s4 + $0x5a8] sm:$0xff] }
 0x393   : > { %5032 = vmatprep.subr.bf16.mxu0 %v2898_v48  ;;  %v3487_v45 = vpack.c.bf16 %v4425_v57, %v4424_v43  ;;  %v4442_v56 = vld [vmem:[%s6801_s4 + $0x5e0] sm:$0xff] }
 0x394   : > { %v1343_v61 = vpop.f32.mrf.mxu1 }
 0x395   : > { %4098 = vst.msk [vmem:[%s6111_s20 + $0xc8] sm:$0xff] %vm269_vm0, %v1343_v61  ;;  %5021 = vmatmul.mubr.msk.bf16.vlgmr.msra.gmra.mxu0 %vm269_vm0, %v5435_v50 }
 0x396   : > { %v4838_v0 = vpop.f32.mrf.mxu1  ;;  %5033 = vmatpush3.bf16.msra.mxu0 %v2898_v48  ;;  %5036 = vmatprep.mubr.msk.bf16.mxu0 %vm269_vm0, %v5437_v51  ;;  %v4445_v48 = vld [vmem:[%s6801_s4 + $0x5f8] sm:$0xff] }
 0x397   : > { %4117 = vst.msk [vmem:[%s6111_s20 + $0x100] sm:$0x1] %vm276_vm1, %v4838_v0  ;;  %5034 = vmatprep.subr.bf16.mxu0 %v2897_v60  ;;  %v3606_v54 = vpack.c.bf16 %v4445_v48, %v4444_v47  ;;  %v4462_v0 = vld [vmem:[%s6801_s4 + $0x630] sm:$0xff] }
 0x398   : > { %v1458_v3 = vpop.f32.mrf.mxu1 }
 0x399   : > { %4115 = vst.msk [vmem:[%s6111_s20 + $0xf0] sm:$0xff] %vm269_vm0, %v1458_v3 }
 0x39a   : > { %v4839_v6 = vpop.f32.mrf.mxu1  ;;  %5035 = vmatpush3.bf16.msra.mxu0 %v2897_v60  ;;  %v4443_v60 = vld [vmem:[%s6801_s4 + $0x5e8] sm:$0xff] }
 0x39b   : > { %5048 = vmatprep.subr.bf16.mxu0 %v3016_v1  ;;  %v3605_v62 = vpack.c.bf16 %v4443_v60, %v4442_v56  ;;  %v4460_v6 = vld [vmem:[%s6801_s4 + $0x620] sm:$0xff] }
 0x39c   : > { %v1461_v8 = vpop.f32.mrf.mxu1 }
 0x39d   : > { %4116 = vst.msk [vmem:[%s6111_s20 + $0xf8] sm:$0xff] %vm269_vm0, %v1461_v8  ;;  %5037 = vmatmul.mubr.msk.bf16.vlgmr.msra.gmra.mxu0 %vm269_vm0, %v5435_v50 }
 0x39e   : > { %v4854_v11 = vpop.f32.mrf.mxu1  ;;  %5049 = vmatpush3.bf16.msra.mxu0 %v3016_v1  ;;  %5052 = vmatprep.mubr.msk.bf16.mxu0 %vm269_vm0, %v5437_v51  ;;  %v4463_v1 = vld [vmem:[%s6801_s4 + $0x638] sm:$0xff] }
 0x39f   : > { %4135 = vst.msk [vmem:[%s6111_s20 + $0x130] sm:$0x1] %vm276_vm1, %v4854_v11  ;;  %5050 = vmatprep.subr.bf16.mxu0 %v3015_v7  ;;  %v3724_v4 = vpack.c.bf16 %v4463_v1, %v4462_v0 }
 0x3a0   : > { %v1576_v13 = vpop.f32.mrf.mxu1 }
 0x3a1   : > { %4133 = vst.msk [vmem:[%s6111_s20 + $0x120] sm:$0xff] %vm269_vm0, %v1576_v13 }
 0x3a2   : > { %v4855_v16 = vpop.f32.mrf.mxu1  ;;  %5051 = vmatpush3.bf16.msra.mxu0 %v3015_v7  ;;  %v4461_v7 = vld [vmem:[%s6801_s4 + $0x628] sm:$0xff] }
 0x3a3   : > { %5064 = vmatprep.subr.bf16.mxu0 %v3134_v12  ;;  %v4481_v16 = vld [vmem:[%s6801_s4 + $0x678] sm:$0xff] }
 0x3a4   : > { %v1579_v18 = vpop.f32.mrf.mxu1 }
 0x3a5   : > { %4134 = vst.msk [vmem:[%s6111_s20 + $0x128] sm:$0xff] %vm269_vm0, %v1579_v18  ;;  %5053 = vmatmul.mubr.msk.bf16.vlgmr.msra.gmra.mxu0 %vm269_vm0, %v5435_v50 }
 0x3a6   : > { %v4870_v21 = vpop.f32.mrf.mxu1  ;;  %5065 = vmatpush3.bf16.msra.mxu0 %v3134_v12  ;;  %5068 = vmatprep.mubr.msk.bf16.mxu0 %vm269_vm0, %v5437_v51  ;;  %v3723_v12 = vpack.c.bf16 %v4461_v7, %v4460_v6 }
 0x3a7   : > { %4153 = vst.msk [vmem:[%s6111_s20 + $0x160] sm:$0x1] %vm276_vm1, %v4870_v21  ;;  %5066 = vmatprep.subr.bf16.mxu0 %v3133_v17  ;;  %v3842_v21 = vpack.c.bf16 %v4481_v16, %v4480_v15 }
 0x3a8   : > { %v1694_v23 = vpop.f32.mrf.mxu1 }
 0x3a9   : > { %4151 = vst.msk [vmem:[%s6111_s20 + $0x150] sm:$0xff] %vm269_vm0, %v1694_v23 }
 0x3aa   : > { %v4871_v26 = vpop.f32.mrf.mxu1  ;;  %5067 = vmatpush3.bf16.msra.mxu0 %v3133_v17 }
 0x3ab   : > { %5080 = vmatprep.subr.bf16.mxu0 %v3252_v22 }
 0x3ac   : > { %v1697_v28 = vpop.f32.mrf.mxu1 }
 0x3ad   : > { %4152 = vst.msk [vmem:[%s6111_s20 + $0x158] sm:$0xff] %vm269_vm0, %v1697_v28  ;;  %5069 = vmatmul.mubr.msk.bf16.vlgmr.msra.gmra.mxu0 %vm269_vm0, %v5435_v50 }
 0x3ae   : > { %v4886_v31 = vpop.f32.mrf.mxu1  ;;  %5081 = vmatpush3.bf16.msra.mxu0 %v3252_v22  ;;  %5084 = vmatprep.mubr.msk.bf16.mxu0 %vm269_vm0, %v5437_v51 }
 0x3af   : > { %4171 = vst.msk [vmem:[%s6111_s20 + $0x190] sm:$0x1] %vm276_vm1, %v4886_v31  ;;  %5082 = vmatprep.subr.bf16.mxu0 %v3251_v27 }
 0x3b0   : > { %v1812_v33 = vpop.f32.mrf.mxu1 }
 0x3b1   : > { %4169 = vst.msk [vmem:[%s6111_s20 + $0x180] sm:$0xff] %vm269_vm0, %v1812_v33 }
 0x3b2   : > { %v4887_v35 = vpop.f32.mrf.mxu1  ;;  %5083 = vmatpush3.bf16.msra.mxu0 %v3251_v27 }
 0x3b3   : > { %5096 = vmatprep.subr.bf16.mxu0 %v3370_v32 }
 0x3b4   : > { %v1815_v37 = vpop.f32.mrf.mxu1 }
 0x3b5   : > { %4170 = vst.msk [vmem:[%s6111_s20 + $0x188] sm:$0xff] %vm269_vm0, %v1815_v37  ;;  %5085 = vmatmul.mubr.msk.bf16.vlgmr.msra.gmra.mxu0 %vm269_vm0, %v5435_v50 }
 0x3b6   : > { %v4902_v39 = vpop.f32.mrf.mxu1  ;;  %5097 = vmatpush3.bf16.msra.mxu0 %v3370_v32  ;;  %5100 = vmatprep.mubr.msk.bf16.mxu0 %vm269_vm0, %v5437_v51 }
 0x3b7   : > { %4189 = vst.msk [vmem:[%s6111_s20 + $0x1c0] sm:$0x1] %vm276_vm1, %v4902_v39  ;;  %5098 = vmatprep.subr.bf16.mxu0 %v3369_v36 }
 0x3b8   : > { %v1930_v42 = vpop.f32.mrf.mxu1 }
 0x3b9   : > { %4187 = vst.msk [vmem:[%s6111_s20 + $0x1b0] sm:$0xff] %vm269_vm0, %v1930_v42 }
 0x3ba   : > { %v4903_v44 = vpop.f32.mrf.mxu1  ;;  %5099 = vmatpush3.bf16.msra.mxu0 %v3369_v36 }
 0x3bb   : > { %5112 = vmatprep.subr.bf16.mxu0 %v3488_v40 }
 0x3bc   : > { %v1933_v46 = vpop.f32.mrf.mxu1 }
 0x3bd   : > { %4188 = vst.msk [vmem:[%s6111_s20 + $0x1b8] sm:$0xff] %vm269_vm0, %v1933_v46  ;;  %5101 = vmatmul.mubr.msk.bf16.vlgmr.msra.gmra.mxu0 %vm269_vm0, %v5435_v50 }
 0x3be   : > { %v4918_v49 = vpop.f32.mrf.mxu1  ;;  %5113 = vmatpush3.bf16.msra.mxu0 %v3488_v40  ;;  %5116 = vmatprep.mubr.msk.bf16.mxu0 %vm269_vm0, %v5437_v51 }
 0x3bf   : > { %4207 = vst.msk [vmem:[%s6111_s20 + $0x1f0] sm:$0x1] %vm276_vm1, %v4918_v49  ;;  %5114 = vmatprep.subr.bf16.mxu0 %v3487_v45 }
 0x3c0   : > { %v2048_v55 = vpop.f32.mrf.mxu1 }
 0x3c1   : > { %4205 = vst.msk [vmem:[%s6111_s20 + $0x1e0] sm:$0xff] %vm269_vm0, %v2048_v55 }
 0x3c2   : > { %v4919_v61 = vpop.f32.mrf.mxu1  ;;  %5115 = vmatpush3.bf16.msra.mxu0 %v3487_v45 }
 0x3c3   : > { %5128 = vmatprep.subr.bf16.mxu0 %v3606_v54 }
 0x3c4   : > { %v2051_v63 = vpop.f32.mrf.mxu1 }
 0x3c5   : > { %4206 = vst.msk [vmem:[%s6111_s20 + $0x1e8] sm:$0xff] %vm269_vm0, %v2051_v63  ;;  %5117 = vmatmul.mubr.msk.bf16.vlgmr.msra.gmra.mxu0 %vm269_vm0, %v5435_v50 }
 0x3c6   : > { %v4934_v3 = vpop.f32.mrf.mxu1  ;;  %5129 = vmatpush3.bf16.msra.mxu0 %v3606_v54  ;;  %5132 = vmatprep.mubr.msk.bf16.mxu0 %vm269_vm0, %v5437_v51 }
 0x3c7   : > { %4225 = vst.msk [vmem:[%s6111_s20 + $0x220] sm:$0x1] %vm276_vm1, %v4934_v3  ;;  %5130 = vmatprep.subr.bf16.mxu0 %v3605_v62 }
 0x3c8   : > { %v2166_v5 = vpop.f32.mrf.mxu1 }
 0x3c9   : > { %4223 = vst.msk [vmem:[%s6111_s20 + $0x210] sm:$0xff] %vm269_vm0, %v2166_v5  ;;  %v583_v8 = vpop.f32.mrf.mxu0 }
 0x3ca   : > { %v6383_v9 = vmul.f32 0.25, %v583_v8  ;;  %v4935_v10 = vpop.f32.mrf.mxu1  ;;  %5131 = vmatpush3.bf16.msra.mxu0 %v3605_v62 }
 0x3cb   : > { %v4745_v11 = vpop.f32.mrf.mxu0  ;;  %5144 = vmatprep.subr.bf16.mxu0 %v3724_v4 }
 0x3cc   : > { %v2169_v13 = vpop.f32.mrf.mxu1  ;;  %v614_v14 = vsel %vm603_vm4, %v6383_v9, -inf }
 0x3cd   : > { %4224 = vst.msk [vmem:[%s6111_s20 + $0x218] sm:$0xff] %vm269_vm0, %v2169_v13  ;;  %v588_v17 = vpop.f32.mrf.mxu0  ;;  %5133 = vmatmul.mubr.msk.bf16.vlgmr.msra.gmra.mxu0 %vm269_vm0, %v5435_v50  ;;  %615 = vmax.xlane.f32.xlu0 %v614_v14 }
 0x3ce   : > { %v6397_v18 = vmul.f32 0.25, %v588_v17  ;;  %v4950_v19 = vpop.f32.mrf.mxu1  ;;  %5145 = vmatpush3.bf16.msra.mxu0 %v3724_v4  ;;  %5148 = vmatprep.mubr.msk.bf16.mxu0 %vm269_vm0, %v5437_v51 }
 0x3cf   : > { %4243 = vst.msk [vmem:[%s6111_s20 + $0x250] sm:$0x1] %vm276_vm1, %v4950_v19  ;;  %v4748_v20 = vpop.f32.mrf.mxu0  ;;  %5146 = vmatprep.subr.bf16.mxu0 %v3723_v12 }
 0x3d0   : > { %v2284_v22 = vpop.f32.mrf.mxu1  ;;  %v617_v23 = vsel %vm603_vm4, %v6397_v18, -inf }
 0x3d1   : > { %4241 = vst.msk [vmem:[%s6111_s20 + $0x240] sm:$0xff] %vm269_vm0, %v2284_v22  ;;  %v593_v26 = vpop.f32.mrf.mxu0  ;;  %618 = vmax.xlane.f32.xlu0 %v617_v23 }
 0x3d2   : > { %v6413_v27 = vmul.f32 0.25, %v593_v26  ;;  %v4951_v28 = vpop.f32.mrf.mxu1  ;;  %5147 = vmatpush3.bf16.msra.mxu0 %v3723_v12 }
 0x3d3   : > { %v4751_v29 = vpop.f32.mrf.mxu0  ;;  %5160 = vmatprep.subr.bf16.mxu0 %v3842_v21 }
 0x3d4   : > { %v2287_v31 = vpop.f32.mrf.mxu1  ;;  %v620_v32 = vsel %vm610_vm5, %v6413_v27, -inf }
 0x3d5   : > { %4242 = vst.msk [vmem:[%s6111_s20 + $0x248] sm:$0xff] %vm269_vm0, %v2287_v31  ;;  %v4766_v33 = vpop.f32.mrf.mxu0  ;;  %5149 = vmatmul.mubr.msk.bf16.vlgmr.msra.gmra.mxu0 %vm269_vm0, %v5435_v50  ;;  %621 = vmax.xlane.f32.xlu0 %v620_v32 }
 0x3d6   : > { %4036 = vst.msk [vmem:[%s6111_s20 + $0x28] sm:$0x1] %vm276_vm1, %v4766_v33  ;;  %5161 = vmatpush3.bf16.msra.mxu0 %v3842_v21  ;;  %5164 = vmatprep.mubr.msk.bf16.mxu0 %vm269_vm0, %v5437_v51 }
 0x3d7   : > { %v4966_v59 = vpop.f32.mrf.mxu1  ;;  %v927_v34 = vpop.f32.mrf.mxu0  ;;  %5162 = vmatprep.subr.bf16.mxu0 %v3841_v30 }
 0x3d8   : > { %4261 = vst.msk [vmem:[%s6111_s20 + $0x280] sm:$0x1] %vm276_vm1, %v4966_v59 }
 0x3d9   : > { %4034 = vst.msk [vmem:[%s6111_s20 + $0x18] sm:$0xff] %vm269_vm0, %v927_v34  ;;  %v2402_v35 = vpop.f32.mrf.mxu1  ;;  %v4767_v36 = vpop.f32.mrf.mxu0 }
 0x3da   : > { %4259 = vst.msk [vmem:[%s6111_s20 + $0x270] sm:$0xff] %vm269_vm0, %v2402_v35  ;;  %5163 = vmatpush3.bf16.msra.mxu0 %v3841_v30 }
 0x3db   : > { %v4967_v37 = vpop.f32.mrf.mxu1  ;;  %v930_v58 = vpop.f32.mrf.mxu0 }
 0x3dc   : > { %4035 = vst.msk [vmem:[%s6111_s20 + $0x20] sm:$0xff] %vm269_vm0, %v930_v58 }
 0x3dd   : > { %v2405_v51 = vpop.f32.mrf.mxu1  ;;  %v4782_v38 = vpop.f32.mrf.mxu0  ;;  %5165 = vmatmul.mubr.msk.bf16.vlgmr.msra.gmra.mxu0 %vm269_vm0, %v5435_v50 }
 0x3de   : > { %4260 = vst.msk [vmem:[%s6111_s20 + $0x278] sm:$0xff] %vm269_vm0, %v2405_v51 }
 0x3df   : > { %4054 = vst.msk [vmem:[%s6111_s20 + $0x58] sm:$0x1] %vm276_vm1, %v4782_v38  ;;  %v4982_v39 = vpop.f32.mrf.mxu1  ;;  %v1045_v40 = vpop.f32.mrf.mxu0 }
 0x3e0   : > { %4279 = vst.msk [vmem:[%s6111_s20 + $0x2b0] sm:$0x1] %vm276_vm1, %v4982_v39 }
 0x3e1   : > { %4052 = vst.msk [vmem:[%s6111_s20 + $0x48] sm:$0xff] %vm269_vm0, %v1045_v40  ;;  %v2520_v42 = vpop.f32.mrf.mxu1  ;;  %v4783_v43 = vpop.f32.mrf.mxu0 }
 0x3e2   : > { %4277 = vst.msk [vmem:[%s6111_s20 + $0x2a0] sm:$0xff] %vm269_vm0, %v2520_v42 }
 0x3e3   : > { %v4983_v57 = vpop.f32.mrf.mxu1  ;;  %v1048_v50 = vpop.f32.mrf.mxu0 }
 0x3e4   : > { %4053 = vst.msk [vmem:[%s6111_s20 + $0x50] sm:$0xff] %vm269_vm0, %v1048_v50 }
 0x3e5   : > { %v2523_v44 = vpop.f32.mrf.mxu1  ;;  %v4798_v45 = vpop.f32.mrf.mxu0 }
 0x3e6   : > { %4278 = vst.msk [vmem:[%s6111_s20 + $0x2a8] sm:$0xff] %vm269_vm0, %v2523_v44 }
 0x3e7   : > { %4072 = vst.msk [vmem:[%s6111_s20 + $0x88] sm:$0x1] %vm276_vm1, %v4798_v45  ;;  %v4998_v46 = vpop.f32.mrf.mxu1  ;;  %v1163_v47 = vpop.f32.mrf.mxu0 }
 0x3e8   : > { %4297 = vst.msk [vmem:[%s6111_s20 + $0x2e0] sm:$0x1] %vm276_vm1, %v4998_v46 }
 0x3e9   : > { %4070 = vst.msk [vmem:[%s6111_s20 + $0x78] sm:$0xff] %vm269_vm0, %v1163_v47  ;;  %v2638_v48 = vpop.f32.mrf.mxu1  ;;  %v4799_v49 = vpop.f32.mrf.mxu0 }
 0x3ea   : > { %4295 = vst.msk [vmem:[%s6111_s20 + $0x2d0] sm:$0xff] %vm269_vm0, %v2638_v48 }
 0x3eb   : > { %v4999_v54 = vpop.f32.mrf.mxu1  ;;  %v1166_v55 = vpop.f32.mrf.mxu0 }
 0x3ec   : > { %4071 = vst.msk [vmem:[%s6111_s20 + $0x80] sm:$0xff] %vm269_vm0, %v1166_v55 }
 0x3ed   : > { %v2641_v56 = vpop.f32.mrf.mxu1  ;;  %v4814_v60 = vpop.f32.mrf.mxu0 }
 0x3ee   : > { %4296 = vst.msk [vmem:[%s6111_s20 + $0x2d8] sm:$0xff] %vm269_vm0, %v2641_v56 }
 0x3ef   : > { %4090 = vst.msk [vmem:[%s6111_s20 + $0xb8] sm:$0x1] %vm276_vm1, %v4814_v60  ;;  %v5014_v61 = vpop.f32.mrf.mxu1  ;;  %v1281_v62 = vpop.f32.mrf.mxu0 }
 0x3f0   : > { %4315 = vst.msk [vmem:[%s6111_s20 + $0x310] sm:$0x1] %vm276_vm1, %v5014_v61  ;;  %v606_v63 = vpop.xlane.xlu1 %605 }
 0x3f1   : > { %4088 = vst.msk [vmem:[%s6111_s20 + $0xa8] sm:$0xff] %vm269_vm0, %v1281_v62  ;;  %v623_v0 = vsub.f32 %v6065_v41, %v606_v63  ;;  %v2756_v1 = vpop.f32.mrf.mxu1  ;;  %v4815_v3 = vpop.f32.mrf.mxu0 }
 0x3f2   : > { %4313 = vst.msk [vmem:[%s6111_s20 + $0x300] sm:$0xff] %vm269_vm0, %v2756_v1 }
 0x3f3   : > { %v629_v4 = vmul.f32 1.442695, %v623_v0  ;;  %v5015_v5 = vpop.f32.mrf.mxu1  ;;  %v1284_v6 = vpop.f32.mrf.mxu0 }
 0x3f4   : > { %4089 = vst.msk [vmem:[%s6111_s20 + $0xb0] sm:$0xff] %vm269_vm0, %v1284_v6  ;;  %v609_v7 = vpop.xlane.xlu0 %608 }
 0x3f5   : > { %5225 = vpow2.f32 %v629_v4  ;;  %v624_v8 = vsub.f32 %v6087_v53, %v609_v7  ;;  %v2759_v10 = vpop.f32.mrf.mxu1  ;;  %v4830_v11 = vpop.f32.mrf.mxu0 }
 0x3f6   : > { %4314 = vst.msk [vmem:[%s6111_s20 + $0x308] sm:$0xff] %vm269_vm0, %v2759_v10 }
 0x3f7   : > { %4108 = vst.msk [vmem:[%s6111_s20 + $0xe8] sm:$0x1] %vm276_vm1, %v4830_v11  ;;  %v631_v41 = vmul.f32 1.442695, %v624_v8  ;;  %v5030_v12 = vpop.f32.mrf.mxu1  ;;  %v1399_v13 = vpop.f32.mrf.mxu0 }
 0x3f8   : > { %4333 = vst.msk [vmem:[%s6111_s20 + $0x340] sm:$0x1] %vm276_vm1, %v5030_v12 }
 0x3f9   : > { %4106 = vst.msk [vmem:[%s6111_s20 + $0xd8] sm:$0xff] %vm269_vm0, %v1399_v13  ;;  %5227 = vpow2.f32 %v631_v41  ;;  %v2874_v53 = vpop.f32.mrf.mxu1  ;;  %v4831_v14 = vpop.f32.mrf.mxu0 }
 0x3fa   : > { %4331 = vst.msk [vmem:[%s6111_s20 + $0x330] sm:$0xff] %vm269_vm0, %v2874_v53 }
 0x3fb   : > { %v5031_v15 = vpop.f32.mrf.mxu1  ;;  %v1402_v16 = vpop.f32.mrf.mxu0 }
 0x3fc   : > { %4107 = vst.msk [vmem:[%s6111_s20 + $0xe0] sm:$0xff] %vm269_vm0, %v1402_v16 }
 0x3fd   : > { %v2877_v17 = vpop.f32.mrf.mxu1  ;;  %v4846_v19 = vpop.f32.mrf.mxu0 }
 0x3fe   : > { %4332 = vst.msk [vmem:[%s6111_s20 + $0x338] sm:$0xff] %vm269_vm0, %v2877_v17 }
 0x3ff   : > { %4126 = vst.msk [vmem:[%s6111_s20 + $0x118] sm:$0x1] %vm276_vm1, %v4846_v19  ;;  %v5046_v20 = vpop.f32.mrf.mxu1  ;;  %v1517_v21 = vpop.f32.mrf.mxu0 }
 0x400   : > { %4351 = vst.msk [vmem:[%s6111_s20 + $0x370] sm:$0x1] %vm276_vm1, %v5046_v20 }
 0x401   : > { %4124 = vst.msk [vmem:[%s6111_s20 + $0x108] sm:$0xff] %vm269_vm0, %v1517_v21  ;;  %v2992_v22 = vpop.f32.mrf.mxu1  ;;  %v4847_v23 = vpop.f32.mrf.mxu0 }
 0x402   : > { %v6493_v24 = vpop.eup %5225  ;;  %4349 = vst.msk [vmem:[%s6111_s20 + $0x360] sm:$0xff] %vm269_vm0, %v2992_v22 }
 0x403   : > { %v5047_v25 = vpop.f32.mrf.mxu1  ;;  %v1520_v26 = vpop.f32.mrf.mxu0  ;;  %v641_v28 = vsel %vm603_vm4, %v6493_v24, 0.0 }
 0x404   : > { %4125 = vst.msk [vmem:[%s6111_s20 + $0x110] sm:$0xff] %vm269_vm0, %v1520_v26  ;;  %642 = vadd.xlane.f32.xlu1 %v641_v28 }
 0x405   : > { %v2995_v29 = vpop.f32.mrf.mxu1  ;;  %v4862_v30 = vpop.f32.mrf.mxu0 }
 0x406   : > { %v6501_v31 = vpop.eup %5227  ;;  %4350 = vst.msk [vmem:[%s6111_s20 + $0x368] sm:$0xff] %vm269_vm0, %v2995_v29 }
 0x407   : > { %4144 = vst.msk [vmem:[%s6111_s20 + $0x148] sm:$0x1] %vm276_vm1, %v4862_v30  ;;  %v5062_v32 = vpop.f32.mrf.mxu1  ;;  %v1635_v33 = vpop.f32.mrf.mxu0  ;;  %v644_v59 = vsel %vm603_vm4, %v6501_v31, 0.0 }
 0x408   : > { %4369 = vst.msk [vmem:[%s6111_s20 + $0x3a0] sm:$0x1] %vm276_vm1, %v5062_v32  ;;  %645 = vadd.xlane.f32.xlu0 %v644_v59 }
 0x409   : > { %4142 = vst.msk [vmem:[%s6111_s20 + $0x138] sm:$0xff] %vm269_vm0, %v1635_v33  ;;  %v3110_v34 = vpop.f32.mrf.mxu1  ;;  %v4863_v35 = vpop.f32.mrf.mxu0 }
 0x40a   : > { %4367 = vst.msk [vmem:[%s6111_s20 + $0x390] sm:$0xff] %vm269_vm0, %v3110_v34 }
 0x40b   : > { %v5063_v36 = vpop.f32.mrf.mxu1  ;;  %v1638_v37 = vpop.f32.mrf.mxu0 }
 0x40c   : > { %4143 = vst.msk [vmem:[%s6111_s20 + $0x140] sm:$0xff] %vm269_vm0, %v1638_v37 }
 0x40d   : > { %v3113_v58 = vpop.f32.mrf.mxu1  ;;  %v4878_v51 = vpop.f32.mrf.mxu0 }
 0x40e   : > { %4368 = vst.msk [vmem:[%s6111_s20 + $0x398] sm:$0xff] %vm269_vm0, %v3113_v58 }
 0x40f   : > { %4162 = vst.msk [vmem:[%s6111_s20 + $0x178] sm:$0x1] %vm276_vm1, %v4878_v51  ;;  %v5078_v38 = vpop.f32.mrf.mxu1  ;;  %v1753_v39 = vpop.f32.mrf.mxu0 }
 0x410   : > { %4387 = vst.msk [vmem:[%s6111_s20 + $0x3d0] sm:$0x1] %vm276_vm1, %v5078_v38 }
 0x411   : > { %4160 = vst.msk [vmem:[%s6111_s20 + $0x168] sm:$0xff] %vm269_vm0, %v1753_v39  ;;  %v3228_v40 = vpop.f32.mrf.mxu1  ;;  %v4879_v42 = vpop.f32.mrf.mxu0 }
 0x412   : > { %4385 = vst.msk [vmem:[%s6111_s20 + $0x3c0] sm:$0xff] %vm269_vm0, %v3228_v40  ;;  %v613_v39 = vpop.xlane.xlu1 %612 }
 0x413   : > { %v5079_v43 = vpop.f32.mrf.mxu1  ;;  %v1756_v57 = vpop.f32.mrf.mxu0  ;;  %v625_v42 = vsub.f32 %v6106_v2, %v613_v39 }
 0x414   : > { %4161 = vst.msk [vmem:[%s6111_s20 + $0x170] sm:$0xff] %vm269_vm0, %v1756_v57 }
 0x415   : > { %v3231_v50 = vpop.f32.mrf.mxu1  ;;  %v4894_v44 = vpop.f32.mrf.mxu0 }
 0x416   : > { %4386 = vst.msk [vmem:[%s6111_s20 + $0x3c8] sm:$0xff] %vm269_vm0, %v3231_v50 }
 0x417   : > { %4180 = vst.msk [vmem:[%s6111_s20 + $0x1a8] sm:$0x1] %vm276_vm1, %v4894_v44  ;;  %v5094_v45 = vpop.f32.mrf.mxu1  ;;  %v1871_v46 = vpop.f32.mrf.mxu0 }
 0x418   : > { %4405 = vst.msk [vmem:[%s6111_s20 + $0x400] sm:$0x1] %vm276_vm1, %v5094_v45  ;;  %v633_v45 = vmul.f32 1.442695, %v625_v42 }
 0x419   : > { %4178 = vst.msk [vmem:[%s6111_s20 + $0x198] sm:$0xff] %vm269_vm0, %v1871_v46  ;;  %v3346_v47 = vpop.f32.mrf.mxu1  ;;  %v4895_v48 = vpop.f32.mrf.mxu0 }
 0x41a   : > { %4403 = vst.msk [vmem:[%s6111_s20 + $0x3f0] sm:$0xff] %vm269_vm0, %v3346_v47 }
 0x41b   : > { %v5095_v49 = vpop.f32.mrf.mxu1  ;;  %v1874_v54 = vpop.f32.mrf.mxu0 }
 0x41c   : > { %4179 = vst.msk [vmem:[%s6111_s20 + $0x1a0] sm:$0xff] %vm269_vm0, %v1874_v54 }
 0x41d   : > { %v3349_v55 = vpop.f32.mrf.mxu1  ;;  %v4910_v56 = vpop.f32.mrf.mxu0 }
 0x41e   : > { %4404 = vst.msk [vmem:[%s6111_s20 + $0x3f8] sm:$0xff] %vm269_vm0, %v3349_v55 }
 0x41f   : > { %4198 = vst.msk [vmem:[%s6111_s20 + $0x1d8] sm:$0x1] %vm276_vm1, %v4910_v56  ;;  %v5110_v60 = vpop.f32.mrf.mxu1  ;;  %v1989_v61 = vpop.f32.mrf.mxu0 }
 0x420   : > { %4423 = vst.msk [vmem:[%s6111_s20 + $0x430] sm:$0x1] %vm276_vm1, %v5110_v60 }
 0x421   : > { %4196 = vst.msk [vmem:[%s6111_s20 + $0x1c8] sm:$0xff] %vm269_vm0, %v1989_v61  ;;  %v3464_v62 = vpop.f32.mrf.mxu1  ;;  %v4911_v63 = vpop.f32.mrf.mxu0 }
 0x422   : > { %4421 = vst.msk [vmem:[%s6111_s20 + $0x420] sm:$0xff] %vm269_vm0, %v3464_v62 }
 0x423   : > { %v5111_v0 = vpop.f32.mrf.mxu1  ;;  %v1992_v1 = vpop.f32.mrf.mxu0 }
 0x424   : > { %4197 = vst.msk [vmem:[%s6111_s20 + $0x1d0] sm:$0xff] %vm269_vm0, %v1992_v1 }
 0x425   : > { %v3467_v3 = vpop.f32.mrf.mxu1  ;;  %v4926_v4 = vpop.f32.mrf.mxu0 }
 0x426   : > { %4422 = vst.msk [vmem:[%s6111_s20 + $0x428] sm:$0xff] %vm269_vm0, %v3467_v3 }
 0x427   : > { %4216 = vst.msk [vmem:[%s6111_s20 + $0x208] sm:$0x1] %vm276_vm1, %v4926_v4  ;;  %v5126_v5 = vpop.f32.mrf.mxu1  ;;  %v2107_v6 = vpop.f32.mrf.mxu0 }
 0x428   : > { %4441 = vst.msk [vmem:[%s6111_s20 + $0x460] sm:$0x1] %vm276_vm1, %v5126_v5 }
 0x429   : > { %4214 = vst.msk [vmem:[%s6111_s20 + $0x1f8] sm:$0xff] %vm269_vm0, %v2107_v6  ;;  %v3582_v7 = vpop.f32.mrf.mxu1  ;;  %v4927_v8 = vpop.f32.mrf.mxu0 }
 0x42a   : > { %4439 = vst.msk [vmem:[%s6111_s20 + $0x450] sm:$0xff] %vm269_vm0, %v3582_v7 }
 0x42b   : > { %v5127_v10 = vpop.f32.mrf.mxu1  ;;  %v2110_v11 = vpop.f32.mrf.mxu0 }
 0x42c   : > { %4215 = vst.msk [vmem:[%s6111_s20 + $0x200] sm:$0xff] %vm269_vm0, %v2110_v11 }
 0x42d   : > { %v3585_v41 = vpop.f32.mrf.mxu1  ;;  %v4942_v12 = vpop.f32.mrf.mxu0 }
 0x42e   : > { %4440 = vst.msk [vmem:[%s6111_s20 + $0x458] sm:$0xff] %vm269_vm0, %v3585_v41 }
 0x42f   : > { %4234 = vst.msk [vmem:[%s6111_s20 + $0x238] sm:$0x1] %vm276_vm1, %v4942_v12  ;;  %v5142_v13 = vpop.f32.mrf.mxu1  ;;  %v2225_v53 = vpop.f32.mrf.mxu0 }
 0x430   : > { %4459 = vst.msk [vmem:[%s6111_s20 + $0x490] sm:$0x1] %vm276_vm1, %v5142_v13 }
 0x431   : > { %4232 = vst.msk [vmem:[%s6111_s20 + $0x228] sm:$0xff] %vm269_vm0, %v2225_v53  ;;  %v3700_v14 = vpop.f32.mrf.mxu1  ;;  %v4943_v15 = vpop.f32.mrf.mxu0 }
 0x432   : > { %4457 = vst.msk [vmem:[%s6111_s20 + $0x480] sm:$0xff] %vm269_vm0, %v3700_v14 }
 0x433   : > { %v5143_v16 = vpop.f32.mrf.mxu1  ;;  %v2228_v17 = vpop.f32.mrf.mxu0 }
 0x434   : > { %4233 = vst.msk [vmem:[%s6111_s20 + $0x230] sm:$0xff] %vm269_vm0, %v2228_v17 }
 0x435   : > { %v3703_v19 = vpop.f32.mrf.mxu1  ;;  %v4958_v20 = vpop.f32.mrf.mxu0 }
 0x436   : > { %4458 = vst.msk [vmem:[%s6111_s20 + $0x488] sm:$0xff] %vm269_vm0, %v3703_v19 }
 0x437   : > { %4252 = vst.msk [vmem:[%s6111_s20 + $0x268] sm:$0x1] %vm276_vm1, %v4958_v20  ;;  %v5158_v21 = vpop.f32.mrf.mxu1  ;;  %v2343_v22 = vpop.f32.mrf.mxu0 }
 0x438   : > { %4477 = vst.msk [vmem:[%s6111_s20 + $0x4c0] sm:$0x1] %vm276_vm1, %v5158_v21 }
 0x439   : > { %4250 = vst.msk [vmem:[%s6111_s20 + $0x258] sm:$0xff] %vm269_vm0, %v2343_v22  ;;  %v3818_v23 = vpop.f32.mrf.mxu1  ;;  %v4959_v25 = vpop.f32.mrf.mxu0 }
 0x43a   : > { %4475 = vst.msk [vmem:[%s6111_s20 + $0x4b0] sm:$0xff] %vm269_vm0, %v3818_v23 }
 0x43b   : > { %v5159_v26 = vpop.f32.mrf.mxu1  ;;  %v2346_v28 = vpop.f32.mrf.mxu0 }
 0x43c   : > { %4251 = vst.msk [vmem:[%s6111_s20 + $0x260] sm:$0xff] %vm269_vm0, %v2346_v28 }
 0x43d   : > { %v3821_v29 = vpop.f32.mrf.mxu1  ;;  %v4974_v30 = vpop.f32.mrf.mxu0 }
 0x43e   : > { %4476 = vst.msk [vmem:[%s6111_s20 + $0x4b8] sm:$0xff] %vm269_vm0, %v3821_v29 }
 0x43f   : > { %4270 = vst.msk [vmem:[%s6111_s20 + $0x298] sm:$0x1] %vm276_vm1, %v4974_v30  ;;  %v2461_v32 = vpop.f32.mrf.mxu0 }
 0x440   : > { %4268 = vst.msk [vmem:[%s6111_s20 + $0x288] sm:$0xff] %vm269_vm0, %v2461_v32 }
 0x441   : > { %v4975_v33 = vpop.f32.mrf.mxu0 }
 0x443   : > { %v2464_v59 = vpop.f32.mrf.mxu0 }
 0x444   : > { %4269 = vst.msk [vmem:[%s6111_s20 + $0x290] sm:$0xff] %vm269_vm0, %v2464_v59 }
 0x445   : > { %v4990_v34 = vpop.f32.mrf.mxu0 }
 0x446   : > { %4288 = vst.msk [vmem:[%s6111_s20 + $0x2c8] sm:$0x1] %vm276_vm1, %v4990_v34 }
 0x447   : > { %v2579_v35 = vpop.f32.mrf.mxu0 }
 0x448   : > { %4286 = vst.msk [vmem:[%s6111_s20 + $0x2b8] sm:$0xff] %vm269_vm0, %v2579_v35 }
 0x449   : > { %v4991_v36 = vpop.f32.mrf.mxu0 }
 0x44b   : > { %v2582_v37 = vpop.f32.mrf.mxu0 }
 0x44c   : > { %4287 = vst.msk [vmem:[%s6111_s20 + $0x2c0] sm:$0xff] %vm269_vm0, %v2582_v37 }
 0x44d   : > { %v5006_v58 = vpop.f32.mrf.mxu0 }
 0x44e   : > { %4306 = vst.msk [vmem:[%s6111_s20 + $0x2f8] sm:$0x1] %vm276_vm1, %v5006_v58 }
 0x44f   : > { %v2697_v51 = vpop.f32.mrf.mxu0 }
 0x450   : > { %4304 = vst.msk [vmem:[%s6111_s20 + $0x2e8] sm:$0xff] %vm269_vm0, %v2697_v51 }
 0x451   : > { %v5007_v38 = vpop.f32.mrf.mxu0 }
 0x453   : > { %v2700_v40 = vpop.f32.mrf.mxu0 }
 0x454   : > { %4305 = vst.msk [vmem:[%s6111_s20 + $0x2f0] sm:$0xff] %vm269_vm0, %v2700_v40 }
 0x455   : > { %v5022_v43 = vpop.f32.mrf.mxu0 }
 0x456   : > { %4324 = vst.msk [vmem:[%s6111_s20 + $0x328] sm:$0x1] %vm276_vm1, %v5022_v43  ;;  %v616_v57 = vpop.xlane.xlu0 %615 }
 0x457   : > { %v626_v50 = vsub.f32 %v6383_v9, %v616_v57  ;;  %v2815_v44 = vpop.f32.mrf.mxu0  ;;  %v5315_v57 = vmov 1983009808  }
 0x458   : > { %4322 = vst.msk [vmem:[%s6111_s20 + $0x318] sm:$0xff] %vm269_vm0, %v2815_v44  ;;  %v673_v44 = vlaneseq }
 0x459   : > { %v635_v46 = vmul.f32 1.442695, %v626_v50  ;;  %v5023_v47 = vpop.f32.mrf.mxu0  ;;  %v671_v50 = vunpack.c.l.s4 %v5315_v57 }
 0x45a   : > { %v619_v48 = vpop.xlane.xlu0 %618 }
 0x45b   : > { %5229 = vpow2.f32 %v635_v46  ;;  %v627_v49 = vsub.f32 %v6397_v18, %v619_v48  ;;  %v2818_v2 = vpop.f32.mrf.mxu0  ;;  %v672_v48 = vunpack.c.0.s8 %v671_v50 }
 0x45c   : > { %4323 = vst.msk [vmem:[%s6111_s20 + $0x320] sm:$0xff] %vm269_vm0, %v2818_v2  ;;  %5231 = vpow2.f32 %v633_v45  ;;  %v5316_v2 = vmov 1934713408  }
 0x45d   : > { %v637_v54 = vmul.f32 1.442695, %v627_v49  ;;  %v5038_v55 = vpop.f32.mrf.mxu0  ;;  %v674_v49 = vshrl.u32 %v673_v44, 7 }
 0x45e   : > { %4342 = vst.msk [vmem:[%s6111_s20 + $0x358] sm:$0x1] %vm276_vm1, %v5038_v55  ;;  %v622_v9 = vpop.xlane.xlu0 %621 }
 0x45f   : > { %5233 = vpow2.f32 %v637_v54  ;;  %v628_v56 = vsub.f32 %v6413_v27, %v622_v9  ;;  %v2933_v60 = vpop.f32.mrf.mxu0  ;;  %v702_v54 = vunpack.c.l.s4 %v5316_v2 }
 0x460   : > { %4340 = vst.msk [vmem:[%s6111_s20 + $0x348] sm:$0xff] %vm269_vm0, %v2933_v60 }
 0x461   : > { %v639_v61 = vmul.f32 1.442695, %v628_v56  ;;  %v5039_v18 = vpop.f32.mrf.mxu0  ;;  %v675_v56 = vsub.s32 %v672_v48, %v674_v49  ;;  %v703_v60 = vunpack.c.0.s8 %v702_v54 }
 0x463   : > { %5235 = vpow2.f32 %v639_v61  ;;  %v2936_v62 = vpop.f32.mrf.mxu0 }
 0x464   : > { %4341 = vst.msk [vmem:[%s6111_s20 + $0x350] sm:$0xff] %vm269_vm0, %v2936_v62 }
 0x465   : > { %v5054_v63 = vpop.f32.mrf.mxu0 }
 0x466   : > { %4360 = vst.msk [vmem:[%s6111_s20 + $0x388] sm:$0x1] %vm276_vm1, %v5054_v63 }
 0x467   : > { %v3051_v0 = vpop.f32.mrf.mxu0 }
 0x468   : > { %v6627_v1 = vpop.eup %5229  ;;  %4358 = vst.msk [vmem:[%s6111_s20 + $0x378] sm:$0xff] %vm269_vm0, %v3051_v0  ;;  %v706_v0 = vsub.s32 %v703_v60, %v674_v49 }
 0x469   : > { %v5055_v27 = vpop.f32.mrf.mxu0  ;;  %v650_v3 = vsel %vm603_vm4, %v6627_v1, 0.0  ;;  %v6633_v4 = vpop.eup %5231 }
 0x46a   : > { %651 = vadd.xlane.f32.xlu1 %v650_v3  ;;  %v647_v10 = vsel %vm610_vm5, %v6633_v4, 0.0 }
 0x46b   : > { %v3054_v5 = vpop.f32.mrf.mxu0 }
 0x46c   : > { %v6635_v6 = vpop.eup %5233  ;;  %4359 = vst.msk [vmem:[%s6111_s20 + $0x380] sm:$0xff] %vm269_vm0, %v3054_v5 }
 0x46d   : > { %v5070_v7 = vpop.f32.mrf.mxu0  ;;  %v653_v8 = vsel %vm603_vm4, %v6635_v6, 0.0 }
 0x46e   : > { %4378 = vst.msk [vmem:[%s6111_s20 + $0x3b8] sm:$0x1] %vm276_vm1, %v5070_v7  ;;  %654 = vadd.xlane.f32.xlu0 %v653_v8  ;;  %648 = vadd.xlane.f32.xlu1 %v647_v10 }
 0x46f   : > { %v3169_v11 = vpop.f32.mrf.mxu0 }
 0x470   : > { %v6645_v41 = vpop.eup %5235  ;;  %4376 = vst.msk [vmem:[%s6111_s20 + $0x3a8] sm:$0xff] %vm269_vm0, %v3169_v11 }
 0x471   : > { %v5071_v12 = vpop.f32.mrf.mxu0  ;;  %v656_v13 = vsel %vm610_vm5, %v6645_v41, 0.0 }
 0x472   : > { %657 = vadd.xlane.f32.xlu0 %v656_v13 }
 0x473   : > { %v3172_v53 = vpop.f32.mrf.mxu0 }
 0x474   : > { %4377 = vst.msk [vmem:[%s6111_s20 + $0x3b0] sm:$0xff] %vm269_vm0, %v3172_v53 }
 0x475   : > { %v5086_v14 = vpop.f32.mrf.mxu0 }
 0x476   : > { %4396 = vst.msk [vmem:[%s6111_s20 + $0x3e8] sm:$0x1] %vm276_vm1, %v5086_v14 }
 0x477   : > { %v3287_v15 = vpop.f32.mrf.mxu0 }
 0x478   : > { %4394 = vst.msk [vmem:[%s6111_s20 + $0x3d8] sm:$0xff] %vm269_vm0, %v3287_v15 }
 0x479   : > { %v5087_v16 = vpop.f32.mrf.mxu0 }
 0x47b   : > { %v3290_v17 = vpop.f32.mrf.mxu0 }
 0x47c   : > { %4395 = vst.msk [vmem:[%s6111_s20 + $0x3e0] sm:$0xff] %vm269_vm0, %v3290_v17 }
 0x47d   : > { %v5102_v19 = vpop.f32.mrf.mxu0 }
 0x47e   : > { %4414 = vst.msk [vmem:[%s6111_s20 + $0x418] sm:$0x1] %vm276_vm1, %v5102_v19 }
 0x47f   : > { %v3405_v20 = vpop.f32.mrf.mxu0 }
 0x480   : > { %4412 = vst.msk [vmem:[%s6111_s20 + $0x408] sm:$0xff] %vm269_vm0, %v3405_v20 }
 0x481   : > { %v5103_v21 = vpop.f32.mrf.mxu0 }
 0x483   : > { %v3408_v22 = vpop.f32.mrf.mxu0 }
 0x484   : > { %4413 = vst.msk [vmem:[%s6111_s20 + $0x410] sm:$0xff] %vm269_vm0, %v3408_v22 }
 0x485   : > { %v5118_v23 = vpop.f32.mrf.mxu0 }
 0x486   : > { %4432 = vst.msk [vmem:[%s6111_s20 + $0x448] sm:$0x1] %vm276_vm1, %v5118_v23 }
 0x487   : > { %v3523_v25 = vpop.f32.mrf.mxu0 }
 0x488   : > { %4430 = vst.msk [vmem:[%s6111_s20 + $0x438] sm:$0xff] %vm269_vm0, %v3523_v25 }
 0x489   : > { %v5119_v26 = vpop.f32.mrf.mxu0 }
 0x48b   : > { %v3526_v28 = vpop.f32.mrf.mxu0 }
 0x48c   : > { %4431 = vst.msk [vmem:[%s6111_s20 + $0x440] sm:$0xff] %vm269_vm0, %v3526_v28 }
 0x48d   : > { %v5134_v29 = vpop.f32.mrf.mxu0  ;;  %v643_v39 = vpop.xlane.xlu1 %642 }
 0x48e   : > { %4450 = vst.msk [vmem:[%s6111_s20 + $0x478] sm:$0x1] %vm276_vm1, %v5134_v29  ;;  %5237 = vrcp.f32 %v643_v39 }
 0x48f   : > { %v3641_v30 = vpop.f32.mrf.mxu0 }
 0x490   : > { %4448 = vst.msk [vmem:[%s6111_s20 + $0x468] sm:$0xff] %vm269_vm0, %v3641_v30 }
 0x491   : > { %v5135_v32 = vpop.f32.mrf.mxu0  ;;  %v646_v40 = vpop.xlane.xlu0 %645 }
 0x492   : > { %5239 = vrcp.f32 %v646_v40 }
 0x493   : > { %v3644_v33 = vpop.f32.mrf.mxu0 }
 0x494   : > { %4449 = vst.msk [vmem:[%s6111_s20 + $0x470] sm:$0xff] %vm269_vm0, %v3644_v33 }
 0x495   : > { %v5150_v59 = vpop.f32.mrf.mxu0 }
 0x496   : > { %4468 = vst.msk [vmem:[%s6111_s20 + $0x4a8] sm:$0x1] %vm276_vm1, %v5150_v59 }
 0x497   : > { %v3759_v34 = vpop.f32.mrf.mxu0 }
 0x498   : > { %4466 = vst.msk [vmem:[%s6111_s20 + $0x498] sm:$0xff] %vm269_vm0, %v3759_v34 }
 0x499   : > { %v5151_v35 = vpop.f32.mrf.mxu0 }
 0x49b   : > { %v3762_v36 = vpop.f32.mrf.mxu0  ;;  %v5238_v46 = vpop.eup %5237 }
 0x49c   : > { %4467 = vst.msk [vmem:[%s6111_s20 + $0x4a0] sm:$0xff] %vm269_vm0, %v3762_v36  ;;  %v665_v55 = vmul.f32 %v5238_v46, %v6493_v24 }
 0x49d   : > { %v5166_v37 = vpop.f32.mrf.mxu0 }
 0x49e   : > { %4486 = vst.msk [vmem:[%s6111_s20 + $0x4d8] sm:$0x1] %vm276_vm1, %v5166_v37  ;;  %v669_v18 = vcombine.high %v665_v55, %v5311_v52  ;;  %v676_v27 = vrot.slane %v665_v55, %v675_v56 }
 0x49f   : > { %v3877_v58 = vpop.f32.mrf.mxu0  ;;  %v5240_v9 = vpop.eup %5239 }
 0x4a0   : > { %4484 = vst.msk [vmem:[%s6111_s20 + $0x4c8] sm:$0xff] %vm269_vm0, %v3877_v58  ;;  %v666_v62 = vmul.f32 %v5240_v9, %v6501_v31  ;;  %v683_v24 = vrot.slane %v669_v18, %v675_v56 }
 0x4a1   : > { %v5167_v51 = vpop.f32.mrf.mxu0 }
 0x4a2   : > { %v735_v8 = vcombine.high %v666_v62, %v5311_v52  ;;  %v742_v17 = vrot.slane %v666_v62, %v675_v56 }
 0x4a3   : > { %v3880_v38 = vpop.f32.mrf.mxu0 }
 0x4a4   : > { %4485 = vst.msk [vmem:[%s6111_s20 + $0x4d0] sm:$0xff] %vm269_vm0, %v3880_v38  ;;  %s243_s20 = sand.u32 1, %s5301_s22   ;;  %v749_v19 = vrot.slane %v735_v8, %v675_v56 }
 0x4a5   : > { %s5168_s9 = smul.u32 34, %s243_s20  ;;  %s6757_s18 = scalar_lea.sflag [#allocation3], %s243_s20 }
 0x4a7   : > { %s6702_s13 = scalar_lea.vmem [#allocation2], %s5168_s9 }
 0x4a8   : > { %s3914_s15 = sshll.u32 %s6702_s13, 4  ;;  %s6747_s15 = int_to_ptr.vmem [resolvable:$true] %s3914_s15 }
 0x4a9   : > { %s5249_s19 = scalar_lea.vmem %s6747_s15, 544  ;;  %p5256_p0 = scmp.lt.s32.totalorder %s6747_s15, %s5254_s28 }
 0x4aa   : > { %p5250_p11 = scmp.ne.s32.totalorder %s6747_s15, %s5249_s19  ;;  %p5257_p1 = scmp.lt.s32.totalorder %s5255_s29, %s5249_s19 }
 0x4ac   : > { %p5251_p12 = pnand %p5250_p11, %p5393_p5  ;;  %p5258_p2 = por %p5257_p1, %p5256_p0 }
 0x4ae   : > { %p5252_p13 = pneg %p5251_p12 }
 0x4b0   : > { %p5259_p3 = pnand %p5258_p2, %p5252_p13 }
 0x4f3   : > { %v652_v42 = vpop.xlane.xlu1 %651 }
 0x4f4   : > { %5241 = vrcp.f32 %v652_v42 }
 0x4f7   : > { %v655_v43 = vpop.xlane.xlu0 %654  ;;  %v649_v45 = vpop.xlane.xlu1 %648 }
 0x4f8   : > { %5243 = vrcp.f32 %v655_v43 }
 0x4f9   : > { %5245 = vrcp.f32 %v649_v45 }
 0x4fb   : > { %v658_v47 = vpop.xlane.xlu0 %657 }
 0x4fc   : > { %5247 = vrcp.f32 %v658_v47 }
 0x501   : > { %v5242_v61 = vpop.eup %5241 }
 0x502   : > { %v667_v63 = vmul.f32 %v5242_v61, %v6627_v1 }
 0x504   : > { %v684_v3 = vcombine.high %v667_v63, %v5311_v52  ;;  %v691_v5 = vrot.slane %v667_v63, %v675_v56 }
 0x505   : > { %v5244_v7 = vpop.eup %5243 }
 0x506   : > { %v698_v10 = vrot.slane %v684_v3, %v675_v56  ;;  %v699_v11 = vcombine.low %v676_v27, %v691_v5  ;;  %v700_v12 = vcombine.high %v676_v27, %v691_v5  ;;  %v668_v13 = vmul.f32 %v5244_v7, %v6635_v6  ;;  %v5246_v31 = vpop.eup %5245 }
 0x507   : > { %v801_v59 = vmul.f32 %v5246_v31, %v6633_v4 }
 0x508   : > { %v707_v53 = vrot.slane %v699_v11, %v706_v0  ;;  %v714_v1 = vrot.slane %v700_v12, %v706_v0  ;;  %v715_v14 = vcombine.low %v683_v24, %v698_v10  ;;  %v716_v15 = vcombine.high %v683_v24, %v698_v10 }
 0x509   : > { %v5248_v16 = vpop.eup %5247  ;;  %v750_v20 = vcombine.high %v668_v13, %v5311_v52  ;;  %v757_v21 = vrot.slane %v668_v13, %v675_v56 }
 0x50a   : > { %v723_v22 = vrot.slane %v715_v14, %v706_v0  ;;  %v730_v23 = vrot.slane %v716_v15, %v706_v0  ;;  %v731_v25 = vcombine.high %v707_v53, %v5311_v52  ;;  %v732_v26 = vcombine.high %v714_v1, %v5311_v52  ;;  %812 = vst.msk [vmem:[%s6702_s13] sm:$0x3] %vm811_vm6, %v707_v53 }
 0x50b   : > { %814 = vst.msk [vmem:[%s6702_s13 + $0x4] sm:$0x3] %vm811_vm6, %v714_v1  ;;  %v764_v6 = vrot.slane %v750_v20, %v675_v56  ;;  %v765_v28 = vcombine.low %v742_v17, %v757_v21  ;;  %v766_v29 = vcombine.high %v742_v17, %v757_v21  ;;  %v802_v30 = vmul.f32 %v5248_v16, %v6645_v41 }
 0x50c   : > { %v733_v32 = vcombine.high %v723_v22, %v5311_v52  ;;  %v734_v33 = vcombine.high %v730_v23, %v5311_v52  ;;  %813 = vst.msk [vmem:[%s6702_s13 + $0x2] sm:$0x3] %vm811_vm6, %v731_v25  ;;  %815 = vst.msk [vmem:[%s6702_s13 + $0x6] sm:$0x3] %vm811_vm6, %v732_v26 }
 0x50d   : > { %816 = vst.msk [vmem:[%s6702_s13 + $0x8] sm:$0x3] %vm811_vm6, %v723_v22  ;;  %818 = vst.msk [vmem:[%s6702_s13 + $0xc] sm:$0x3] %vm811_vm6, %v730_v23  ;;  %v773_v34 = vrot.slane %v765_v28, %v706_v0  ;;  %v780_v41 = vrot.slane %v766_v29, %v706_v0  ;;  %v781_v35 = vcombine.low %v749_v19, %v764_v6 }
 0x50e   : > { %v782_v36 = vcombine.high %v749_v19, %v764_v6  ;;  %817 = vst.msk [vmem:[%s6702_s13 + $0xa] sm:$0x3] %vm811_vm6, %v733_v32  ;;  %819 = vst.msk [vmem:[%s6702_s13 + $0xe] sm:$0x3] %vm811_vm6, %v734_v33  ;;  %v803_v37 = vcombine.low %v801_v59, %v802_v30 }
 0x50f   : > { %v789_v58 = vrot.slane %v781_v35, %v706_v0  ;;  %v797_v4 = vcombine.high %v773_v34, %v5311_v52  ;;  %v798_v38 = vcombine.high %v780_v41, %v5311_v52  ;;  %820 = vst.msk [vmem:[%s6702_s13 + $0x10] sm:$0x3] %vm811_vm6, %v773_v34  ;;  %822 = vst.msk [vmem:[%s6702_s13 + $0x14] sm:$0x3] %vm811_vm6, %v780_v41 }
 0x510   : > { %v796_v51 = vrot.slane %v782_v36, %v706_v0  ;;  %v810_v39 = vrot.slane %v803_v37, %v706_v0 }
 0x511   : > { %v799_v40 = vcombine.high %v789_v58, %v5311_v52  ;;  %821 = vst.msk [vmem:[%s6702_s13 + $0x12] sm:$0x3] %vm811_vm6, %v797_v4  ;;  %823 = vst.msk [vmem:[%s6702_s13 + $0x16] sm:$0x3] %vm811_vm6, %v798_v38 }
 0x512   : > { %v800_v42 = vcombine.high %v796_v51, %v5311_v52  ;;  %824 = vst.msk [vmem:[%s6702_s13 + $0x18] sm:$0x3] %vm811_vm6, %v789_v58  ;;  %826 = vst.msk [vmem:[%s6702_s13 + $0x1c] sm:$0x3] %vm811_vm6, %v796_v51 }
 0x513   : > { %828 = vst.msk [vmem:[%s6702_s13 + $0x20] sm:$0x3] %vm811_vm6, %v810_v39  ;;  %825 = vst.msk [vmem:[%s6702_s13 + $0x1a] sm:$0x3] %vm811_vm6, %v799_v40 }
 0x514   : > { %827 = vst.msk [vmem:[%s6702_s13 + $0x1e] sm:$0x3] %vm811_vm6, %v800_v42 }
 0x515   : > { %5262 = shalt.err (!%p5259_p3)
}
 0x516   : > { %s5263_s11 = scalar_lea.hbm %s6735_s17, 544  ;;  %s5267_s20 = scalar_lea.hbm %s6802_s5, 1088 }
 0x517   : > { %p5264_p4 = scmp.ne.s32.totalorder %s6735_s17, %s5263_s11  ;;  %p5268_p9 = scmp.lt.s32.totalorder %s6735_s17, %s6802_s5 }
 0x518   : > { %p5269_p10 = scmp.lt.s32.totalorder %s5267_s20, %s5263_s11 }
 0x519   : > { %p5265_p7 = pnand %p5264_p4, %p5393_p5 }
 0x51a   : > { %p5270_p11 = por %p5269_p10, %p5268_p9 }
 0x51b   : > { %p5266_p8 = pneg %p5265_p7 }
 0x51d   : > { %p5271_p12 = pnand %p5270_p11, %p5266_p8 }
 0x51f   : > { %5274 = shalt.err (!%p5271_p12)
}
 0x520   : > { %s5318_s14 = smov 32   ;;  %s5319_s25 = smov 2  }
 0x521   : > { %5172 = dma.vmem_to_hbm [thread:$0]  (%p5393_p5), %s6747_s15, 544, %s6735_s17, %s6757_s18, %s5318_s14, %s5318_s14, %s5319_s25  }
 0x522 PF: > { %p5178_p13 = scmp.ge.s32.totalorder %s5309_s24, 2  ;;  %s3932_s16 = sand.u32 1, %s5297_s21  }
 0x523   : > { %s3933_s19 = scalar_lea.sflag [#allocation3], %s3932_s16 }
 0x524   : > { %p5175_p0 = pnand %p5178_p13, %p5397_p6 }
 0x526   : > { %p5176_p1 = pneg %p5175_p0 }
 0x528   : > { %5292 = dma.done.wait (%p5176_p1), %s3933_s19, 544  }
 0x529   : > { %5294 = vsyncadd (%p5176_p1), %s3933_s19, 4294966752  ;;  %p17_p2 = scmp.ge.s32.totalorder %s5380_s27, 4   ;;  %s6806_s21 = smov %s5301_s22 }
 0x52a   : > { %s6807_s22 = smov %s5305_s23  ;;  %s6808_s23 = smov %s5391_s30 }
 0x52b   : > { %s6809_s24 = smov %s5380_s27  ;;  %19 = sbr.rel (!%p17_p2) target bundleno = 3 (0x3), region = 189 }
 0x530   :  { %3946 = vsyncpa [#allocation3], 1 }
 0x531   :  { %3948 = vsyncpa [#allocation3 + $0x1], 1 }

</bundles_post_ra>
